<compile_context>
chip_gen: v7x
topology: tpu7x:2x2x1
jax: 0.10.0
libtpu: 0.0.40
codegen_flags: <defaults>
</compile_context>

<pallas_src>
import functools

import jax
import jax.numpy as jnp
from jax.experimental import pallas as pl
from jax.experimental.pallas import tpu as pltpu

IMAGE_SIZE = 28 * 28  # 784
H1 = 512
H2 = 256
OUT = 1
OUT_PAD = 128  # lane-dense padding of the final layer


def discriminator_kernel(x_ref, w1_ref, b1_ref, w2_ref, b2_ref, w3_ref, b3_ref,
                         o_ref):
    # x_ref: [tb, 784] bf16; w*_ref: [in, out] bf16; b*_ref: [1, out] f32;
    # o_ref: [tb, OUT_PAD] f32.
    x = x_ref[...]

    # Linear(784 -> 512) + LeakyReLU(0.2)  (f32 accumulation on the MXU)
    h1 = jnp.dot(x, w1_ref[...], preferred_element_type=jnp.float32) + b1_ref[...]
    h1 = jnp.where(h1 > 0, h1, 0.2 * h1).astype(jnp.bfloat16)

    # Linear(512 -> 256) + LeakyReLU(0.2)
    h2 = jnp.dot(h1, w2_ref[...], preferred_element_type=jnp.float32) + b2_ref[...]
    h2 = jnp.where(h2 > 0, h2, 0.2 * h2).astype(jnp.bfloat16)

    # Linear(256 -> 1, lane-padded to 128) + Sigmoid
    h3 = jnp.dot(h2, w3_ref[...], preferred_element_type=jnp.float32) + b3_ref[...]
    # sigmoid: exp on the EUP, reciprocal on the EUP (approx) -> VALU stays free
    o_ref[...] = pl.reciprocal(1.0 + jnp.exp(-h3), approx=True).astype(o_ref.dtype)


def _prepare_params(params):
    """Cast weights to bf16, keep biases f32, lane-pad the final layer."""
    w1 = params["w1"].astype(jnp.bfloat16)
    b1 = params["b1"].reshape(1, H1).astype(jnp.float32)
    w2 = params["w2"].astype(jnp.bfloat16)
    b2 = params["b2"].reshape(1, H2).astype(jnp.float32)

    w3 = jnp.zeros((H2, OUT_PAD), jnp.bfloat16)
    w3 = w3.at[:, :OUT].set(params["w3"].astype(jnp.bfloat16))
    b3 = jnp.zeros((1, OUT_PAD), jnp.float32)
    b3 = b3.at[:, :OUT].set(params["b3"].reshape(1, OUT).astype(jnp.float32))
    return w1, b1, w2, b2, w3, b3


@functools.partial(jax.jit, static_argnames=("tb",))
def discriminator_forward(x, params, *, tb=256):
    """x: [B, 784] float; params: dict of weights/biases. Returns [B, 1] f32."""
    B, F = x.shape
    assert F == IMAGE_SIZE

    w1, b1, w2, b2, w3, b3 = _prepare_params(params)

    # Pad the batch up to a multiple of the batch tile; bf16 inputs halve DMA.
    n_blocks = pl.cdiv(B, tb)
    B_pad = n_blocks * tb
    x = x.astype(jnp.bfloat16)
    if B_pad != B:
        x = jnp.pad(x, ((0, B_pad - B), (0, 0)))

    # Grid-invariant weights/biases: constant block index 0.
    full = lambda shape: pl.BlockSpec(shape, lambda i: (0, 0))

    out = pl.pallas_call(
        discriminator_kernel,
        out_shape=jax.ShapeDtypeStruct((B_pad, OUT_PAD), jnp.float32),
        grid_spec=pltpu.PrefetchScalarGridSpec(
            num_scalar_prefetch=0,
            grid=(n_blocks,),
            in_specs=[
                pl.BlockSpec((tb, IMAGE_SIZE), lambda i: (i, 0)),  # x tile
                full((IMAGE_SIZE, H1)),
                full((1, H1)),
                full((H1, H2)),
                full((1, H2)),
                full((H2, OUT_PAD)),
                full((1, OUT_PAD)),
            ],
            out_specs=pl.BlockSpec((tb, OUT_PAD), lambda i: (i, 0)),
        ),
        compiler_params=pltpu.CompilerParams(
            dimension_semantics=("parallel",)),
    )(x, w1, b1, w2, b2, w3, b3)

    # Drop batch padding and the lane padding of the final layer.
    return out[:B, :OUT]


def init_params(key):
    """Deterministic init mimicking nn.Linear default (U[-1/sqrt(fan_in), +])."""
    ks = jax.random.split(key, 6)

    def linear(kw, kb, fan_in, fan_out):
        bound = 1.0 / jnp.sqrt(fan_in)
        w = jax.random.uniform(kw, (fan_in, fan_out), jnp.float32, -bound, bound)
        b = jax.random.uniform(kb, (1, fan_out), jnp.float32, -bound, bound)
        return w, b

    w1, b1 = linear(ks[0], ks[1], IMAGE_SIZE, H1)
    w2, b2 = linear(ks[2], ks[3], H1, H2)
    w3, b3 = linear(ks[4], ks[5], H2, OUT)
    return {"w1": w1, "b1": b1, "w2": w2, "b2": b2, "w3": w3, "b3": b3}


def reference_forward(x, p):
    """Pure-JAX f32 reference of the PyTorch module."""
    h1 = x @ p["w1"] + p["b1"]
    h1 = jnp.where(h1 > 0, h1, 0.2 * h1)
    h2 = h1 @ p["w2"] + p["b2"]
    h2 = jnp.where(h2 > 0, h2, 0.2 * h2)
    h3 = h2 @ p["w3"] + p["b3"]
    return jax.nn.sigmoid(h3)


if __name__ == "__main__":
    key = jax.random.PRNGKey(0)
    k_param, k_x = jax.random.split(key)

    params = init_params(k_param)
    B = 512  # 2 grid steps of tb=256 (keeps both v7x TensorCores busy)
    x = jax.random.normal(k_x, (B, IMAGE_SIZE), dtype=jnp.float32)

    out = discriminator_forward(x, params)
    out = jax.block_until_ready(out)

    ref = reference_forward(x, params)
    assert out.shape == (B, OUT)
    # bf16 matmul inputs (f32 accumulation) + approx reciprocal => loose atol.
    max_err = float(jnp.max(jnp.abs(out - ref)))
    assert max_err < 3e-2, f"mismatch vs JAX reference: max|err|={max_err}"

    print("KERNEL_OK")
</pallas_src>

<mosaic_0001>
module attributes {stable_mosaic.version = 11 : i64} {
  func.func @discriminator_kernel(%arg0: i32, %arg1: memref<256x784xbf16, #tpu.memory_space<vmem>>, %arg2: memref<784x512xbf16, #tpu.memory_space<vmem>>, %arg3: memref<1x512xf32, #tpu.memory_space<vmem>>, %arg4: memref<512x256xbf16, #tpu.memory_space<vmem>>, %arg5: memref<1x256xf32, #tpu.memory_space<vmem>>, %arg6: memref<256x128xbf16, #tpu.memory_space<vmem>>, %arg7: memref<1x128xf32, #tpu.memory_space<vmem>>, %arg8: memref<256x128xf32, #tpu.memory_space<vmem>>) attributes {dimension_semantics = [#tpu.dimension_semantics<parallel>], iteration_bounds = array<i64: 2>, scalar_prefetch = 0 : i64, scratch_operands = 0 : i64, tpu.core_type = #tpu.core_type<tc>, window_params = [{transform_indices = @transform_0, window_bounds = array<i64: 256, 784>}, {pipeline_mode = #tpu.pipeline_mode<synchronous>, transform_indices = @transform_1, window_bounds = array<i64: 784, 512>}, {pipeline_mode = #tpu.pipeline_mode<synchronous>, transform_indices = @transform_2, window_bounds = array<i64: 1, 512>}, {pipeline_mode = #tpu.pipeline_mode<synchronous>, transform_indices = @transform_3, window_bounds = array<i64: 512, 256>}, {pipeline_mode = #tpu.pipeline_mode<synchronous>, transform_indices = @transform_4, window_bounds = array<i64: 1, 256>}, {pipeline_mode = #tpu.pipeline_mode<synchronous>, transform_indices = @transform_5, window_bounds = array<i64: 256, 128>}, {pipeline_mode = #tpu.pipeline_mode<synchronous>, transform_indices = @transform_6, window_bounds = array<i64: 1, 128>}, {transform_indices = @transform_7, window_bounds = array<i64: 256, 128>}]} {
    %c0 = arith.constant 0 : index
    %c0_0 = arith.constant 0 : index
    %0 = vector.load %arg1[%c0, %c0_0] : memref<256x784xbf16, #tpu.memory_space<vmem>>, vector<256x784xbf16>
    %c0_1 = arith.constant 0 : index
    %c0_2 = arith.constant 0 : index
    %1 = vector.load %arg2[%c0_1, %c0_2] : memref<784x512xbf16, #tpu.memory_space<vmem>>, vector<784x512xbf16>
    %cst = arith.constant dense<0.000000e+00> : vector<256x512xf32>
    %2 = tpu.matmul %0, %1, %cst {dimension_numbers = #tpu.dot_dimension_numbers<[1], [0], [0], [1], [0, 0, 1, 1], [], []>} : vector<256x784xbf16>, vector<784x512xbf16>, vector<256x512xf32> -> vector<256x512xf32>
    %c0_3 = arith.constant 0 : index
    %c0_4 = arith.constant 0 : index
    %3 = vector.load %arg3[%c0_3, %c0_4] : memref<1x512xf32, #tpu.memory_space<vmem>>, vector<1x512xf32>
    %4 = vector.broadcast %3 : vector<1x512xf32> to vector<256x512xf32>
    %5 = arith.addf %2, %4 : vector<256x512xf32>
    %cst_5 = arith.constant 0.000000e+00 : f32
    %6 = vector.broadcast %cst_5 : f32 to vector<256x512xf32>
    %7 = arith.cmpf ogt, %5, %6 : vector<256x512xf32>
    %cst_6 = arith.constant 2.000000e-01 : f32
    %8 = vector.broadcast %cst_6 : f32 to vector<256x512xf32>
    %9 = arith.mulf %8, %5 : vector<256x512xf32>
    %10 = arith.select %7, %5, %9 : vector<256x512xi1>, vector<256x512xf32>
    %11 = arith.truncf %10 : vector<256x512xf32> to vector<256x512xbf16>
    %c0_7 = arith.constant 0 : index
    %c0_8 = arith.constant 0 : index
    %12 = vector.load %arg4[%c0_7, %c0_8] : memref<512x256xbf16, #tpu.memory_space<vmem>>, vector<512x256xbf16>
    %cst_9 = arith.constant dense<0.000000e+00> : vector<256x256xf32>
    %13 = tpu.matmul %11, %12, %cst_9 {dimension_numbers = #tpu.dot_dimension_numbers<[1], [0], [0], [1], [0, 0, 1, 1], [], []>} : vector<256x512xbf16>, vector<512x256xbf16>, vector<256x256xf32> -> vector<256x256xf32>
    %c0_10 = arith.constant 0 : index
    %c0_11 = arith.constant 0 : index
    %14 = vector.load %arg5[%c0_10, %c0_11] : memref<1x256xf32, #tpu.memory_space<vmem>>, vector<1x256xf32>
    %15 = vector.broadcast %14 : vector<1x256xf32> to vector<256x256xf32>
    %16 = arith.addf %13, %15 : vector<256x256xf32>
    %cst_12 = arith.constant 0.000000e+00 : f32
    %17 = vector.broadcast %cst_12 : f32 to vector<256x256xf32>
    %18 = arith.cmpf ogt, %16, %17 : vector<256x256xf32>
    %cst_13 = arith.constant 2.000000e-01 : f32
    %19 = vector.broadcast %cst_13 : f32 to vector<256x256xf32>
    %20 = arith.mulf %19, %16 : vector<256x256xf32>
    %21 = arith.select %18, %16, %20 : vector<256x256xi1>, vector<256x256xf32>
    %22 = arith.truncf %21 : vector<256x256xf32> to vector<256x256xbf16>
    %c0_14 = arith.constant 0 : index
    %c0_15 = arith.constant 0 : index
    %23 = vector.load %arg6[%c0_14, %c0_15] : memref<256x128xbf16, #tpu.memory_space<vmem>>, vector<256x128xbf16>
    %cst_16 = arith.constant dense<0.000000e+00> : vector<256x128xf32>
    %24 = tpu.matmul %22, %23, %cst_16 {dimension_numbers = #tpu.dot_dimension_numbers<[1], [0], [0], [1], [0, 0, 1, 1], [], []>} : vector<256x256xbf16>, vector<256x128xbf16>, vector<256x128xf32> -> vector<256x128xf32>
    %c0_17 = arith.constant 0 : index
    %c0_18 = arith.constant 0 : index
    %25 = vector.load %arg7[%c0_17, %c0_18] : memref<1x128xf32, #tpu.memory_space<vmem>>, vector<1x128xf32>
    %26 = vector.broadcast %25 : vector<1x128xf32> to vector<256x128xf32>
    %27 = arith.addf %24, %26 : vector<256x128xf32>
    %cst_19 = arith.constant 0.000000e+00 : f32
    %28 = vector.broadcast %cst_19 : f32 to vector<256x128xf32>
    %29 = arith.subf %28, %27 : vector<256x128xf32>
    %30 = math.exp %29 : vector<256x128xf32>
    %cst_20 = arith.constant 1.000000e+00 : f32
    %31 = vector.broadcast %cst_20 : f32 to vector<256x128xf32>
    %32 = arith.addf %31, %30 : vector<256x128xf32>
    %33 = tpu.reciprocal %32 {approx = true} : vector<256x128xf32> -> vector<256x128xf32>
    %c0_21 = arith.constant 0 : index
    %c0_22 = arith.constant 0 : index
    %34 = vector.load %arg8[%c0_21, %c0_22] : memref<256x128xf32, #tpu.memory_space<vmem>>, vector<256x128xf32>
    tpu.vector_store %arg8[%c0_21, %c0_22], %33 {strides = array<i32>} : memref<256x128xf32, #tpu.memory_space<vmem>>, vector<256x128xf32>,
    return
  }
  func.func @transform_0(%arg0: i32) -> (i32, i32) {
    %c0_i32 = arith.constant 0 : i32
    %c0_i32_0 = arith.constant 0 : i32
    return %arg0, %c0_i32 : i32, i32
  }
  func.func @transform_1(%arg0: i32) -> (i32, i32) {
    %c0_i32 = arith.constant 0 : i32
    %c0_i32_0 = arith.constant 0 : i32
    %c0_i32_1 = arith.constant 0 : i32
    return %c0_i32, %c0_i32_0 : i32, i32
  }
  func.func @transform_2(%arg0: i32) -> (i32, i32) {
    %c0_i32 = arith.constant 0 : i32
    %c0_i32_0 = arith.constant 0 : i32
    %c0_i32_1 = arith.constant 0 : i32
    return %c0_i32, %c0_i32_0 : i32, i32
  }
  func.func @transform_3(%arg0: i32) -> (i32, i32) {
    %c0_i32 = arith.constant 0 : i32
    %c0_i32_0 = arith.constant 0 : i32
    %c0_i32_1 = arith.constant 0 : i32
    return %c0_i32, %c0_i32_0 : i32, i32
  }
  func.func @transform_4(%arg0: i32) -> (i32, i32) {
    %c0_i32 = arith.constant 0 : i32
    %c0_i32_0 = arith.constant 0 : i32
    %c0_i32_1 = arith.constant 0 : i32
    return %c0_i32, %c0_i32_0 : i32, i32
  }
  func.func @transform_5(%arg0: i32) -> (i32, i32) {
    %c0_i32 = arith.constant 0 : i32
    %c0_i32_0 = arith.constant 0 : i32
    %c0_i32_1 = arith.constant 0 : i32
    return %c0_i32, %c0_i32_0 : i32, i32
  }
  func.func @transform_6(%arg0: i32) -> (i32, i32) {
    %c0_i32 = arith.constant 0 : i32
    %c0_i32_0 = arith.constant 0 : i32
    %c0_i32_1 = arith.constant 0 : i32
    return %c0_i32, %c0_i32_0 : i32, i32
  }
  func.func @transform_7(%arg0: i32) -> (i32, i32) {
    %c0_i32 = arith.constant 0 : i32
    %c0_i32_0 = arith.constant 0 : i32
    return %arg0, %c0_i32 : i32, i32
  }
}

</mosaic_0001>

<bundles_post_ra>
// kernel: discriminator_forward.1
= control target key start
LH: loop header
LB: loop body
LE: loop exit
PB: predicated region body
PF: predicated region fallthrough
CT: control target
= control target key end

     0   :  { %s7746_s24 = smov 0   ;;  %s9572_s0 = inlined_call_operand.vmem [shape: bf16[512,784], index: 0, kind: input, shape index: {}]   ;;  %s9573_s1 = inlined_call_operand.vmem [shape: bf16[784,512], index: 1, kind: input, shape index: {}]   ;;  %s9574_s2 = inlined_call_operand.vmem [shape: f32[1,512], index: 2, kind: input, shape index: {}]   ;;  %s9575_s3 = inlined_call_operand.vmem [shape: bf16[512,256], index: 3, kind: input, shape index: {}]   ;;  %s9576_s4 = inlined_call_operand.vmem [shape: f32[1,256], index: 4, kind: input, shape index: {}]   ;;  %s9577_s5 = inlined_call_operand.vmem [shape: bf16[256,128], index: 5, kind: input, shape index: {}]   ;;  %s9578_s6 = inlined_call_operand.vmem [shape: f32[1,128], index: 6, kind: input, shape index: {}]   ;;  %s9579_s7 = inlined_call_operand.vmem [shape: f32[512,128], index: 7, kind: output, shape index: {}]  }
   0x1 LB: > { %s5763_s25 = sadd.s32 4294967295, %s7703_s24   ;;  %p5767_p0 = scmp.ge.s32.totalorder %s7703_s24, 1  ;;  %s7703_s24 = sphi %s7746_s24, %s17_s24  }
   0x2   : > { %p239_p1 = scmp.lt.s32.totalorder %s7703_s24, 3 }
   0x4   : > { %p240_p2 = pnand %p5767_p0, %p239_p1 }
   0x6   : > { %243 = sbr.rel (%p240_p2) target bundleno = 1340 (0x53c), region = 48 }
   0xd   : > { %v6989_v0 = vld [vmem:[%s9573_s1 + $0x4] ss:$16 sps:$4 sm:$0xff]   ;;  %v6991_v1 = vld [vmem:[%s9573_s1] ss:$16 sps:$4 sm:$0xff]   ;;  %s5768_s13 = sshll.u32 %s5763_s25, 5  ;;  %vm2172_vm0 = vcmask 130048  }
   0xe   : > { %2221 = vmatprep.subr.bf16.mxu0 %v6989_v0  ;;  %6307 = vmatprep.subr.bf16.mxu1 %v6989_v0  ;;  %v6992_v2 = vld [vmem:[%s9573_s1 + $0x24] ss:$16 sps:$4 sm:$0xff]   ;;  %v6994_v3 = vld [vmem:[%s9573_s1 + $0x20] ss:$16 sps:$4 sm:$0xff]   ;;  %p273_p3 = scmp.lt.s32.totalorder %s5768_s13, 63 }
   0xf   : > { %2222 = vmatpush1.bf16.msra.mxu0 %v6991_v1  ;;  %6323 = vmatpush1.bf16.msra.mxu1 %v6991_v1  ;;  %v6995_v4 = vld [vmem:[%s9573_s1 + $0x44] ss:$16 sps:$4 sm:$0xff]   ;;  %v6997_v5 = vld [vmem:[%s9573_s1 + $0x40] ss:$16 sps:$4 sm:$0xff]   ;;  %v7048_v36 = vld [vmem:[%s9573_s1 + $0xc] ss:$16 sps:$4 sm:$0xff]  }
  0x10   : > { %2223 = vmatprep.subr.bf16.mxu0 %v6992_v2  ;;  %6308 = vmatprep.subr.bf16.mxu1 %v6992_v2  ;;  %v6998_v6 = vld [vmem:[%s9573_s1 + $0x64] ss:$16 sps:$4 sm:$0xff]   ;;  %v7000_v7 = vld [vmem:[%s9573_s1 + $0x60] ss:$16 sps:$4 sm:$0xff]   ;;  %s9595_s13 = smov (!%p273_p3, %s5768_s13), 63 }
  0x11   : > { %v7001_v8 = vld [vmem:[%s9573_s1 + $0x84] ss:$16 sps:$4 sm:$0xff]   ;;  %v7003_v9 = vld [vmem:[%s9573_s1 + $0x80] ss:$16 sps:$4 sm:$0xff]   ;;  %s6979_s25 = smul.u32 28, %s9595_s13  ;;  %s5771_s20 = sshll.u32 %s9595_s13, 3 }
  0x12   : > { %v7004_v10 = vld [vmem:[%s9573_s1 + $0xa4] ss:$16 sps:$4 sm:$0xff]   ;;  %v7006_v11 = vld [vmem:[%s9573_s1 + $0xa0] ss:$16 sps:$4 sm:$0xff]   ;;  %v7046_v39 = vld [vmem:[%s9573_s1 + $0x8] ss:$16 sps:$4 sm:$0xff]   ;;  %s9511_s23 = scalar_lea.vmem %s9579_s7, %s5771_s20 }
  0x13   : > { %2224 = vmatpush1.bf16.msra.mxu0 %v6994_v3  ;;  %6324 = vmatpush1.bf16.msra.mxu1 %v6994_v3  ;;  %s7796_s9 = scalar_lea.vmem %s9572_s0, %s6979_s25  ;;  %v7007_v12 = vld [vmem:[%s9573_s1 + $0xc4] ss:$16 sps:$4 sm:$0xff]   ;;  %v7009_v14 = vld [vmem:[%s9573_s1 + $0xc0] ss:$16 sps:$4 sm:$0xff]   ;;  %v7054_v41 = vld [vmem:[%s9573_s1 + $0x2c] ss:$16 sps:$4 sm:$0xff]  }
  0x14   : > { %2225 = vmatprep.subr.bf16.mxu0 %v6995_v4  ;;  %6309 = vmatprep.subr.bf16.mxu1 %v6995_v4  ;;  %v7802_v13 = vld [vmem:[%s7796_s9 + $0x4] ss:$28 sps:$4 sm:$0xff]   ;;  %v7886_v42 = vld [vmem:[%s7796_s9 + $0x3c] ss:$28 sps:$4 sm:$0xff]   ;;  %v7920_v54 = vld [vmem:[%s7796_s9 + $0x74] ss:$28 sps:$4 sm:$0xff]  }
  0x15   : > { %v7042_v15 = vld [vmem:[%s7796_s9 + $0x1c4] ss:$28 sps:$4 sm:$0xff]   ;;  %2253 = vmatprep.mubr.bf16.mxu0 %v7802_v13  ;;  %v7057_v43 = vld [vmem:[%s7796_s9 + $0x1fc] ss:$28 sps:$4 sm:$0xff]   ;;  %v7075_v55 = vld [vmem:[%s7796_s9 + $0x234] ss:$28 sps:$4 sm:$0xff]  }
  0x16   : > { %v7010_v16 = vld [vmem:[%s9573_s1 + $0xe4] ss:$16 sps:$4 sm:$0xff]   ;;  %2333 = vmatprep.mubr.bf16.mxu1 %v7042_v15  ;;  %v7012_v17 = vld [vmem:[%s9573_s1 + $0xe0] ss:$16 sps:$4 sm:$0xff]   ;;  %v7052_v45 = vld [vmem:[%s9573_s1 + $0x28] ss:$16 sps:$4 sm:$0xff]  }
  0x17   : > { %2226 = vmatpush1.bf16.msra.mxu0 %v6997_v5  ;;  %6325 = vmatpush1.bf16.msra.mxu1 %v6997_v5  ;;  %v7013_v18 = vld [vmem:[%s9573_s1 + $0x104] ss:$16 sps:$4 sm:$0xff]   ;;  %v7015_v19 = vld [vmem:[%s9573_s1 + $0x100] ss:$16 sps:$4 sm:$0xff]   ;;  %v7066_v48 = vld [vmem:[%s9573_s1 + $0x4c] ss:$16 sps:$4 sm:$0xff]  }
  0x18   : > { %2227 = vmatprep.subr.bf16.mxu0 %v6998_v6  ;;  %6310 = vmatprep.subr.bf16.mxu1 %v6998_v6  ;;  %v7016_v20 = vld [vmem:[%s9573_s1 + $0x124] ss:$16 sps:$4 sm:$0xff]   ;;  %v7018_v21 = vld [vmem:[%s9573_s1 + $0x120] ss:$16 sps:$4 sm:$0xff]   ;;  %v7064_v51 = vld [vmem:[%s9573_s1 + $0x48] ss:$16 sps:$4 sm:$0xff]  }
  0x19   : > { %v7019_v22 = vld [vmem:[%s9573_s1 + $0x144] ss:$16 sps:$4 sm:$0xff]   ;;  %v7021_v23 = vld [vmem:[%s9573_s1 + $0x140] ss:$16 sps:$4 sm:$0xff]   ;;  %v7072_v53 = vld [vmem:[%s9573_s1 + $0x6c] ss:$16 sps:$4 sm:$0xff]  }
  0x1a   : > { %v7022_v24 = vld [vmem:[%s9573_s1 + $0x164] ss:$16 sps:$4 sm:$0xff]   ;;  %v7024_v25 = vld [vmem:[%s9573_s1 + $0x160] ss:$16 sps:$4 sm:$0xff]   ;;  %v7070_v57 = vld [vmem:[%s9573_s1 + $0x68] ss:$16 sps:$4 sm:$0xff]  }
  0x1b   : > { %2228 = vmatpush1.bf16.msra.mxu0 %v7000_v7  ;;  %6326 = vmatpush1.bf16.msra.mxu1 %v7000_v7  ;;  %v7025_v26 = vld [vmem:[%s9573_s1 + $0x184] ss:$16 sps:$4 sm:$0xff]   ;;  %v7027_v27 = vld [vmem:[%s9573_s1 + $0x180] ss:$16 sps:$4 sm:$0xff]   ;;  %v7084_v60 = vld [vmem:[%s9573_s1 + $0x8c] ss:$16 sps:$4 sm:$0xff]  }
  0x1c   : > { %2229 = vmatprep.subr.bf16.mxu0 %v7001_v8  ;;  %6311 = vmatprep.subr.bf16.mxu1 %v7001_v8  ;;  %v7028_v28 = vld [vmem:[%s9573_s1 + $0x1a4] ss:$16 sps:$4 sm:$0xff]   ;;  %v7030_v29 = vld [vmem:[%s9573_s1 + $0x1a0] ss:$16 sps:$4 sm:$0xff]   ;;  %v7082_v63 = vld [vmem:[%s9573_s1 + $0x88] ss:$16 sps:$4 sm:$0xff]  }
  0x1d   : > { %v7031_v30 = vld [vmem:[%s9573_s1 + $0x1c4] ss:$16 sps:$4 sm:$0xff]   ;;  %v7033_v31 = vld [vmem:[%s9573_s1 + $0x1c0] ss:$16 sps:$4 sm:$0xff]   ;;  %v7090_v1 = vld [vmem:[%s9573_s1 + $0xac] ss:$16 sps:$4 sm:$0xff]  }
  0x1e   : > { %v7034_v32 = vld [vmem:[%s9573_s1 + $0x1e4] ss:$16 sps:$4 sm:$0xff]   ;;  %v7036_v33 = vld [vmem:[%s9573_s1 + $0x1e0] ss:$16 sps:$4 sm:$0xff]   ;;  %v7954_v2 = vld [vmem:[%s7796_s9 + $0xac] ss:$28 sps:$4 sm:$0xff]  }
  0x1f   : > { %2230 = vmatpush1.bf16.msra.mxu0 %v7003_v9  ;;  %6327 = vmatpush1.bf16.msra.mxu1 %v7003_v9  ;;  %v7045_v34 = vld [vmem:[%s9573_s1 + $0x204] ss:$16 sps:$4 sm:$0xff]   ;;  %v7867_v35 = vld [vmem:[%s7796_s9] ss:$28 sps:$4 sm:$0xff]   ;;  %v7934_v59 = vld [vmem:[%s7796_s9 + $0x70] ss:$28 sps:$4 sm:$0xff]  }
  0x20   : > { %2231 = vmatprep.subr.bf16.mxu0 %v7004_v10  ;;  %6312 = vmatprep.subr.bf16.mxu1 %v7004_v10  ;;  %v7040_v37 = vld [vmem:[%s7796_s9 + $0x1c0] ss:$28 sps:$4 sm:$0xff]   ;;  %v7051_v40 = vld [vmem:[%s9573_s1 + $0x224] ss:$16 sps:$4 sm:$0xff]   ;;  %v7078_v61 = vld [vmem:[%s7796_s9 + $0x230] ss:$28 sps:$4 sm:$0xff]  }
  0x21   : > { %v7043_v38 = vld [vmem:[%s9573_s1 + $0x200] ss:$16 sps:$4 sm:$0xff]   ;;  %v7063_v46 = vld [vmem:[%s9573_s1 + $0x244] ss:$16 sps:$4 sm:$0xff]   ;;  %v7093_v3 = vld [vmem:[%s7796_s9 + $0x26c] ss:$28 sps:$4 sm:$0xff]  }
  0x22   : > { %v7049_v44 = vld [vmem:[%s9573_s1 + $0x220] ss:$16 sps:$4 sm:$0xff]   ;;  %v7900_v47 = vld [vmem:[%s7796_s9 + $0x38] ss:$28 sps:$4 sm:$0xff]   ;;  %v7968_v7 = vld [vmem:[%s7796_s9 + $0xa8] ss:$28 sps:$4 sm:$0xff]  }
  0x23   : > { %2232 = vmatpush1.bf16.msra.mxu0 %v7006_v11  ;;  %6328 = vmatpush1.bf16.msra.mxu1 %v7006_v11  ;;  %v7060_v49 = vld [vmem:[%s7796_s9 + $0x1f8] ss:$28 sps:$4 sm:$0xff]   ;;  %v7061_v50 = vld [vmem:[%s9573_s1 + $0x240] ss:$16 sps:$4 sm:$0xff]   ;;  %v7102_v8 = vld [vmem:[%s9573_s1 + $0xcc] ss:$16 sps:$4 sm:$0xff]  }
  0x24   : > { %2233 = vmatprep.subr.bf16.mxu0 %v7007_v12  ;;  %6313 = vmatprep.subr.bf16.mxu1 %v7007_v12  ;;  %v7069_v52 = vld [vmem:[%s9573_s1 + $0x264] ss:$16 sps:$4 sm:$0xff]   ;;  %v7067_v56 = vld [vmem:[%s9573_s1 + $0x260] ss:$16 sps:$4 sm:$0xff]   ;;  %v7088_v5 = vld [vmem:[%s9573_s1 + $0xa8] ss:$16 sps:$4 sm:$0xff]  }
  0x25   : > { %v7081_v58 = vld [vmem:[%s9573_s1 + $0x284] ss:$16 sps:$4 sm:$0xff]   ;;  %v7079_v62 = vld [vmem:[%s9573_s1 + $0x280] ss:$16 sps:$4 sm:$0xff]   ;;  %v7100_v11 = vld [vmem:[%s9573_s1 + $0xc8] ss:$16 sps:$4 sm:$0xff]  }
  0x26   : > { %v7087_v0 = vld [vmem:[%s9573_s1 + $0x2a4] ss:$16 sps:$4 sm:$0xff]   ;;  %v7085_v4 = vld [vmem:[%s9573_s1 + $0x2a0] ss:$16 sps:$4 sm:$0xff]  }
  0x27   : > { %2234 = vmatpush1.bf16.msra.mxu0 %v7009_v14  ;;  %6329 = vmatpush1.bf16.msra.mxu1 %v7009_v14  ;;  %v7099_v6 = vld [vmem:[%s9573_s1 + $0x2c4] ss:$16 sps:$4 sm:$0xff]   ;;  %v7097_v10 = vld [vmem:[%s9573_s1 + $0x2c0] ss:$16 sps:$4 sm:$0xff]   ;;  %v7108_v14 = vld [vmem:[%s9573_s1 + $0xec] ss:$16 sps:$4 sm:$0xff]  }
  0x28   : > { %2235 = vmatprep.subr.bf16.mxu0 %v7010_v16  ;;  %6314 = vmatprep.subr.bf16.mxu1 %v7010_v16  ;;  %v7096_v9 = vld [vmem:[%s7796_s9 + $0x268] ss:$28 sps:$4 sm:$0xff]  }
  0x29   : > { %v7105_v12 = vld [vmem:[%s9573_s1 + $0x2e4] ss:$16 sps:$4 sm:$0xff]  }
  0x2a   : > { %v7988_v15 = vld [vmem:[%s7796_s9 + $0xe4] ss:$28 sps:$4 sm:$0xff]  }
  0x2b   : > { %2236 = vmatpush1.bf16.msra.mxu0 %v7012_v17  ;;  %6330 = vmatpush1.bf16.msra.mxu1 %v7012_v17  ;;  %v7111_v16 = vld [vmem:[%s7796_s9 + $0x2a4] ss:$28 sps:$4 sm:$0xff]  }
  0x2c   : > { %2237 = vmatprep.subr.bf16.mxu0 %v7013_v18  ;;  %6315 = vmatprep.subr.bf16.mxu1 %v7013_v18  ;;  %v7103_v17 = vld [vmem:[%s9573_s1 + $0x2e0] ss:$16 sps:$4 sm:$0xff]   ;;  %v7106_v18 = vld [vmem:[%s9573_s1 + $0xe8] ss:$16 sps:$4 sm:$0xff]  }
  0x2f   : > { %2238 = vmatpush1.bf16.msra.mxu0 %v7015_v19  ;;  %6331 = vmatpush1.bf16.msra.mxu1 %v7015_v19  ;;  %v7117_v19 = vld [vmem:[%s9573_s1 + $0x304] ss:$16 sps:$4 sm:$0xff]  }
  0x30   : > { %2239 = vmatprep.subr.bf16.mxu0 %v7016_v20  ;;  %6316 = vmatprep.subr.bf16.mxu1 %v7016_v20  ;;  %v8002_v20 = vld [vmem:[%s7796_s9 + $0xe0] ss:$28 sps:$4 sm:$0xff]  }
  0x33   : > { %2240 = vmatpush1.bf16.msra.mxu0 %v7018_v21  ;;  %6332 = vmatpush1.bf16.msra.mxu1 %v7018_v21  ;;  %v7120_v21 = vld [vmem:[%s9573_s1 + $0x10c] ss:$16 sps:$4 sm:$0xff]  }
  0x34   : > { %2241 = vmatprep.subr.bf16.mxu0 %v7019_v22  ;;  %6317 = vmatprep.subr.bf16.mxu1 %v7019_v22  ;;  %v7114_v22 = vld [vmem:[%s7796_s9 + $0x2a0] ss:$28 sps:$4 sm:$0xff]  }
  0x37   : > { %2242 = vmatpush1.bf16.msra.mxu0 %v7021_v23  ;;  %6333 = vmatpush1.bf16.msra.mxu1 %v7021_v23  ;;  %v7115_v23 = vld [vmem:[%s9573_s1 + $0x300] ss:$16 sps:$4 sm:$0xff]  }
  0x38   : > { %2243 = vmatprep.subr.bf16.mxu0 %v7022_v24  ;;  %6318 = vmatprep.subr.bf16.mxu1 %v7022_v24  ;;  %v7118_v24 = vld [vmem:[%s9573_s1 + $0x108] ss:$16 sps:$4 sm:$0xff]  }
  0x3b   : > { %2244 = vmatpush1.bf16.msra.mxu0 %v7024_v25  ;;  %6334 = vmatpush1.bf16.msra.mxu1 %v7024_v25  ;;  %v7123_v25 = vld [vmem:[%s9573_s1 + $0x324] ss:$16 sps:$4 sm:$0xff]  }
  0x3c   : > { %2245 = vmatprep.subr.bf16.mxu0 %v7025_v26  ;;  %6319 = vmatprep.subr.bf16.mxu1 %v7025_v26  ;;  %v7126_v26 = vld [vmem:[%s9573_s1 + $0x12c] ss:$16 sps:$4 sm:$0xff]  }
  0x3f   : > { %2246 = vmatpush1.bf16.msra.mxu0 %v7027_v27  ;;  %6335 = vmatpush1.bf16.msra.mxu1 %v7027_v27  ;;  %v8022_v27 = vld [vmem:[%s7796_s9 + $0x11c] ss:$28 sps:$4 sm:$0xff]  }
  0x40   : > { %2247 = vmatprep.subr.bf16.mxu0 %v7028_v28  ;;  %6320 = vmatprep.subr.bf16.mxu1 %v7028_v28  ;;  %v7129_v28 = vld [vmem:[%s7796_s9 + $0x2dc] ss:$28 sps:$4 sm:$0xff]  }
  0x43   : > { %2248 = vmatpush1.bf16.msra.mxu0 %v7030_v29  ;;  %6336 = vmatpush1.bf16.msra.mxu1 %v7030_v29  ;;  %v7121_v29 = vld [vmem:[%s9573_s1 + $0x320] ss:$16 sps:$4 sm:$0xff]  }
  0x44   : > { %2249 = vmatprep.subr.bf16.mxu0 %v7031_v30  ;;  %6321 = vmatprep.subr.bf16.mxu1 %v7031_v30  ;;  %v7124_v30 = vld [vmem:[%s9573_s1 + $0x128] ss:$16 sps:$4 sm:$0xff]  }
  0x47   : > { %2250 = vmatpush1.bf16.msra.mxu0 %v7033_v31  ;;  %6337 = vmatpush1.bf16.msra.mxu1 %v7033_v31  ;;  %v7135_v31 = vld [vmem:[%s9573_s1 + $0x344] ss:$16 sps:$4 sm:$0xff]  }
  0x48   : > { %2251 = vmatprep.subr.bf16.mxu0 %v7034_v32  ;;  %6322 = vmatprep.subr.bf16.mxu1 %v7034_v32  ;;  %v8036_v32 = vld [vmem:[%s7796_s9 + $0x118] ss:$28 sps:$4 sm:$0xff]  }
  0x4b   : > { %2252 = vmatpush1.bf16.msra.mxu0 %v7036_v33  ;;  %6338 = vmatpush1.bf16.msra.mxu1 %v7036_v33  ;;  %v7138_v33 = vld [vmem:[%s9573_s1 + $0x14c] ss:$16 sps:$4 sm:$0xff]  }
  0x4c   : > { %2414 = vmatprep.subr.bf16.mxu0 %v7045_v34  ;;  %2993 = vmatprep.subr.bf16.mxu1 %v7048_v36  ;;  %v7132_v34 = vld [vmem:[%s7796_s9 + $0x2d8] ss:$28 sps:$4 sm:$0xff]   ;;  %v7133_v36 = vld [vmem:[%s9573_s1 + $0x340] ss:$16 sps:$4 sm:$0xff]  }
  0x4e   : > { %2254 = vmatmul.mubr.bf16.vlgmr.msra.gmra.mrb[0].mxu0 %v7867_v35  ;;  %2334 = vmatmul.mubr.bf16.vlgmr.msra.gmra.mrb[0].mxu1 %v7040_v37  ;;  %v7136_v37 = vld [vmem:[%s9573_s1 + $0x148] ss:$16 sps:$4 sm:$0xff]  }
  0x4f   : > { %2415 = vmatpush1.bf16.msra.mxu0 %v7043_v38  ;;  %2994 = vmatpush1.bf16.msra.mxu1 %v7046_v39  ;;  %v7141_v38 = vld [vmem:[%s9573_s1 + $0x364] ss:$16 sps:$4 sm:$0xff]   ;;  %v7144_v39 = vld [vmem:[%s9573_s1 + $0x16c] ss:$16 sps:$4 sm:$0xff]  }
  0x50   : > { %2416 = vmatprep.subr.bf16.mxu0 %v7051_v40  ;;  %2995 = vmatprep.subr.bf16.mxu1 %v7054_v41  ;;  %v8056_v40 = vld [vmem:[%s7796_s9 + $0x154] ss:$28 sps:$4 sm:$0xff]  }
  0x51   : > { %2263 = vmatprep.mubr.bf16.mxu0 %v7886_v42  ;;  %2343 = vmatprep.mubr.bf16.mxu1 %v7057_v43  ;;  %v7147_v41 = vld [vmem:[%s7796_s9 + $0x314] ss:$28 sps:$4 sm:$0xff]  }
  0x52   : > { %v7139_v43 = vld [vmem:[%s9573_s1 + $0x360] ss:$16 sps:$4 sm:$0xff]  }
  0x53   : > { %2417 = vmatpush1.bf16.msra.mxu0 %v7049_v44  ;;  %2996 = vmatpush1.bf16.msra.mxu1 %v7052_v45  ;;  %v7142_v44 = vld [vmem:[%s9573_s1 + $0x168] ss:$16 sps:$4 sm:$0xff]   ;;  %v7153_v45 = vld [vmem:[%s9573_s1 + $0x384] ss:$16 sps:$4 sm:$0xff]  }
  0x54   : > { %2418 = vmatprep.subr.bf16.mxu0 %v7063_v46  ;;  %2997 = vmatprep.subr.bf16.mxu1 %v7066_v48  ;;  %v8070_v46 = vld [vmem:[%s7796_s9 + $0x150] ss:$28 sps:$4 sm:$0xff]  }
  0x55   : > { %v7156_v48 = vld [vmem:[%s9573_s1 + $0x18c] ss:$16 sps:$4 sm:$0xff]  }
  0x56   : > { %2264 = vmatmul.mubr.bf16.gmra.mrb[4].mxu0 %v7900_v47  ;;  %2344 = vmatmul.mubr.bf16.gmra.mrb[4].mxu1 %v7060_v49  ;;  %v7150_v49 = vld [vmem:[%s7796_s9 + $0x310] ss:$28 sps:$4 sm:$0xff]  }
  0x57   : > { %2419 = vmatpush1.bf16.msra.mxu0 %v7061_v50  ;;  %2998 = vmatpush1.bf16.msra.mxu1 %v7064_v51  ;;  %v7151_v50 = vld [vmem:[%s9573_s1 + $0x380] ss:$16 sps:$4 sm:$0xff]   ;;  %v7154_v51 = vld [vmem:[%s9573_s1 + $0x188] ss:$16 sps:$4 sm:$0xff]  }
  0x58   : > { %2420 = vmatprep.subr.bf16.mxu0 %v7069_v52  ;;  %2999 = vmatprep.subr.bf16.mxu1 %v7072_v53  ;;  %v7159_v52 = vld [vmem:[%s9573_s1 + $0x3a4] ss:$16 sps:$4 sm:$0xff]   ;;  %v7162_v53 = vld [vmem:[%s9573_s1 + $0x1ac] ss:$16 sps:$4 sm:$0xff]  }
  0x59   : > { %2273 = vmatprep.mubr.bf16.mxu0 %v7920_v54  ;;  %2353 = vmatprep.mubr.bf16.mxu1 %v7075_v55  ;;  %v8090_v55 = vld [vmem:[%s7796_s9 + $0x18c] ss:$28 sps:$4 sm:$0xff]  }
  0x5b   : > { %2421 = vmatpush1.bf16.msra.mxu0 %v7067_v56  ;;  %3000 = vmatpush1.bf16.msra.mxu1 %v7070_v57  ;;  %v8093_v56 = vld [vmem:[%s7796_s9 + $0x34c] ss:$28 sps:$4 sm:$0xff]   ;;  %v7157_v57 = vld [vmem:[%s9573_s1 + $0x3a0] ss:$16 sps:$4 sm:$0xff]  }
  0x5c   : > { %2422 = vmatprep.subr.bf16.mxu0 %v7081_v58  ;;  %3001 = vmatprep.subr.bf16.mxu1 %v7084_v60  ;;  %v7160_v58 = vld [vmem:[%s9573_s1 + $0x1a8] ss:$16 sps:$4 sm:$0xff]   ;;  %v7171_v60 = vld [vmem:[%s9573_s1 + $0x3c4] ss:$16 sps:$4 sm:$0xff]  }
  0x5e   : > { %2274 = vmatmul.mubr.bf16.gmra.mrb[8].mxu0 %v7934_v59  ;;  %2354 = vmatmul.mubr.bf16.gmra.mrb[8].mxu1 %v7078_v61  ;;  %v7174_v61 = vld [vmem:[%s9573_s1 + $0x1cc] ss:$16 sps:$4 sm:$0xff]  }
  0x5f   : > { %2423 = vmatpush1.bf16.msra.mxu0 %v7079_v62  ;;  %3002 = vmatpush1.bf16.msra.mxu1 %v7082_v63  ;;  %v8111_v62 = vld [vmem:[%s7796_s9 + $0x188] ss:$28 sps:$4 sm:$0xff]  }
  0x60   : > { %2424 = vmatprep.subr.bf16.mxu0 %v7087_v0  ;;  %3003 = vmatprep.subr.bf16.mxu1 %v7090_v1  ;;  %v8114_v63 = vld [vmem:[%s7796_s9 + $0x348] ss:$28 sps:$4 sm:$0xff]   ;;  %v7169_v0 = vld [vmem:[%s9573_s1 + $0x3c0] ss:$16 sps:$4 sm:$0xff]  }
  0x61   : > { %2283 = vmatprep.mubr.bf16.mxu0 %v7954_v2  ;;  %2363 = vmatprep.mubr.bf16.mxu1 %v7093_v3  ;;  %v7172_v1 = vld [vmem:[%s9573_s1 + $0x1c8] ss:$16 sps:$4 sm:$0xff]   ;;  %v7177_v3 = vld [vmem:[%s9573_s1 + $0x3e4] ss:$16 sps:$4 sm:$0xff]  }
  0x63   : > { %2425 = vmatpush1.bf16.msra.mxu0 %v7085_v4  ;;  %3004 = vmatpush1.bf16.msra.mxu1 %v7088_v5  ;;  %v7180_v4 = vld [vmem:[%s9573_s1 + $0x1ec] ss:$16 sps:$4 sm:$0xff]  }
  0x64   : > { %2426 = vmatprep.subr.bf16.mxu0 %v7099_v6  ;;  %3005 = vmatprep.subr.bf16.mxu1 %v7102_v8  ;;  %v8129_v5 = vld [vmem:[%s7796_s9 + $0xc] ss:$28 sps:$4 sm:$0xff]   ;;  %v7175_v6 = vld [vmem:[%s9573_s1 + $0x3e0] ss:$16 sps:$4 sm:$0xff]  }
  0x65   : > { %v7178_v8 = vld [vmem:[%s9573_s1 + $0x1e8] ss:$16 sps:$4 sm:$0xff]  }
  0x66   : > { %2284 = vmatmul.mubr.bf16.gmra.mrb[12].mxu0 %v7968_v7  ;;  %2364 = vmatmul.mubr.bf16.gmra.mrb[12].mxu1 %v7096_v9  ;;  %v7186_v9 = vld [vmem:[%s9573_s1 + $0x404] ss:$16 sps:$4 sm:$0xff]  }
  0x67   : > { %2427 = vmatpush1.bf16.msra.mxu0 %v7097_v10  ;;  %3006 = vmatpush1.bf16.msra.mxu1 %v7100_v11  ;;  %v7189_v10 = vld [vmem:[%s9573_s1 + $0x20c] ss:$16 sps:$4 sm:$0xff]   ;;  %v8148_v11 = vld [vmem:[%s7796_s9 + $0x8] ss:$28 sps:$4 sm:$0xff]  }
  0x68   : > { %2428 = vmatprep.subr.bf16.mxu0 %v7105_v12  ;;  %3007 = vmatprep.subr.bf16.mxu1 %v7108_v14  ;;  %v7184_v12 = vld [vmem:[%s9573_s1 + $0x400] ss:$16 sps:$4 sm:$0xff]   ;;  %v7187_v14 = vld [vmem:[%s9573_s1 + $0x208] ss:$16 sps:$4 sm:$0xff]  }
  0x69   : > { %2293 = vmatprep.mubr.bf16.mxu0 %v7988_v15  ;;  %2373 = vmatprep.mubr.bf16.mxu1 %v7111_v16  ;;  %v8157_v16 = vld [vmem:[%s7796_s9 + $0x44] ss:$28 sps:$4 sm:$0xff]  }
  0x6b   : > { %2429 = vmatpush1.bf16.msra.mxu0 %v7103_v17  ;;  %3008 = vmatpush1.bf16.msra.mxu1 %v7106_v18  ;;  %v7198_v17 = vld [vmem:[%s9573_s1 + $0x22c] ss:$16 sps:$4 sm:$0xff]   ;;  %v7193_v18 = vld [vmem:[%s9573_s1 + $0x420] ss:$16 sps:$4 sm:$0xff]  }
  0x6c   : > { %2430 = vmatprep.subr.bf16.mxu0 %v7117_v19  ;;  %3009 = vmatprep.subr.bf16.mxu1 %v7120_v21  ;;  %v7196_v19 = vld [vmem:[%s9573_s1 + $0x228] ss:$16 sps:$4 sm:$0xff]   ;;  %v7204_v21 = vld [vmem:[%s9573_s1 + $0x444] ss:$16 sps:$4 sm:$0xff]  }
  0x6e   : > { %2294 = vmatmul.mubr.bf16.gmra.mrb[16].mxu0 %v8002_v20  ;;  %2374 = vmatmul.mubr.bf16.gmra.mrb[16].mxu1 %v7114_v22  ;;  %v8182_v22 = vld [vmem:[%s7796_s9 + $0x40] ss:$28 sps:$4 sm:$0xff]  }
  0x6f   : > { %2431 = vmatpush1.bf16.msra.mxu0 %v7115_v23  ;;  %3010 = vmatpush1.bf16.msra.mxu1 %v7118_v24  ;;  %v8185_v23 = vld [vmem:[%s7796_s9 + $0x7c] ss:$28 sps:$4 sm:$0xff]   ;;  %v7202_v24 = vld [vmem:[%s9573_s1 + $0x440] ss:$16 sps:$4 sm:$0xff]  }
  0x70   : > { %2432 = vmatprep.subr.bf16.mxu0 %v7123_v25  ;;  %3011 = vmatprep.subr.bf16.mxu1 %v7126_v26  ;;  %v7213_v25 = vld [vmem:[%s9573_s1 + $0x464] ss:$16 sps:$4 sm:$0xff]   ;;  %v7216_v26 = vld [vmem:[%s9573_s1 + $0x26c] ss:$16 sps:$4 sm:$0xff]  }
  0x71   : > { %2303 = vmatprep.mubr.bf16.mxu0 %v8022_v27  ;;  %2383 = vmatprep.mubr.bf16.mxu1 %v7129_v28  ;;  %v7211_v28 = vld [vmem:[%s9573_s1 + $0x460] ss:$16 sps:$4 sm:$0xff]  }
  0x73   : > { %2433 = vmatpush1.bf16.msra.mxu0 %v7121_v29  ;;  %3012 = vmatpush1.bf16.msra.mxu1 %v7124_v30  ;;  %v7214_v29 = vld [vmem:[%s9573_s1 + $0x268] ss:$16 sps:$4 sm:$0xff]   ;;  %v7222_v30 = vld [vmem:[%s9573_s1 + $0x484] ss:$16 sps:$4 sm:$0xff]  }
  0x74   : > { %2434 = vmatprep.subr.bf16.mxu0 %v7135_v31  ;;  %3013 = vmatprep.subr.bf16.mxu1 %v7138_v33  ;;  %v8219_v31 = vld [vmem:[%s7796_s9 + $0xb4] ss:$28 sps:$4 sm:$0xff]  }
  0x75   : > { %v7220_v33 = vld [vmem:[%s9573_s1 + $0x480] ss:$16 sps:$4 sm:$0xff]  }
  0x76   : > { %2304 = vmatmul.mubr.bf16.gmra.mrb[20].mxu0 %v8036_v32  ;;  %2384 = vmatmul.mubr.bf16.gmra.mrb[20].mxu1 %v7132_v34  ;;  %v7223_v34 = vld [vmem:[%s9573_s1 + $0x288] ss:$16 sps:$4 sm:$0xff]  }
  0x77   : > { %2435 = vmatpush1.bf16.msra.mxu0 %v7133_v36  ;;  %3014 = vmatpush1.bf16.msra.mxu1 %v7136_v37  ;;  %v7231_v36 = vld [vmem:[%s9573_s1 + $0x4a4] ss:$16 sps:$4 sm:$0xff]   ;;  %v7234_v37 = vld [vmem:[%s9573_s1 + $0x2ac] ss:$16 sps:$4 sm:$0xff]  }
  0x78   : > { %2436 = vmatprep.subr.bf16.mxu0 %v7141_v38  ;;  %3015 = vmatprep.subr.bf16.mxu1 %v7144_v39  ;;  %v7229_v38 = vld [vmem:[%s9573_s1 + $0x4a0] ss:$16 sps:$4 sm:$0xff]   ;;  %v7232_v39 = vld [vmem:[%s9573_s1 + $0x2a8] ss:$16 sps:$4 sm:$0xff]  }
  0x79   : > { %2313 = vmatprep.mubr.bf16.mxu0 %v8056_v40  ;;  %2393 = vmatprep.mubr.bf16.mxu1 %v7147_v41  ;;  %v7240_v41 = vld [vmem:[%s9573_s1 + $0x4c4] ss:$16 sps:$4 sm:$0xff]  }
  0x7b   : > { %2437 = vmatpush1.bf16.msra.mxu0 %v7139_v43  ;;  %3016 = vmatpush1.bf16.msra.mxu1 %v7142_v44  ;;  %v8253_v43 = vld [vmem:[%s7796_s9 + $0xec] ss:$28 sps:$4 sm:$0xff]   ;;  %v7238_v44 = vld [vmem:[%s9573_s1 + $0x4c0] ss:$16 sps:$4 sm:$0xff]  }
  0x7c   : > { %2438 = vmatprep.subr.bf16.mxu0 %v7153_v45  ;;  %3017 = vmatprep.subr.bf16.mxu1 %v7156_v48  ;;  %v7241_v45 = vld [vmem:[%s9573_s1 + $0x2c8] ss:$16 sps:$4 sm:$0xff]   ;;  %v7249_v48 = vld [vmem:[%s9573_s1 + $0x4e4] ss:$16 sps:$4 sm:$0xff]  }
  0x7e   : > { %2314 = vmatmul.mubr.bf16.gmra.mrb[24].mxu0 %v8070_v46  ;;  %2394 = vmatmul.mubr.bf16.gmra.mrb[24].mxu1 %v7150_v49  ;;  %v7252_v49 = vld [vmem:[%s9573_s1 + $0x2ec] ss:$16 sps:$4 sm:$0xff]  }
  0x7f   : > { %2439 = vmatpush1.bf16.msra.mxu0 %v7151_v50  ;;  %3018 = vmatpush1.bf16.msra.mxu1 %v7154_v51  ;;  %v7247_v50 = vld [vmem:[%s9573_s1 + $0x4e0] ss:$16 sps:$4 sm:$0xff]   ;;  %v7250_v51 = vld [vmem:[%s9573_s1 + $0x2e8] ss:$16 sps:$4 sm:$0xff]  }
  0x80   : > { %2440 = vmatprep.subr.bf16.mxu0 %v7159_v52  ;;  %3019 = vmatprep.subr.bf16.mxu1 %v7162_v53  ;;  %v7258_v52 = vld [vmem:[%s9573_s1 + $0x504] ss:$16 sps:$4 sm:$0xff]  }
  0x81   : > { %2323 = vmatprep.mubr.bf16.mxu0 %v8090_v55  ;;  %2403 = vmatprep.mubr.bf16.mxu1 %v8093_v56  ;;  %v8287_v53 = vld [vmem:[%s7796_s9 + $0x124] ss:$28 sps:$4 sm:$0xff]  }
  0x83   : > { %2441 = vmatpush1.bf16.msra.mxu0 %v7157_v57  ;;  %3020 = vmatpush1.bf16.msra.mxu1 %v7160_v58  ;;  %v7256_v57 = vld [vmem:[%s9573_s1 + $0x500] ss:$16 sps:$4 sm:$0xff]   ;;  %v7259_v58 = vld [vmem:[%s9573_s1 + $0x308] ss:$16 sps:$4 sm:$0xff]  }
  0x84   : > { %2442 = vmatprep.subr.bf16.mxu0 %v7171_v60  ;;  %3021 = vmatprep.subr.bf16.mxu1 %v7174_v61  ;;  %v7267_v60 = vld [vmem:[%s9573_s1 + $0x524] ss:$16 sps:$4 sm:$0xff]   ;;  %v7270_v61 = vld [vmem:[%s9573_s1 + $0x32c] ss:$16 sps:$4 sm:$0xff]  }
  0x86   : > { %2324 = vmatmul.mubr.bf16.gmra.mrb[28].mxu0 %v8111_v62  ;;  %2404 = vmatmul.mubr.bf16.gmra.mrb[28].mxu1 %v8114_v63 }
  0x87   : > { %2443 = vmatpush1.bf16.msra.mxu0 %v7169_v0  ;;  %3022 = vmatpush1.bf16.msra.mxu1 %v7172_v1  ;;  %v7265_v0 = vld [vmem:[%s9573_s1 + $0x520] ss:$16 sps:$4 sm:$0xff]   ;;  %v7268_v1 = vld [vmem:[%s9573_s1 + $0x328] ss:$16 sps:$4 sm:$0xff]  }
  0x88   : > { %2444 = vmatprep.subr.bf16.mxu0 %v7177_v3  ;;  %3023 = vmatprep.subr.bf16.mxu1 %v7180_v4  ;;  %v7276_v3 = vld [vmem:[%s9573_s1 + $0x544] ss:$16 sps:$4 sm:$0xff]   ;;  %v8315_v4 = vld [vmem:[%s7796_s9 + $0x120] ss:$28 sps:$4 sm:$0xff]  }
  0x89   : > { %2446 = vmatprep.mubr.bf16.mxu0 %v8129_v5  ;;  %3025 = vmatprep.mubr.bf16.mxu1 %v7802_v13  ;;  %v7195_v13 = vld [vmem:[%s9573_s1 + $0x424] ss:$16 sps:$4 sm:$0xff]  }
  0x8b   : > { %2445 = vmatpush1.bf16.msra.mxu0 %v7175_v6  ;;  %3024 = vmatpush1.bf16.msra.mxu1 %v7178_v8  ;;  %v8321_v6 = vld [vmem:[%s7796_s9 + $0x15c] ss:$28 sps:$4 sm:$0xff]  }
  0x8c   : > { %2607 = vmatprep.subr.bf16.mxu0 %v7186_v9  ;;  %3186 = vmatprep.subr.bf16.mxu1 %v7189_v10  ;;  %v7277_v8 = vld [vmem:[%s9573_s1 + $0x348] ss:$16 sps:$4 sm:$0xff]   ;;  %v7285_v9 = vld [vmem:[%s9573_s1 + $0x564] ss:$16 sps:$4 sm:$0xff]   ;;  %v7288_v10 = vld [vmem:[%s9573_s1 + $0x36c] ss:$16 sps:$4 sm:$0xff]  }
  0x8e   : > { %2447 = vmatmul.mubr.bf16.vlgmr.msra.gmra.mrb[0].mxu0 %v8148_v11  ;;  %3026 = vmatmul.mubr.bf16.vlgmr.msra.gmra.mrb[32].mxu1 %v7867_v35  ;;  %v7207_v35 = vld [vmem:[%s9573_s1 + $0x24c] ss:$16 sps:$4 sm:$0xff]  }
  0x8f   : > { %2608 = vmatpush1.bf16.msra.mxu0 %v7184_v12  ;;  %3187 = vmatpush1.bf16.msra.mxu1 %v7187_v14  ;;  %v7283_v12 = vld [vmem:[%s9573_s1 + $0x560] ss:$16 sps:$4 sm:$0xff]   ;;  %v7286_v14 = vld [vmem:[%s9573_s1 + $0x368] ss:$16 sps:$4 sm:$0xff]  }
  0x90   : > { %2456 = vmatprep.mubr.bf16.mxu0 %v8157_v16  ;;  %3035 = vmatprep.mubr.bf16.mxu1 %v7886_v42  ;;  %v7205_v42 = vld [vmem:[%s9573_s1 + $0x248] ss:$16 sps:$4 sm:$0xff]  }
  0x91   : > { %2609 = vmatprep.subr.bf16.mxu0 %v7195_v13  ;;  %3188 = vmatprep.subr.bf16.mxu1 %v7198_v17  ;;  %v7294_v13 = vld [vmem:[%s9573_s1 + $0x584] ss:$16 sps:$4 sm:$0xff]  }
  0x92   : > { %v8352_v17 = vld [vmem:[%s7796_s9 + $0x158] ss:$28 sps:$4 sm:$0xff]  }
  0x93   : > { %2610 = vmatpush1.bf16.msra.mxu0 %v7193_v18  ;;  %3189 = vmatpush1.bf16.msra.mxu1 %v7196_v19  ;;  %v8355_v18 = vld [vmem:[%s7796_s9 + $0x194] ss:$28 sps:$4 sm:$0xff]   ;;  %v7295_v19 = vld [vmem:[%s9573_s1 + $0x388] ss:$16 sps:$4 sm:$0xff]  }
  0x94   : > { %2611 = vmatprep.subr.bf16.mxu0 %v7204_v21  ;;  %3190 = vmatprep.subr.bf16.mxu1 %v7207_v35  ;;  %v7303_v21 = vld [vmem:[%s9573_s1 + $0x5a4] ss:$16 sps:$4 sm:$0xff]   ;;  %v7306_v35 = vld [vmem:[%s9573_s1 + $0x3ac] ss:$16 sps:$4 sm:$0xff]  }
  0x96   : > { %2457 = vmatmul.mubr.bf16.gmra.mrb[4].mxu0 %v8182_v22  ;;  %3036 = vmatmul.mubr.bf16.gmra.mrb[36].mxu1 %v7900_v47  ;;  %v7225_v47 = vld [vmem:[%s9573_s1 + $0x28c] ss:$16 sps:$4 sm:$0xff]  }
  0x97   : > { %2466 = vmatprep.mubr.bf16.mxu0 %v8185_v23  ;;  %3045 = vmatprep.mubr.bf16.mxu1 %v7920_v54  ;;  %v8216_v54 = vld [vmem:[%s7796_s9 + $0x78] ss:$28 sps:$4 sm:$0xff]  }
  0x98   : > { %2612 = vmatpush1.bf16.msra.mxu0 %v7202_v24  ;;  %3191 = vmatpush1.bf16.msra.mxu1 %v7205_v42  ;;  %v7301_v24 = vld [vmem:[%s9573_s1 + $0x5a0] ss:$16 sps:$4 sm:$0xff]   ;;  %v7304_v42 = vld [vmem:[%s9573_s1 + $0x3a8] ss:$16 sps:$4 sm:$0xff]  }
  0x99   : > { %2613 = vmatprep.subr.bf16.mxu0 %v7213_v25  ;;  %3192 = vmatprep.subr.bf16.mxu1 %v7216_v26  ;;  %v7312_v25 = vld [vmem:[%s9573_s1 + $0x5c4] ss:$16 sps:$4 sm:$0xff]   ;;  %v8386_v26 = vld [vmem:[%s7796_s9 + $0x190] ss:$28 sps:$4 sm:$0xff]  }
  0x9c   : > { %2614 = vmatpush1.bf16.msra.mxu0 %v7211_v28  ;;  %3193 = vmatpush1.bf16.msra.mxu1 %v7214_v29  ;;  %v8389_v28 = vld [vmem:[%s7796_s9 + $0x1cc] ss:$28 sps:$4 sm:$0xff]  }
  0x9d   : > { %2615 = vmatprep.subr.bf16.mxu0 %v7222_v30  ;;  %3194 = vmatprep.subr.bf16.mxu1 %v7225_v47  ;;  %v7313_v29 = vld [vmem:[%s9573_s1 + $0x3c8] ss:$16 sps:$4 sm:$0xff]   ;;  %v7321_v30 = vld [vmem:[%s9573_s1 + $0x5e4] ss:$16 sps:$4 sm:$0xff]   ;;  %v7324_v47 = vld [vmem:[%s9573_s1 + $0x3ec] ss:$16 sps:$4 sm:$0xff]  }
  0x9e   : > { %2467 = vmatmul.mubr.bf16.gmra.mrb[8].mxu0 %v8216_v54  ;;  %3046 = vmatmul.mubr.bf16.gmra.mrb[40].mxu1 %v7934_v59  ;;  %v7243_v59 = vld [vmem:[%s9573_s1 + $0x2cc] ss:$16 sps:$4 sm:$0xff]  }
  0x9f   : > { %2476 = vmatprep.mubr.bf16.mxu0 %v8219_v31  ;;  %3055 = vmatprep.mubr.bf16.mxu1 %v7954_v2  ;;  %v8250_v2 = vld [vmem:[%s7796_s9 + $0xb0] ss:$28 sps:$4 sm:$0xff]  }
  0xa0   : > { %2616 = vmatpush1.bf16.msra.mxu0 %v7220_v33  ;;  %3195 = vmatpush1.bf16.msra.mxu1 %v7223_v34  ;;  %v7319_v33 = vld [vmem:[%s9573_s1 + $0x5e0] ss:$16 sps:$4 sm:$0xff]   ;;  %v7322_v34 = vld [vmem:[%s9573_s1 + $0x3e8] ss:$16 sps:$4 sm:$0xff]  }
  0xa1   : > { %2617 = vmatprep.subr.bf16.mxu0 %v7231_v36  ;;  %3196 = vmatprep.subr.bf16.mxu1 %v7234_v37  ;;  %v7683_v36 = vld [vmem:[%s7796_s9 + $0x1c4] ss:$28 sps:$4 sm:$0xff]  }
  0xa2   : > { %v7330_v37 = vld [vmem:[%s9573_s1 + $0x604] ss:$16 sps:$4 sm:$0xff]  }
  0xa4   : > { %2618 = vmatpush1.bf16.msra.mxu0 %v7229_v38  ;;  %3197 = vmatpush1.bf16.msra.mxu1 %v7232_v39  ;;  %v8420_v38 = vld [vmem:[%s7796_s9 + $0x1c8] ss:$28 sps:$4 sm:$0xff]  }
  0xa5   : > { %2619 = vmatprep.subr.bf16.mxu0 %v7240_v41  ;;  %3198 = vmatprep.subr.bf16.mxu1 %v7243_v59  ;;  %v8423_v39 = vld [vmem:[%s7796_s9 + $0x204] ss:$28 sps:$4 sm:$0xff]   ;;  %v7685_v59 = vld [vmem:[%s7796_s9 + $0x1fc] ss:$28 sps:$4 sm:$0xff]  }
  0xa6   : > { %2477 = vmatmul.mubr.bf16.gmra.mrb[12].mxu0 %v8250_v2  ;;  %3056 = vmatmul.mubr.bf16.gmra.mrb[44].mxu1 %v7968_v7  ;;  %v7261_v7 = vld [vmem:[%s9573_s1 + $0x30c] ss:$16 sps:$4 sm:$0xff]  }
  0xa7   : > { %2486 = vmatprep.mubr.bf16.mxu0 %v8253_v43  ;;  %3065 = vmatprep.mubr.bf16.mxu1 %v7988_v15  ;;  %v8284_v15 = vld [vmem:[%s7796_s9 + $0xe8] ss:$28 sps:$4 sm:$0xff]   ;;  %v7684_v41 = vld [vmem:[%s7796_s9 + $0x1c0] ss:$28 sps:$4 sm:$0xff]  }
  0xa8   : > { %2620 = vmatpush1.bf16.msra.mxu0 %v7238_v44  ;;  %3199 = vmatpush1.bf16.msra.mxu1 %v7241_v45  ;;  %v8430_v44 = vld [vmem:[%s7796_s9 + $0x200] ss:$28 sps:$4 sm:$0xff]  }
  0xa9   : > { %2621 = vmatprep.subr.bf16.mxu0 %v7249_v48  ;;  %3200 = vmatprep.subr.bf16.mxu1 %v7252_v49  ;;  %v8433_v45 = vld [vmem:[%s7796_s9 + $0x23c] ss:$28 sps:$4 sm:$0xff]   ;;  %v7687_v49 = vld [vmem:[%s7796_s9 + $0x234] ss:$28 sps:$4 sm:$0xff]  }
  0xaa   : > { %v7686_v48 = vld [vmem:[%s7796_s9 + $0x1f8] ss:$28 sps:$4 sm:$0xff]  }
  0xac   : > { %2622 = vmatpush1.bf16.msra.mxu0 %v7247_v50  ;;  %3201 = vmatpush1.bf16.msra.mxu1 %v7250_v51  ;;  %v8440_v50 = vld [vmem:[%s7796_s9 + $0x238] ss:$28 sps:$4 sm:$0xff]  }
  0xad   : > { %2623 = vmatprep.subr.bf16.mxu0 %v7258_v52  ;;  %3202 = vmatprep.subr.bf16.mxu1 %v7261_v7  ;;  %v8443_v51 = vld [vmem:[%s7796_s9 + $0x274] ss:$28 sps:$4 sm:$0xff]   ;;  %v7689_v7 = vld [vmem:[%s7796_s9 + $0x26c] ss:$28 sps:$4 sm:$0xff]  }
  0xae   : > { %2487 = vmatmul.mubr.bf16.gmra.mrb[16].mxu0 %v8284_v15  ;;  %3066 = vmatmul.mubr.bf16.gmra.mrb[48].mxu1 %v8002_v20  ;;  %v7279_v20 = vld [vmem:[%s9573_s1 + $0x34c] ss:$16 sps:$4 sm:$0xff]  }
  0xaf   : > { %2496 = vmatprep.mubr.bf16.mxu0 %v8287_v53  ;;  %3075 = vmatprep.mubr.bf16.mxu1 %v8022_v27  ;;  %v7274_v27 = vld [vmem:[%s9573_s1 + $0x540] ss:$16 sps:$4 sm:$0xff]  }
  0xb0   : > { %2624 = vmatpush1.bf16.msra.mxu0 %v7256_v57  ;;  %3203 = vmatpush1.bf16.msra.mxu1 %v7259_v58  ;;  %v7688_v52 = vld [vmem:[%s7796_s9 + $0x230] ss:$28 sps:$4 sm:$0xff]  }
  0xb1   : > { %2625 = vmatprep.subr.bf16.mxu0 %v7267_v60  ;;  %3204 = vmatprep.subr.bf16.mxu1 %v7270_v61  ;;  %v8450_v57 = vld [vmem:[%s7796_s9 + $0x270] ss:$28 sps:$4 sm:$0xff]   ;;  %v7690_v60 = vld [vmem:[%s7796_s9 + $0x268] ss:$28 sps:$4 sm:$0xff]  }
  0xb2   : > { %v8453_v58 = vld [vmem:[%s7796_s9 + $0x2ac] ss:$28 sps:$4 sm:$0xff]   ;;  %v7691_v61 = vld [vmem:[%s7796_s9 + $0x2a4] ss:$28 sps:$4 sm:$0xff]  }
  0xb4   : > { %2626 = vmatpush1.bf16.msra.mxu0 %v7265_v0  ;;  %3205 = vmatpush1.bf16.msra.mxu1 %v7268_v1  ;;  %v8460_v0 = vld [vmem:[%s7796_s9 + $0x2a8] ss:$28 sps:$4 sm:$0xff]  }
  0xb5   : > { %2627 = vmatprep.subr.bf16.mxu0 %v7276_v3  ;;  %3206 = vmatprep.subr.bf16.mxu1 %v7279_v20  ;;  %v8463_v1 = vld [vmem:[%s7796_s9 + $0x2e4] ss:$28 sps:$4 sm:$0xff]   ;;  %v7693_v20 = vld [vmem:[%s7796_s9 + $0x2dc] ss:$28 sps:$4 sm:$0xff]  }
  0xb6   : > { %2497 = vmatmul.mubr.bf16.gmra.mrb[20].mxu0 %v8315_v4  ;;  %3076 = vmatmul.mubr.bf16.gmra.mrb[52].mxu1 %v8036_v32  ;;  %v7297_v32 = vld [vmem:[%s9573_s1 + $0x38c] ss:$16 sps:$4 sm:$0xff]  }
  0xb7   : > { %2506 = vmatprep.mubr.bf16.mxu0 %v8321_v6  ;;  %3085 = vmatprep.mubr.bf16.mxu1 %v8056_v40  ;;  %v7292_v40 = vld [vmem:[%s9573_s1 + $0x580] ss:$16 sps:$4 sm:$0xff]  }
  0xb8   : > { %2628 = vmatpush1.bf16.msra.mxu0 %v7274_v27  ;;  %3207 = vmatpush1.bf16.msra.mxu1 %v7277_v8  ;;  %v7692_v3 = vld [vmem:[%s7796_s9 + $0x2a0] ss:$28 sps:$4 sm:$0xff]  }
  0xb9   : > { %2629 = vmatprep.subr.bf16.mxu0 %v7285_v9  ;;  %3208 = vmatprep.subr.bf16.mxu1 %v7288_v10  ;;  %v8470_v27 = vld [vmem:[%s7796_s9 + $0x2e0] ss:$28 sps:$4 sm:$0xff]   ;;  %v7694_v9 = vld [vmem:[%s7796_s9 + $0x2d8] ss:$28 sps:$4 sm:$0xff]  }
  0xba   : > { %v8473_v8 = vld [vmem:[%s7796_s9 + $0x31c] ss:$28 sps:$4 sm:$0xff]   ;;  %v7695_v10 = vld [vmem:[%s7796_s9 + $0x314] ss:$28 sps:$4 sm:$0xff]  }
  0xbc   : > { %2630 = vmatpush1.bf16.msra.mxu0 %v7283_v12  ;;  %3209 = vmatpush1.bf16.msra.mxu1 %v7286_v14  ;;  %v8480_v12 = vld [vmem:[%s7796_s9 + $0x318] ss:$28 sps:$4 sm:$0xff]  }
  0xbd   : > { %2631 = vmatprep.subr.bf16.mxu0 %v7294_v13  ;;  %3210 = vmatprep.subr.bf16.mxu1 %v7297_v32  ;;  %v8483_v14 = vld [vmem:[%s7796_s9 + $0x354] ss:$28 sps:$4 sm:$0xff]  }
  0xbe   : > { %2507 = vmatmul.mubr.bf16.gmra.mrb[24].mxu0 %v8352_v17  ;;  %3086 = vmatmul.mubr.bf16.gmra.mrb[56].mxu1 %v8070_v46  ;;  %v7315_v46 = vld [vmem:[%s9573_s1 + $0x3cc] ss:$16 sps:$4 sm:$0xff]  }
  0xbf   : > { %2516 = vmatprep.mubr.bf16.mxu0 %v8355_v18  ;;  %3095 = vmatprep.mubr.bf16.mxu1 %v8090_v55  ;;  %v7310_v55 = vld [vmem:[%s9573_s1 + $0x5c0] ss:$16 sps:$4 sm:$0xff]  }
  0xc0   : > { %2632 = vmatpush1.bf16.msra.mxu0 %v7292_v40  ;;  %3211 = vmatpush1.bf16.msra.mxu1 %v7295_v19  ;;  %v7696_v13 = vld [vmem:[%s7796_s9 + $0x310] ss:$28 sps:$4 sm:$0xff]  }
  0xc1   : > { %2633 = vmatprep.subr.bf16.mxu0 %v7303_v21  ;;  %3212 = vmatprep.subr.bf16.mxu1 %v7306_v35  ;;  %v8490_v32 = vld [vmem:[%s7796_s9 + $0x350] ss:$28 sps:$4 sm:$0xff]   ;;  %v7331_v21 = vld [vmem:[%s9573_s1 + $0x408] ss:$16 sps:$4 sm:$0xff]  }
  0xc2   : > { %v8493_v40 = vld [vmem:[%s7796_s9 + $0x14] ss:$28 sps:$4 sm:$0xff]   ;;  %v8509_v35 = vld [vmem:[%s7796_s9 + $0x4c] ss:$28 sps:$4 sm:$0xff]  }
  0xc3   : > { %v8500_v19 = vld [vmem:[%s7796_s9 + $0x10] ss:$28 sps:$4 sm:$0xff]  }
  0xc4   : > { %2634 = vmatpush1.bf16.msra.mxu0 %v7301_v24  ;;  %3213 = vmatpush1.bf16.msra.mxu1 %v7304_v42  ;;  %v7345_v24 = vld [vmem:[%s9573_s1 + $0x44c] ss:$16 sps:$4 sm:$0xff]   ;;  %v8525_v42 = vld [vmem:[%s7796_s9 + $0x48] ss:$28 sps:$4 sm:$0xff]  }
  0xc5   : > { %2635 = vmatprep.subr.bf16.mxu0 %v7312_v25  ;;  %3214 = vmatprep.subr.bf16.mxu1 %v7315_v46  ;;  %v7343_v25 = vld [vmem:[%s9573_s1 + $0x448] ss:$16 sps:$4 sm:$0xff]  }
  0xc6   : > { %2517 = vmatmul.mubr.bf16.gmra.mrb[28].mxu0 %v8386_v26  ;;  %3096 = vmatmul.mubr.bf16.gmra.mrb[60].mxu1 %v8111_v62  ;;  %v7333_v62 = vld [vmem:[%s9573_s1 + $0x40c] ss:$16 sps:$4 sm:$0xff]   ;;  %v7349_v46 = vld [vmem:[%s9573_s1 + $0x468] ss:$16 sps:$4 sm:$0xff]  }
  0xc7   : > { %2526 = vmatprep.mubr.bf16.mxu0 %v8389_v28  ;;  %3105 = vmatprep.mubr.bf16.mxu1 %v7683_v36 }
  0xc8   : > { %2636 = vmatpush1.bf16.msra.mxu0 %v7310_v55  ;;  %3215 = vmatpush1.bf16.msra.mxu1 %v7313_v29  ;;  %v7357_v55 = vld [vmem:[%s9573_s1 + $0x48c] ss:$16 sps:$4 sm:$0xff]  }
  0xc9   : > { %2637 = vmatprep.subr.bf16.mxu0 %v7321_v30  ;;  %3216 = vmatprep.subr.bf16.mxu1 %v7324_v47  ;;  %v8547_v29 = vld [vmem:[%s7796_s9 + $0x80] ss:$28 sps:$4 sm:$0xff]   ;;  %v7361_v47 = vld [vmem:[%s9573_s1 + $0x4a8] ss:$16 sps:$4 sm:$0xff]  }
  0xca   : > { %v8550_v30 = vld [vmem:[%s7796_s9 + $0xbc] ss:$28 sps:$4 sm:$0xff]  }
  0xcc   : > { %2638 = vmatpush1.bf16.msra.mxu0 %v7319_v33  ;;  %3217 = vmatpush1.bf16.msra.mxu1 %v7322_v34  ;;  %v7369_v34 = vld [vmem:[%s9573_s1 + $0x4cc] ss:$16 sps:$4 sm:$0xff]  }
  0xcd   : > { %2800 = vmatprep.subr.bf16.mxu0 %v7330_v37  ;;  %3379 = vmatprep.subr.bf16.mxu1 %v7333_v62  ;;  %v8573_v37 = vld [vmem:[%s7796_s9 + $0xb8] ss:$28 sps:$4 sm:$0xff]  }
  0xce   : > { %2527 = vmatmul.mubr.bf16.gmra.mrb[32].mxu0 %v8420_v38  ;;  %3106 = vmatmul.mubr.bf16.gmra.mrb[64].mxu1 %v7684_v41  ;;  %v8578_v62 = vld [vmem:[%s7796_s9 + $0xf4] ss:$28 sps:$4 sm:$0xff]   ;;  %v7367_v41 = vld [vmem:[%s9573_s1 + $0x4c8] ss:$16 sps:$4 sm:$0xff]  }
  0xcf   : > { %2536 = vmatprep.mubr.bf16.mxu0 %v8423_v39  ;;  %3115 = vmatprep.mubr.bf16.mxu1 %v7685_v59  ;;  %v7375_v59 = vld [vmem:[%s9573_s1 + $0x4ec] ss:$16 sps:$4 sm:$0xff]  }
  0xd6   : > { %2537 = vmatmul.mubr.bf16.gmra.mrb[36].mxu0 %v8430_v44  ;;  %3116 = vmatmul.mubr.bf16.gmra.mrb[68].mxu1 %v7686_v48  ;;  %v7373_v48 = vld [vmem:[%s9573_s1 + $0x4e8] ss:$16 sps:$4 sm:$0xff]  }
  0xd7   : > { %2546 = vmatprep.mubr.bf16.mxu0 %v8433_v45  ;;  %3125 = vmatprep.mubr.bf16.mxu1 %v7687_v49 }
  0xde   : > { %2547 = vmatmul.mubr.bf16.gmra.mrb[40].mxu0 %v8440_v50  ;;  %3126 = vmatmul.mubr.bf16.gmra.mrb[72].mxu1 %v7688_v52  ;;  %v7381_v52 = vld [vmem:[%s9573_s1 + $0x50c] ss:$16 sps:$4 sm:$0xff]  }
  0xdf   : > { %2556 = vmatprep.mubr.bf16.mxu0 %v8443_v51  ;;  %3135 = vmatprep.mubr.bf16.mxu1 %v7689_v7 }
  0xe6   : > { %2557 = vmatmul.mubr.bf16.gmra.mrb[44].mxu0 %v8450_v57  ;;  %3136 = vmatmul.mubr.bf16.gmra.mrb[76].mxu1 %v7690_v60  ;;  %v8603_v60 = vld [vmem:[%s7796_s9 + $0xf0] ss:$28 sps:$4 sm:$0xff]  }
  0xe7   : > { %2566 = vmatprep.mubr.bf16.mxu0 %v8453_v58  ;;  %3145 = vmatprep.mubr.bf16.mxu1 %v7691_v61  ;;  %v8608_v61 = vld [vmem:[%s7796_s9 + $0x12c] ss:$28 sps:$4 sm:$0xff]  }
  0xee   : > { %2567 = vmatmul.mubr.bf16.gmra.mrb[48].mxu0 %v8460_v0  ;;  %3146 = vmatmul.mubr.bf16.gmra.mrb[80].mxu1 %v7692_v3  ;;  %v7379_v3 = vld [vmem:[%s9573_s1 + $0x508] ss:$16 sps:$4 sm:$0xff]  }
  0xef   : > { %2576 = vmatprep.mubr.bf16.mxu0 %v8463_v1  ;;  %3155 = vmatprep.mubr.bf16.mxu1 %v7693_v20  ;;  %v7387_v20 = vld [vmem:[%s9573_s1 + $0x52c] ss:$16 sps:$4 sm:$0xff]  }
  0xf6   : > { %2577 = vmatmul.mubr.bf16.gmra.mrb[52].mxu0 %v8470_v27  ;;  %3156 = vmatmul.mubr.bf16.gmra.mrb[84].mxu1 %v7694_v9  ;;  %v7385_v9 = vld [vmem:[%s9573_s1 + $0x528] ss:$16 sps:$4 sm:$0xff]  }
  0xf7   : > { %2586 = vmatprep.mubr.bf16.mxu0 %v8473_v8  ;;  %3165 = vmatprep.mubr.bf16.mxu1 %v7695_v10 }
  0xfe   : > { %2587 = vmatmul.mubr.bf16.gmra.mrb[56].mxu0 %v8480_v12  ;;  %3166 = vmatmul.mubr.bf16.gmra.mrb[88].mxu1 %v7696_v13  ;;  %v7393_v13 = vld [vmem:[%s9573_s1 + $0x54c] ss:$16 sps:$4 sm:$0xff]  }
  0xff   : > { %2596 = vmatprep.mubr.bf16.mxu0 %v8483_v14  ;;  %3175 = vmatprep.mubr.bf16.mxu1 %v8093_v56  ;;  %v7328_v56 = vld [vmem:[%s9573_s1 + $0x600] ss:$16 sps:$4 sm:$0xff]  }
 0x106   : > { %2597 = vmatmul.mubr.bf16.gmra.mrb[60].mxu0 %v8490_v32  ;;  %3176 = vmatmul.mubr.bf16.gmra.mrb[92].mxu1 %v8114_v63  ;;  %v7339_v63 = vld [vmem:[%s9573_s1 + $0x42c] ss:$16 sps:$4 sm:$0xff]  }
 0x107   : > { %2639 = vmatprep.mubr.bf16.mxu0 %v8493_v40  ;;  %3218 = vmatprep.mubr.bf16.mxu1 %v8129_v5  ;;  %v7337_v5 = vld [vmem:[%s9573_s1 + $0x428] ss:$16 sps:$4 sm:$0xff]  }
 0x10e   : > { %2640 = vmatmul.mubr.bf16.vlgmr.msra.gmra.mrb[0].mxu0 %v8500_v19  ;;  %3219 = vmatmul.mubr.bf16.vlgmr.msra.gmra.mrb[32].mxu1 %v8148_v11  ;;  %v8528_v11 = vld [vmem:[%s7796_s9 + $0x84] ss:$28 sps:$4 sm:$0xff]  }
 0x10f   : > { %2801 = vmatpush1.bf16.msra.mxu0 %v7328_v56  ;;  %3380 = vmatpush1.bf16.msra.mxu1 %v7331_v21  ;;  %v8633_v21 = vld [vmem:[%s7796_s9 + $0x128] ss:$28 sps:$4 sm:$0xff]  }
 0x110   : > { %2649 = vmatprep.mubr.bf16.mxu0 %v8509_v35  ;;  %3228 = vmatprep.mubr.bf16.mxu1 %v8157_v16  ;;  %v7351_v16 = vld [vmem:[%s9573_s1 + $0x46c] ss:$16 sps:$4 sm:$0xff]  }
 0x111   : > { %3381 = vmatprep.subr.bf16.mxu1 %v7339_v63  ;;  %v8638_v63 = vld [vmem:[%s7796_s9 + $0x164] ss:$28 sps:$4 sm:$0xff]  }
 0x113   : > { %3382 = vmatpush1.bf16.msra.mxu1 %v7337_v5  ;;  %v7391_v5 = vld [vmem:[%s9573_s1 + $0x548] ss:$16 sps:$4 sm:$0xff]  }
 0x114   : > { %3383 = vmatprep.subr.bf16.mxu1 %v7345_v24  ;;  %v7399_v24 = vld [vmem:[%s9573_s1 + $0x56c] ss:$16 sps:$4 sm:$0xff]  }
 0x116   : > { %2650 = vmatmul.mubr.bf16.gmra.mrb[4].mxu0 %v8525_v42  ;;  %3229 = vmatmul.mubr.bf16.gmra.mrb[36].mxu1 %v8182_v22  ;;  %v7355_v22 = vld [vmem:[%s9573_s1 + $0x488] ss:$16 sps:$4 sm:$0xff]  }
 0x117   : > { %2659 = vmatprep.mubr.bf16.mxu0 %v8528_v11  ;;  %3238 = vmatprep.mubr.bf16.mxu1 %v8185_v23  ;;  %v7363_v23 = vld [vmem:[%s9573_s1 + $0x4ac] ss:$16 sps:$4 sm:$0xff]  }
 0x118   : > { %3384 = vmatpush1.bf16.msra.mxu1 %v7343_v25  ;;  %v7397_v25 = vld [vmem:[%s9573_s1 + $0x568] ss:$16 sps:$4 sm:$0xff]  }
 0x119   : > { %3385 = vmatprep.subr.bf16.mxu1 %v7351_v16 }
 0x11c   : > { %3386 = vmatpush1.bf16.msra.mxu1 %v7349_v46  ;;  %v7405_v46 = vld [vmem:[%s9573_s1 + $0x58c] ss:$16 sps:$4 sm:$0xff]  }
 0x11d   : > { %3387 = vmatprep.subr.bf16.mxu1 %v7357_v55 }
 0x11e   : > { %2660 = vmatmul.mubr.bf16.gmra.mrb[8].mxu0 %v8547_v29  ;;  %3239 = vmatmul.mubr.bf16.gmra.mrb[40].mxu1 %v8216_v54 }
 0x11f   : > { %2669 = vmatprep.mubr.bf16.mxu0 %v8550_v30  ;;  %3248 = vmatprep.mubr.bf16.mxu1 %v8219_v31 }
 0x120   : > { %3388 = vmatpush1.bf16.msra.mxu1 %v7355_v22  ;;  %v8663_v22 = vld [vmem:[%s7796_s9 + $0x160] ss:$28 sps:$4 sm:$0xff]  }
 0x121   : > { %v8565_v33 = vpop.f32.mrb[0].mxu1  ;;  %3389 = vmatprep.subr.bf16.mxu1 %v7363_v23  ;;  %v8668_v23 = vld [vmem:[%s7796_s9 + $0x19c] ss:$28 sps:$4 sm:$0xff]  }
 0x122   : > { %v8570_v36 = vpop.f32.mrb[1].mxu1 }
 0x123   : > { %v8575_v54 = vpop.f32.mrb[2].mxu1 }
 0x124   : > { %v8580_v31 = vpop.f32.mrb[3].mxu1  ;;  %3390 = vmatpush1.bf16.msra.mxu1 %v7361_v47  ;;  %v7403_v47 = vld [vmem:[%s9573_s1 + $0x588] ss:$16 sps:$4 sm:$0xff]  }
 0x125   : > { %3391 = vmatprep.subr.bf16.mxu1 %v7369_v34  ;;  %v7411_v34 = vld [vmem:[%s9573_s1 + $0x5ac] ss:$16 sps:$4 sm:$0xff]  }
 0x126   : > { %2670 = vmatmul.mubr.bf16.gmra.mrb[12].mxu0 %v8573_v37  ;;  %3249 = vmatmul.mubr.bf16.gmra.mrb[44].mxu1 %v8250_v2 }
 0x127   : > { %2679 = vmatprep.mubr.bf16.mxu0 %v8578_v62  ;;  %3258 = vmatprep.mubr.bf16.mxu1 %v8253_v43 }
 0x128   : > { %3392 = vmatpush1.bf16.msra.mxu1 %v7367_v41  ;;  %v7409_v41 = vld [vmem:[%s9573_s1 + $0x5a8] ss:$16 sps:$4 sm:$0xff]  }
 0x129   : > { %v8595_v49 = vpop.f32.mrb[4].mxu1  ;;  %3393 = vmatprep.subr.bf16.mxu1 %v7375_v59 }
 0x12a   : > { %v8600_v7 = vpop.f32.mrb[5].mxu1 }
 0x12b   : > { %v8605_v2 = vpop.f32.mrb[6].mxu1 }
 0x12c   : > { %v8610_v43 = vpop.f32.mrb[7].mxu1  ;;  %3394 = vmatpush1.bf16.msra.mxu1 %v7373_v48  ;;  %v7417_v48 = vld [vmem:[%s9573_s1 + $0x5cc] ss:$16 sps:$4 sm:$0xff]  }
 0x12d   : > { %3395 = vmatprep.subr.bf16.mxu1 %v7381_v52 }
 0x12e   : > { %2680 = vmatmul.mubr.bf16.gmra.mrb[16].mxu0 %v8603_v60  ;;  %3259 = vmatmul.mubr.bf16.gmra.mrb[48].mxu1 %v8284_v15 }
 0x12f   : > { %2689 = vmatprep.mubr.bf16.mxu0 %v8608_v61  ;;  %3268 = vmatprep.mubr.bf16.mxu1 %v8287_v53 }
 0x130   : > { %3396 = vmatpush1.bf16.msra.mxu1 %v7379_v3  ;;  %v8693_v3 = vld [vmem:[%s7796_s9 + $0x198] ss:$28 sps:$4 sm:$0xff]  }
 0x131   : > { %v8625_v10 = vpop.f32.mrb[8].mxu1  ;;  %3397 = vmatprep.subr.bf16.mxu1 %v7387_v20  ;;  %v8698_v20 = vld [vmem:[%s7796_s9 + $0x1d4] ss:$28 sps:$4 sm:$0xff]  }
 0x132   : > { %v8630_v56 = vpop.f32.mrb[9].mxu1 }
 0x133   : > { %v8635_v15 = vpop.f32.mrb[10].mxu1 }
 0x134   : > { %v8640_v53 = vpop.f32.mrb[11].mxu1  ;;  %3398 = vmatpush1.bf16.msra.mxu1 %v7385_v9  ;;  %v7415_v9 = vld [vmem:[%s9573_s1 + $0x5c8] ss:$16 sps:$4 sm:$0xff]  }
 0x135   : > { %3399 = vmatprep.subr.bf16.mxu1 %v7393_v13  ;;  %v7423_v13 = vld [vmem:[%s9573_s1 + $0x5ec] ss:$16 sps:$4 sm:$0xff]  }
 0x136   : > { %2690 = vmatmul.mubr.bf16.gmra.mrb[20].mxu0 %v8633_v21  ;;  %3269 = vmatmul.mubr.bf16.gmra.mrb[52].mxu1 %v8315_v4 }
 0x137   : > { %2699 = vmatprep.mubr.bf16.mxu0 %v8638_v63  ;;  %3278 = vmatprep.mubr.bf16.mxu1 %v8321_v6 }
 0x138   : > { %3400 = vmatpush1.bf16.msra.mxu1 %v7391_v5  ;;  %v7421_v5 = vld [vmem:[%s9573_s1 + $0x5e8] ss:$16 sps:$4 sm:$0xff]  }
 0x139   : > { %v8655_v16 = vpop.f32.mrb[12].mxu1  ;;  %3401 = vmatprep.subr.bf16.mxu1 %v7399_v24 }
 0x13a   : > { %v8660_v55 = vpop.f32.mrb[13].mxu1 }
 0x13b   : > { %v8665_v4 = vpop.f32.mrb[14].mxu1 }
 0x13c   : > { %v8670_v6 = vpop.f32.mrb[15].mxu1  ;;  %3402 = vmatpush1.bf16.msra.mxu1 %v7397_v25  ;;  %v7427_v25 = vld [vmem:[%s9573_s1 + $0x60c] ss:$16 sps:$4 sm:$0xff]  }
 0x13d   : > { %3403 = vmatprep.subr.bf16.mxu1 %v7405_v46 }
 0x13e   : > { %2700 = vmatmul.mubr.bf16.gmra.mrb[24].mxu0 %v8663_v22  ;;  %3279 = vmatmul.mubr.bf16.gmra.mrb[56].mxu1 %v8352_v17 }
 0x13f   : > { %2709 = vmatprep.mubr.bf16.mxu0 %v8668_v23  ;;  %3288 = vmatprep.mubr.bf16.mxu1 %v8355_v18 }
 0x140   : > { %3404 = vmatpush1.bf16.msra.mxu1 %v7403_v47 }
 0x141   : > { %v8685_v59 = vpop.f32.mrb[16].mxu1  ;;  %3405 = vmatprep.subr.bf16.mxu1 %v7411_v34 }
 0x142   : > { %v8690_v52 = vpop.f32.mrb[17].mxu1 }
 0x143   : > { %v8695_v17 = vpop.f32.mrb[18].mxu1 }
 0x144   : > { %v8700_v18 = vpop.f32.mrb[19].mxu1  ;;  %3406 = vmatpush1.bf16.msra.mxu1 %v7409_v41 }
 0x145   : > { %3407 = vmatprep.subr.bf16.mxu1 %v7417_v48 }
 0x146   : > { %2710 = vmatmul.mubr.bf16.gmra.mrb[28].mxu0 %v8693_v3  ;;  %3289 = vmatmul.mubr.bf16.gmra.mrb[60].mxu1 %v8386_v26  ;;  %v8723_v26 = vld [vmem:[%s7796_s9 + $0x1d0] ss:$28 sps:$4 sm:$0xff]  }
 0x147   : > { %2719 = vmatprep.mubr.bf16.mxu0 %v8698_v20  ;;  %3298 = vmatprep.mubr.bf16.mxu1 %v8389_v28  ;;  %v8728_v28 = vld [vmem:[%s7796_s9 + $0x20c] ss:$28 sps:$4 sm:$0xff]  }
 0x148   : > { %3408 = vmatpush1.bf16.msra.mxu1 %v7415_v9  ;;  %v8741_v9 = vld [vmem:[%s7796_s9 + $0x208] ss:$28 sps:$4 sm:$0xff]  }
 0x149   : > { %v8715_v24 = vpop.f32.mrb[20].mxu1  ;;  %3409 = vmatprep.subr.bf16.mxu1 %v7423_v13 }
 0x14a   : > { %v8720_v46 = vpop.f32.mrb[21].mxu1 }
 0x14b   : > { %v8725_v47 = vpop.f32.mrb[22].mxu1 }
 0x14c   : > { %v8730_v34 = vpop.f32.mrb[23].mxu1  ;;  %3410 = vmatpush1.bf16.msra.mxu1 %v7421_v5  ;;  %v8746_v5 = vld [vmem:[%s7796_s9 + $0x244] ss:$28 sps:$4 sm:$0xff]  }
 0x14d   : > { %3572 = vmatprep.subr.bf16.mxu1 %v7427_v25 }
 0x14e   : > { %2720 = vmatmul.mubr.bf16.gmra.mrb[32].mxu0 %v8723_v26  ;;  %3299 = vmatmul.mubr.bf16.gmra.mrb[64].mxu1 %v8420_v38 }
 0x14f   : > { %2729 = vmatprep.mubr.bf16.mxu0 %v8728_v28  ;;  %3308 = vmatprep.mubr.bf16.mxu1 %v8423_v39 }
 0x151   : > { %v8736_v41 = vpop.f32.mrb[24].mxu1 }
 0x152   : > { %9580 = vst [vmem:[#allocation2_spill] sm:$0xff] %v8736_v41  ;;  %v8738_v48 = vpop.f32.mrb[25].mxu1 }
 0x153   : > { %9581 = vst [vmem:[#allocation3_spill] sm:$0xff] %v8738_v48  ;;  %v8743_v13 = vpop.f32.mrb[26].mxu1  ;;  %v8759_v48 = vld [vmem:[%s7796_s9 + $0x240] ss:$28 sps:$4 sm:$0xff]  }
 0x154   : > { %9582 = vst [vmem:[#allocation4_spill] sm:$0xff] %v8743_v13  ;;  %v8748_v25 = vpop.f32.mrb[27].mxu1 }
 0x155   : > { %9583 = vst [vmem:[#allocation5_spill] sm:$0xff] %v8748_v25  ;;  %v8764_v25 = vld [vmem:[%s7796_s9 + $0x27c] ss:$28 sps:$4 sm:$0xff]  }
 0x156   : > { %2730 = vmatmul.mubr.bf16.gmra.mrb[36].mxu0 %v8741_v9  ;;  %3309 = vmatmul.mubr.bf16.gmra.mrb[68].mxu1 %v8430_v44  ;;  %v8773_v44 = vld [vmem:[%s7796_s9 + $0x278] ss:$28 sps:$4 sm:$0xff]  }
 0x157   : > { %2739 = vmatprep.mubr.bf16.mxu0 %v8746_v5  ;;  %3318 = vmatprep.mubr.bf16.mxu1 %v8433_v45  ;;  %v8776_v45 = vld [vmem:[%s7796_s9 + $0x2b4] ss:$28 sps:$4 sm:$0xff]  }
 0x159   : > { %v8754_v38 = vpop.f32.mrb[28].mxu1 }
 0x15a   : > { %v8756_v39 = vpop.f32.mrb[29].mxu1 }
 0x15b   : > { %9584 = vst [vmem:[#allocation6_spill] sm:$0xff] %v8756_v39  ;;  %v8761_v13 = vpop.f32.mrb[30].mxu1  ;;  %v8846_v39 = vld [vmem:[%s7796_s9 + $0x50] ss:$28 sps:$4 sm:$0xff]  }
 0x15c   : > { %9585 = vst [vmem:[#allocation7_spill] sm:$0xff] %v8761_v13  ;;  %v8766_v41 = vpop.f32.mrb[31].mxu1  ;;  %v7449_v13 = vld [vmem:[%s9575_s3 + $0x24] ss:$8 sps:$4 sm:$0xff]  }
 0x15d   : > { %9586 = vst [vmem:[#allocation8_spill] sm:$0xff] %v8766_v41  ;;  %v8789_v41 = vld [vmem:[%s7796_s9 + $0x2ec] ss:$28 sps:$4 sm:$0xff]  }
 0x15e   : > { %2740 = vmatmul.mubr.bf16.gmra.mrb[40].mxu0 %v8759_v48  ;;  %3319 = vmatmul.mubr.bf16.gmra.mrb[72].mxu1 %v8440_v50  ;;  %v7441_v50 = vld [vmem:[%s9575_s3 + $0x4] ss:$8 sps:$4 sm:$0xff]  }
 0x15f   : > { %2749 = vmatprep.mubr.bf16.mxu0 %v8764_v25  ;;  %3328 = vmatprep.mubr.bf16.mxu1 %v8443_v51  ;;  %v8786_v51 = vld [vmem:[%s7796_s9 + $0x2b0] ss:$28 sps:$4 sm:$0xff]  }
 0x160   : > { %4609 = vmatprep.subr.bf16.mxu0 %v7441_v50  ;;  %v8806_v50 = vld [vmem:[%s7796_s9 + $0x320] ss:$28 sps:$4 sm:$0xff]  }
 0x166   : > { %2750 = vmatmul.mubr.bf16.gmra.mrb[44].mxu0 %v8773_v44  ;;  %3329 = vmatmul.mubr.bf16.gmra.mrb[76].mxu1 %v8450_v57  ;;  %v8796_v57 = vld [vmem:[%s7796_s9 + $0x2e8] ss:$28 sps:$4 sm:$0xff]  }
 0x167   : > { %2759 = vmatprep.mubr.bf16.mxu0 %v8776_v45  ;;  %3338 = vmatprep.mubr.bf16.mxu1 %v8453_v58  ;;  %v8799_v58 = vld [vmem:[%s7796_s9 + $0x324] ss:$28 sps:$4 sm:$0xff]  }
 0x16e   : > { %2760 = vmatmul.mubr.bf16.gmra.mrb[48].mxu0 %v8786_v51  ;;  %3339 = vmatmul.mubr.bf16.gmra.mrb[80].mxu1 %v8460_v0  ;;  %v8809_v0 = vld [vmem:[%s7796_s9 + $0x35c] ss:$28 sps:$4 sm:$0xff]  }
 0x16f   : > { %2769 = vmatprep.mubr.bf16.mxu0 %v8789_v41  ;;  %3348 = vmatprep.mubr.bf16.mxu1 %v8463_v1  ;;  %v8816_v1 = vld [vmem:[%s7796_s9 + $0x358] ss:$28 sps:$4 sm:$0xff]  }
 0x176   : > { %2770 = vmatmul.mubr.bf16.gmra.mrb[52].mxu0 %v8796_v57  ;;  %3349 = vmatmul.mubr.bf16.gmra.mrb[84].mxu1 %v8470_v27  ;;  %v7705_v27 = vmov 0  }
 0x177   : > { %2779 = vmatprep.mubr.bf16.mxu0 %v8799_v58  ;;  %3358 = vmatprep.mubr.bf16.mxu1 %v8473_v8  ;;  %v8823_v8 = vld [vmem:[%s7796_s9 + $0x18] ss:$28 sps:$4 sm:$0xff]  }
 0x17e   : > { %2780 = vmatmul.mubr.bf16.gmra.mrb[56].mxu0 %v8806_v50  ;;  %3359 = vmatmul.mubr.bf16.gmra.mrb[88].mxu1 %v8480_v12  ;;  %v7425_v12 = vld [vmem:[%s9573_s1 + $0x608] ss:$16 sps:$4 sm:$0xff]  }
 0x17f   : > { %2789 = vmatprep.mubr.bf16.mxu0 %v8809_v0  ;;  %3368 = vmatprep.mubr.bf16.mxu1 %v8483_v14  ;;  %v7439_v14 = vld [vmem:[%s9575_s3] ss:$8 sps:$4 sm:$0xff]  }
 0x186   : > { %2790 = vmatmul.mubr.bf16.gmra.mrb[60].mxu0 %v8816_v1  ;;  %3369 = vmatmul.mubr.bf16.gmra.mrb[92].mxu1 %v8490_v32  ;;  %v7445_v32 = vld [vmem:[%s9575_s3 + $0x14] ss:$8 sps:$4 sm:$0xff]  }
 0x187   : > { %2832 = vmatprep.mubr.bf16.mxu0 %v7705_v27  ;;  %3411 = vmatprep.mubr.bf16.mxu1 %v8493_v40  ;;  %v7443_v40 = vld [vmem:[%s9575_s3 + $0x10] ss:$8 sps:$4 sm:$0xff]  }
 0x18e   : > { %6080 = vmatmul.mubr.msk.bf16.vlgmr.msra.gmra.mrb[0].mxu0 %vm2172_vm0, %v8823_v8  ;;  %3412 = vmatmul.mubr.bf16.vlgmr.msra.gmra.mrb[32].mxu1 %v8500_v19  ;;  %v7447_v19 = vld [vmem:[%s9575_s3 + $0x20] ss:$8 sps:$4 sm:$0xff]  }
 0x18f   : > { %3573 = vmatpush1.bf16.msra.mxu1 %v7425_v12  ;;  %2842 = vmatprep.mubr.bf16.mxu0 %v7705_v27  ;;  %v7451_v12 = vld [vmem:[%s9575_s3 + $0x30] ss:$8 sps:$4 sm:$0xff]  }
 0x190   : > { %3421 = vmatprep.mubr.bf16.mxu1 %v8509_v35  ;;  %4610 = vmatpush1.bf16.msra.mxu0 %v7439_v14  ;;  %v7453_v35 = vld [vmem:[%s9575_s3 + $0x34] ss:$8 sps:$4 sm:$0xff]   ;;  %v8866_v14 = vld [vmem:[%s7796_s9 + $0x88] ss:$28 sps:$4 sm:$0xff]  }
 0x191   : > { %4611 = vmatprep.subr.bf16.mxu0 %v7445_v32  ;;  %v7458_v32 = vld [vmem:[%s9575_s3 + $0x50] ss:$8 sps:$4 sm:$0xff]  }
 0x194   : > { %4612 = vmatpush1.bf16.msra.mxu0 %v7443_v40  ;;  %v7463_v40 = vld [vmem:[%s9575_s3 + $0x64] ss:$8 sps:$4 sm:$0xff]  }
 0x195   : > { %4613 = vmatprep.subr.bf16.mxu0 %v7449_v13  ;;  %v7457_v13 = vld [vmem:[%s9575_s3 + $0x44] ss:$8 sps:$4 sm:$0xff]  }
 0x196   : > { %6081 = vmatmul.mubr.msk.bf16.gmra.mrb[4].mxu0 %vm2172_vm0, %v8846_v39  ;;  %3422 = vmatmul.mubr.bf16.gmra.mrb[36].mxu1 %v8525_v42  ;;  %v7455_v42 = vld [vmem:[%s9575_s3 + $0x40] ss:$8 sps:$4 sm:$0xff]  }
 0x197   : > { %2852 = vmatprep.mubr.bf16.mxu0 %v7705_v27  ;;  %3431 = vmatprep.mubr.bf16.mxu1 %v8528_v11  ;;  %v7460_v11 = vld [vmem:[%s9575_s3 + $0x54] ss:$8 sps:$4 sm:$0xff]  }
 0x198   : > { %4614 = vmatpush1.bf16.msra.mxu0 %v7447_v19  ;;  %v8886_v19 = vld [vmem:[%s7796_s9 + $0xc0] ss:$28 sps:$4 sm:$0xff]  }
 0x199   : > { %4615 = vmatprep.subr.bf16.mxu0 %v7453_v35  ;;  %v7464_v35 = vld [vmem:[%s9575_s3 + $0x70] ss:$8 sps:$4 sm:$0xff]  }
 0x19c   : > { %4616 = vmatpush1.bf16.msra.mxu0 %v7451_v12  ;;  %v7469_v12 = vld [vmem:[%s9575_s3 + $0x84] ss:$8 sps:$4 sm:$0xff]  }
 0x19d   : > { %4617 = vmatprep.subr.bf16.mxu0 %v7457_v13  ;;  %v8906_v13 = vld [vmem:[%s7796_s9 + $0xf8] ss:$28 sps:$4 sm:$0xff]  }
 0x19e   : > { %6082 = vmatmul.mubr.msk.bf16.gmra.mrb[8].mxu0 %vm2172_vm0, %v8866_v14  ;;  %3432 = vmatmul.mubr.bf16.gmra.mrb[40].mxu1 %v8547_v29  ;;  %v7461_v29 = vld [vmem:[%s9575_s3 + $0x60] ss:$8 sps:$4 sm:$0xff]  }
 0x19f   : > { %2862 = vmatprep.mubr.bf16.mxu0 %v7705_v27  ;;  %3441 = vmatprep.mubr.bf16.mxu1 %v8550_v30  ;;  %v7466_v30 = vld [vmem:[%s9575_s3 + $0x74] ss:$8 sps:$4 sm:$0xff]  }
 0x1a0   : > { %4618 = vmatpush1.bf16.msra.mxu0 %v7455_v42  ;;  %v7470_v42 = vld [vmem:[%s9575_s3 + $0x90] ss:$8 sps:$4 sm:$0xff]  }
 0x1a1   : > { %4619 = vmatprep.subr.bf16.mxu0 %v7460_v11  ;;  %v8923_v11 = vld [vmem:[%s7796_s9 + $0x130] ss:$28 sps:$4 sm:$0xff]  }
 0x1a4   : > { %4620 = vmatpush1.bf16.msra.mxu0 %v7458_v32  ;;  %v8937_v32 = vld [vmem:[%s7796_s9 + $0x168] ss:$28 sps:$4 sm:$0xff]  }
 0x1a5   : > { %4621 = vmatprep.subr.bf16.mxu0 %v7463_v40  ;;  %v8951_v40 = vld [vmem:[%s7796_s9 + $0x1a0] ss:$28 sps:$4 sm:$0xff]  }
 0x1a6   : > { %6083 = vmatmul.mubr.msk.bf16.gmra.mrb[12].mxu0 %vm2172_vm0, %v8886_v19  ;;  %3442 = vmatmul.mubr.bf16.gmra.mrb[44].mxu1 %v8573_v37  ;;  %v7467_v37 = vld [vmem:[%s9575_s3 + $0x80] ss:$8 sps:$4 sm:$0xff]  }
 0x1a7   : > { %2872 = vmatprep.mubr.bf16.mxu0 %v7705_v27  ;;  %3451 = vmatprep.mubr.bf16.mxu1 %v8578_v62  ;;  %v7472_v62 = vld [vmem:[%s9575_s3 + $0x94] ss:$8 sps:$4 sm:$0xff]  }
 0x1a8   : > { %4622 = vmatpush1.bf16.msra.mxu0 %v7461_v29  ;;  %v8965_v29 = vld [vmem:[%s7796_s9 + $0x1d8] ss:$28 sps:$4 sm:$0xff]  }
 0x1a9   : > { %4623 = vmatprep.subr.bf16.mxu0 %v7466_v30  ;;  %v8979_v30 = vld [vmem:[%s7796_s9 + $0x210] ss:$28 sps:$4 sm:$0xff]  }
 0x1ac   : > { %4624 = vmatpush1.bf16.msra.mxu0 %v7464_v35  ;;  %v7437_v35 = vld [vmem:[%s7796_s9 + $0x248] ss:$28 sps:$4 sm:$0xff]  }
 0x1ad   : > { %4625 = vmatprep.subr.bf16.mxu0 %v7469_v12 }
 0x1ae   : > { %6084 = vmatmul.mubr.msk.bf16.gmra.mrb[16].mxu0 %vm2172_vm0, %v8906_v13  ;;  %3452 = vmatmul.mubr.bf16.gmra.mrb[48].mxu1 %v8603_v60  ;;  %v7473_v60 = vld [vmem:[%s9575_s3 + $0xa0] ss:$8 sps:$4 sm:$0xff]  }
 0x1af   : > { %2882 = vmatprep.mubr.bf16.mxu0 %v7705_v27  ;;  %3461 = vmatprep.mubr.bf16.mxu1 %v8608_v61  ;;  %v7475_v61 = vld [vmem:[%s9575_s3 + $0xa4] ss:$8 sps:$4 sm:$0xff]  }
 0x1b0   : > { %4626 = vmatpush1.bf16.msra.mxu0 %v7467_v37 }
 0x1b1   : > { %4627 = vmatprep.subr.bf16.mxu0 %v7472_v62 }
 0x1b4   : > { %4628 = vmatpush1.bf16.msra.mxu0 %v7470_v42 }
 0x1b5   : > { %4629 = vmatprep.subr.bf16.mxu0 %v7475_v61 }
 0x1b6   : > { %6085 = vmatmul.mubr.msk.bf16.gmra.mrb[20].mxu0 %vm2172_vm0, %v8923_v11  ;;  %3462 = vmatmul.mubr.bf16.gmra.mrb[52].mxu1 %v8633_v21  ;;  %v7476_v21 = vld [vmem:[%s9575_s3 + $0xb0] ss:$8 sps:$4 sm:$0xff]  }
 0x1b7   : > { %2892 = vmatprep.mubr.bf16.mxu0 %v7705_v27  ;;  %3471 = vmatprep.mubr.bf16.mxu1 %v8638_v63  ;;  %v7478_v63 = vld [vmem:[%s9575_s3 + $0xb4] ss:$8 sps:$4 sm:$0xff]  }
 0x1b8   : > { %4630 = vmatpush1.bf16.msra.mxu0 %v7473_v60 }
 0x1b9   : > { %4631 = vmatprep.subr.bf16.mxu0 %v7478_v63 }
 0x1bc   : > { %4632 = vmatpush1.bf16.msra.mxu0 %v7476_v21 }
 0x1be   : > { %6086 = vmatmul.mubr.msk.bf16.gmra.mrb[24].mxu0 %vm2172_vm0, %v8937_v32  ;;  %3472 = vmatmul.mubr.bf16.gmra.mrb[56].mxu1 %v8663_v22  ;;  %v7479_v22 = vld [vmem:[%s9575_s3 + $0xc0] ss:$8 sps:$4 sm:$0xff]  }
 0x1bf   : > { %2902 = vmatprep.mubr.bf16.mxu0 %v7705_v27  ;;  %3481 = vmatprep.mubr.bf16.mxu1 %v8668_v23  ;;  %v7481_v23 = vld [vmem:[%s9575_s3 + $0xc4] ss:$8 sps:$4 sm:$0xff]  }
 0x1c0   : > { %4633 = vmatprep.subr.bf16.mxu0 %v7481_v23 }
 0x1c1   : > { %4634 = vmatpush1.bf16.msra.mxu0 %v7479_v22 }
 0x1c6   : > { %6087 = vmatmul.mubr.msk.bf16.gmra.mrb[28].mxu0 %vm2172_vm0, %v8951_v40  ;;  %3482 = vmatmul.mubr.bf16.gmra.mrb[60].mxu1 %v8693_v3  ;;  %v7482_v3 = vld [vmem:[%s9575_s3 + $0xd0] ss:$8 sps:$4 sm:$0xff]  }
 0x1c7   : > { %2912 = vmatprep.mubr.bf16.mxu0 %v7705_v27  ;;  %3491 = vmatprep.mubr.bf16.mxu1 %v8698_v20  ;;  %v7484_v20 = vld [vmem:[%s9575_s3 + $0xd4] ss:$8 sps:$4 sm:$0xff]  }
 0x1c8   : > { %4635 = vmatprep.subr.bf16.mxu0 %v7484_v20 }
 0x1c9   : > { %4636 = vmatpush1.bf16.msra.mxu0 %v7482_v3 }
 0x1ce   : > { %6088 = vmatmul.mubr.msk.bf16.gmra.mrb[32].mxu0 %vm2172_vm0, %v8965_v29  ;;  %3492 = vmatmul.mubr.bf16.gmra.mrb[64].mxu1 %v8723_v26  ;;  %v7485_v26 = vld [vmem:[%s9575_s3 + $0xe0] ss:$8 sps:$4 sm:$0xff]  }
 0x1cf   : > { %2922 = vmatprep.mubr.bf16.mxu0 %v7705_v27  ;;  %3501 = vmatprep.mubr.bf16.mxu1 %v8728_v28  ;;  %v7487_v28 = vld [vmem:[%s9575_s3 + $0xe4] ss:$8 sps:$4 sm:$0xff]  }
 0x1d0   : > { %4637 = vmatprep.subr.bf16.mxu0 %v7487_v28  ;;  %v7491_v28 = vld [vmem:[%s9575_s3 + $0x100] ss:$8 sps:$4 sm:$0xff]  }
 0x1d1   : > { %4638 = vmatpush1.bf16.msra.mxu0 %v7485_v26 }
 0x1d6   : > { %6089 = vmatmul.mubr.msk.bf16.gmra.mrb[36].mxu0 %vm2172_vm0, %v8979_v30  ;;  %3502 = vmatmul.mubr.bf16.gmra.mrb[68].mxu1 %v8741_v9  ;;  %v8998_v9 = vld [vmem:[%s7796_s9 + $0x280] ss:$28 sps:$4 sm:$0xff]  }
 0x1d7   : > { %2932 = vmatprep.mubr.bf16.mxu0 %v7705_v27  ;;  %3511 = vmatprep.mubr.bf16.mxu1 %v8746_v5  ;;  %v7488_v5 = vld [vmem:[%s9575_s3 + $0xf0] ss:$8 sps:$4 sm:$0xff]  }
 0x1de   : > { %6090 = vmatmul.mubr.msk.bf16.gmra.mrb[40].mxu0 %vm2172_vm0, %v7437_v35  ;;  %3512 = vmatmul.mubr.bf16.gmra.mrb[72].mxu1 %v8759_v48  ;;  %v7490_v48 = vld [vmem:[%s9575_s3 + $0xf4] ss:$8 sps:$4 sm:$0xff]  }
 0x1df   : > { %2942 = vmatprep.mubr.bf16.mxu0 %v7705_v27  ;;  %3521 = vmatprep.mubr.bf16.mxu1 %v8764_v25  ;;  %v9012_v25 = vld [vmem:[%s7796_s9 + $0x2b8] ss:$28 sps:$4 sm:$0xff]  }
 0x1e0   : > { %4639 = vmatprep.subr.bf16.mxu0 %v7490_v48  ;;  %v7496_v48 = vld [vmem:[%s9575_s3 + $0x114] ss:$8 sps:$4 sm:$0xff]  }
 0x1e1   : > { %4640 = vmatpush1.bf16.msra.mxu0 %v7488_v5 }
 0x1e6   : > { %6091 = vmatmul.mubr.msk.bf16.gmra.mrb[44].mxu0 %vm2172_vm0, %v8998_v9  ;;  %3522 = vmatmul.mubr.bf16.gmra.mrb[76].mxu1 %v8773_v44  ;;  %v7493_v44 = vld [vmem:[%s9575_s3 + $0x104] ss:$8 sps:$4 sm:$0xff]  }
 0x1e7   : > { %2952 = vmatprep.mubr.bf16.mxu0 %v7705_v27  ;;  %3531 = vmatprep.mubr.bf16.mxu1 %v8776_v45  ;;  %v9023_v45 = vld [vmem:[%s7796_s9 + $0x2f0] ss:$28 sps:$4 sm:$0xff]  }
 0x1e8   : > { %4802 = vmatprep.subr.bf16.mxu0 %v7493_v44 }
 0x1ee   : > { %6092 = vmatmul.mubr.msk.bf16.gmra.mrb[48].mxu0 %vm2172_vm0, %v9012_v25  ;;  %3532 = vmatmul.mubr.bf16.gmra.mrb[80].mxu1 %v8786_v51  ;;  %v9031_v51 = vld [vmem:[%s7796_s9 + $0x328] ss:$28 sps:$4 sm:$0xff]  }
 0x1ef   : > { %2962 = vmatprep.mubr.bf16.mxu0 %v7705_v27  ;;  %3541 = vmatprep.mubr.bf16.mxu1 %v8789_v41  ;;  %v9039_v41 = vld [vmem:[%s7796_s9 + $0x360] ss:$28 sps:$4 sm:$0xff]  }
 0x1f6   : > { %6093 = vmatmul.mubr.msk.bf16.gmra.mrb[52].mxu0 %vm2172_vm0, %v9023_v45  ;;  %3542 = vmatmul.mubr.bf16.gmra.mrb[84].mxu1 %v8796_v57 }
 0x1f7   : > { %2972 = vmatprep.mubr.bf16.mxu0 %v7705_v27  ;;  %3551 = vmatprep.mubr.bf16.mxu1 %v8799_v58 }
 0x1fe   : > { %6094 = vmatmul.mubr.msk.bf16.gmra.mrb[56].mxu0 %vm2172_vm0, %v9031_v51  ;;  %3552 = vmatmul.mubr.bf16.gmra.mrb[88].mxu1 %v8806_v50  ;;  %v9081_v50 = vld [vmem:[%s9574_s2] sm:$0xf] }
 0x1ff   : > { %2982 = vmatprep.mubr.bf16.mxu0 %v7705_v27  ;;  %3561 = vmatprep.mubr.bf16.mxu1 %v8809_v0 }
 0x206   : > { %6095 = vmatmul.mubr.msk.bf16.gmra.mrb[60].mxu0 %vm2172_vm0, %v9039_v41  ;;  %3562 = vmatmul.mubr.bf16.gmra.mrb[92].mxu1 %v8816_v1 }
 0x207   : > { %3604 = vmatprep.mubr.bf16.mxu1 %v7705_v27 }
 0x20e   : > { %6096 = vmatmul.mubr.msk.bf16.vlgmr.msra.gmra.mrb[32].mxu1 %vm2172_vm0, %v8823_v8 }
 0x20f   : > { %3614 = vmatprep.mubr.bf16.mxu1 %v7705_v27 }
 0x216   : > { %6097 = vmatmul.mubr.msk.bf16.gmra.mrb[36].mxu1 %vm2172_vm0, %v8846_v39  ;;  %v612_v39 = vlaneseq }
 0x217   : > { %3624 = vmatprep.mubr.bf16.mxu1 %v7705_v27 }
 0x218   : > { %v9075_v57 = vshrl.u32 %v612_v39, 7 }
 0x21a   : > { %v614_v58 = vsub.s32 0, %v9075_v57  ;;  %v618_v0 = vsub.s32 1, %v9075_v57 }
 0x21c   : > { %v9089_v1 = vrot.slane %v9081_v50, %v614_v58  ;;  %v9094_v8 = vrot.slane %v9081_v50, %v618_v0 }
 0x21e   : > { %6098 = vmatmul.mubr.msk.bf16.gmra.mrb[40].mxu1 %vm2172_vm0, %v8866_v14 }
 0x21f   : > { %3634 = vmatprep.mubr.bf16.mxu1 %v7705_v27 }
 0x226   : > { %6099 = vmatmul.mubr.msk.bf16.gmra.mrb[44].mxu1 %vm2172_vm0, %v8886_v19 }
 0x227   : > { %3644 = vmatprep.mubr.bf16.mxu1 %v7705_v27 }
 0x22e   : > { %6100 = vmatmul.mubr.msk.bf16.gmra.mrb[48].mxu1 %vm2172_vm0, %v8906_v13 }
 0x22f   : > { %3654 = vmatprep.mubr.bf16.mxu1 %v7705_v27 }
 0x236   : > { %6101 = vmatmul.mubr.msk.bf16.gmra.mrb[52].mxu1 %vm2172_vm0, %v8923_v11 }
 0x237   : > { %3664 = vmatprep.mubr.bf16.mxu1 %v7705_v27 }
 0x23e   : > { %6102 = vmatmul.mubr.msk.bf16.gmra.mrb[56].mxu1 %vm2172_vm0, %v8937_v32 }
 0x23f   : > { %3674 = vmatprep.mubr.bf16.mxu1 %v7705_v27 }
 0x246   : > { %6103 = vmatmul.mubr.msk.bf16.gmra.mrb[60].mxu1 %vm2172_vm0, %v8951_v40 }
 0x247   : > { %3684 = vmatprep.mubr.bf16.mxu1 %v7705_v27 }
 0x24e   : > { %6104 = vmatmul.mubr.msk.bf16.gmra.mrb[64].mxu1 %vm2172_vm0, %v8965_v29 }
 0x24f   : > { %3694 = vmatprep.mubr.bf16.mxu1 %v7705_v27 }
 0x256   : > { %6105 = vmatmul.mubr.msk.bf16.gmra.mrb[68].mxu1 %vm2172_vm0, %v8979_v30 }
 0x257   : > { %3704 = vmatprep.mubr.bf16.mxu1 %v7705_v27 }
 0x25e   : > { %6106 = vmatmul.mubr.msk.bf16.gmra.mrb[72].mxu1 %vm2172_vm0, %v7437_v35 }
 0x25f   : > { %3714 = vmatprep.mubr.bf16.mxu1 %v7705_v27 }
 0x261   : > { %v2834_v14 = vpop.f32.mrb[0].mxu0 }
 0x262   : > { %v6339_v19 = vadd.f32 %v2834_v14, %v9089_v1  ;;  %v2836_v12 = vpop.f32.mrb[1].mxu0 }
 0x263   : > { %v6340_v13 = vadd.f32 %v2836_v12, %v9094_v8  ;;  %v2838_v37 = vpop.f32.mrb[2].mxu0 }
 0x264   : > { %v3893_v62 = vmul.f32 0.2, %v6339_v19  ;;  %v6341_v42 = vadd.f32 %v2838_v37, %v9089_v1  ;;  %v2840_v11 = vpop.f32.mrb[3].mxu0  ;;  %vm3765_vm1 = vcmp.gt.f32.partialorder %v6339_v19, 0.0 }
 0x265   : > { %v3894_v60 = vmul.f32 0.2, %v6340_v13  ;;  %v6342_v61 = vadd.f32 %v2840_v11, %v9094_v8  ;;  %vm3766_vm2 = vcmp.gt.f32.partialorder %v6340_v13, 0.0 }
 0x266   : > { %vm3769_vm3 = vcmp.gt.f32.partialorder %v6341_v42, 0.0  ;;  %v3897_v32 = vmul.f32 0.2, %v6341_v42  ;;  %6107 = vmatmul.mubr.msk.bf16.gmra.mrb[76].mxu1 %vm2172_vm0, %v8998_v9  ;;  %v4021_v63 = vsel %vm3765_vm1, %v6339_v19, %v3893_v62  ;;  %v7499_v62 = vld [vmem:[%s9575_s3 + $0x124] ss:$8 sps:$4 sm:$0xff]  }
 0x267   : > { %vm3770_vm4 = vcmp.gt.f32.partialorder %v6342_v61, 0.0  ;;  %v3898_v21 = vmul.f32 0.2, %v6342_v61  ;;  %3724 = vmatprep.mubr.bf16.mxu1 %v7705_v27  ;;  %v4022_v29 = vsel %vm3766_vm2, %v6340_v13, %v3894_v60  ;;  %v7494_v13 = vld [vmem:[%s9575_s3 + $0x110] ss:$8 sps:$4 sm:$0xff]  }
 0x268   : > { %v4025_v40 = vsel %vm3769_vm3, %v6341_v42, %v3897_v32 }
 0x269   : > { %v4149_v22 = vpack.c.bf16 %v4025_v40, %v4021_v63  ;;  %v2844_v23 = vpop.f32.mrb[4].mxu0  ;;  %v4026_v3 = vsel %vm3770_vm4, %v6342_v61, %v3898_v21 }
 0x26a   : > { %v6343_v20 = vadd.f32 %v2844_v23, %v9089_v1  ;;  %v2846_v30 = vpop.f32.mrb[5].mxu0  ;;  %v4150_v26 = vpack.c.bf16 %v4026_v3, %v4022_v29  ;;  %v7502_v3 = vld [vmem:[%s9575_s3 + $0x134] ss:$8 sps:$4 sm:$0xff]  }
 0x26b   : > { %v6344_v35 = vadd.f32 %v2846_v30, %v9094_v8  ;;  %v2848_v9 = vpop.f32.mrb[6].mxu0 }
 0x26c   : > { %v3901_v5 = vmul.f32 0.2, %v6343_v20  ;;  %v6345_v44 = vadd.f32 %v2848_v9, %v9089_v1  ;;  %v2850_v39 = vpop.f32.mrb[7].mxu0  ;;  %4641 = vmatprep.mubr.bf16.mxu0 %v4150_v26  ;;  %vm3773_vm5 = vcmp.gt.f32.partialorder %v6343_v20, 0.0 }
 0x26d   : > { %v3902_v14 = vmul.f32 0.2, %v6344_v35  ;;  %v6346_v19 = vadd.f32 %v2850_v39, %v9094_v8  ;;  %4642 = vmatmul.mubr.bf16.vlgmr.msra.gmra.mrb[64].mxu0 %v4149_v22  ;;  %vm3774_vm6 = vcmp.gt.f32.partialorder %v6344_v35, 0.0  ;;  %v7497_v22 = vld [vmem:[%s9575_s3 + $0x120] ss:$8 sps:$4 sm:$0xff]  }
 0x26e   : > { %vm3777_vm7 = vcmp.gt.f32.partialorder %v6345_v44, 0.0  ;;  %v3905_v12 = vmul.f32 0.2, %v6345_v44  ;;  %6108 = vmatmul.mubr.msk.bf16.gmra.mrb[80].mxu1 %vm2172_vm0, %v9012_v25  ;;  %4803 = vmatpush1.bf16.msra.mxu0 %v7491_v28  ;;  %v4029_v42 = vsel %vm3773_vm5, %v6343_v20, %v3901_v5 }
 0x26f   : > { %vm3778_vm8 = vcmp.gt.f32.partialorder %v6346_v19, 0.0  ;;  %v3906_v37 = vmul.f32 0.2, %v6346_v19  ;;  %3734 = vmatprep.mubr.bf16.mxu1 %v7705_v27  ;;  %4804 = vmatprep.subr.bf16.mxu0 %v7496_v48  ;;  %v4030_v61 = vsel %vm3774_vm6, %v6344_v35, %v3902_v14  ;;  %v7500_v48 = vld [vmem:[%s9575_s3 + $0x130] ss:$8 sps:$4 sm:$0xff]  }
 0x270   : > { %v4033_v11 = vsel %vm3777_vm7, %v6345_v44, %v3905_v12  ;;  %v7505_v44 = vld [vmem:[%s9575_s3 + $0x144] ss:$8 sps:$4 sm:$0xff]  }
 0x271   : > { %v2854_v60 = vpop.f32.mrb[8].mxu0  ;;  %v4034_v32 = vsel %vm3778_vm8, %v6346_v19, %v3906_v37  ;;  %v4153_v25 = vpack.c.bf16 %v4033_v11, %v4029_v42  ;;  %v7503_v11 = vld [vmem:[%s9575_s3 + $0x140] ss:$8 sps:$4 sm:$0xff]  }
 0x272   : > { %v6347_v21 = vadd.f32 %v2854_v60, %v9089_v1  ;;  %v2856_v63 = vpop.f32.mrb[9].mxu0  ;;  %v4154_v40 = vpack.c.bf16 %v4034_v32, %v4030_v61  ;;  %4805 = vmatpush1.bf16.msra.mxu0 %v7494_v13  ;;  %v7508_v32 = vld [vmem:[%s9575_s3 + $0x154] ss:$8 sps:$4 sm:$0xff]  }
 0x273   : > { %v6348_v23 = vadd.f32 %v2856_v63, %v9094_v8  ;;  %v2858_v29 = vpop.f32.mrb[10].mxu0  ;;  %4806 = vmatprep.subr.bf16.mxu0 %v7499_v62 }
 0x274   : > { %v3909_v20 = vmul.f32 0.2, %v6347_v21  ;;  %v6349_v30 = vadd.f32 %v2858_v29, %v9089_v1  ;;  %v2860_v26 = vpop.f32.mrb[11].mxu0  ;;  %4651 = vmatprep.mubr.bf16.mxu0 %v4154_v40  ;;  %vm3781_vm9 = vcmp.gt.f32.partialorder %v6347_v21, 0.0  ;;  %v7506_v29 = vld [vmem:[%s9575_s3 + $0x150] ss:$8 sps:$4 sm:$0xff]  }
 0x275   : > { %v3910_v28 = vmul.f32 0.2, %v6348_v23  ;;  %v6350_v35 = vadd.f32 %v2860_v26, %v9094_v8  ;;  %4652 = vmatmul.mubr.bf16.gmra.mrb[68].mxu0 %v4153_v25  ;;  %vm3782_vm10 = vcmp.gt.f32.partialorder %v6348_v23, 0.0 }
 0x276   : > { %vm3785_vm11 = vcmp.gt.f32.partialorder %v6349_v30, 0.0  ;;  %v3913_v9 = vmul.f32 0.2, %v6349_v30  ;;  %6109 = vmatmul.mubr.msk.bf16.gmra.mrb[84].mxu1 %vm2172_vm0, %v9023_v45  ;;  %4807 = vmatpush1.bf16.msra.mxu0 %v7497_v22  ;;  %v4037_v39 = vsel %vm3781_vm9, %v6347_v21, %v3909_v20  ;;  %v7511_v20 = vld [vmem:[%s9575_s3 + $0x164] ss:$8 sps:$4 sm:$0xff]  }
 0x277   : > { %vm3786_vm12 = vcmp.gt.f32.partialorder %v6350_v35, 0.0  ;;  %v3914_v5 = vmul.f32 0.2, %v6350_v35  ;;  %3744 = vmatprep.mubr.bf16.mxu1 %v7705_v27  ;;  %4808 = vmatprep.subr.bf16.mxu0 %v7502_v3  ;;  %v4038_v12 = vsel %vm3782_vm10, %v6348_v23, %v3910_v28 }
 0x278   : > { %v4041_v14 = vsel %vm3785_vm11, %v6349_v30, %v3913_v9 }
 0x279   : > { %v2864_v19 = vpop.f32.mrb[12].mxu0  ;;  %v4042_v13 = vsel %vm3786_vm12, %v6350_v35, %v3914_v5  ;;  %v4157_v45 = vpack.c.bf16 %v4041_v14, %v4037_v39 }
 0x27a   : > { %v6351_v37 = vadd.f32 %v2864_v19, %v9089_v1  ;;  %v2866_v62 = vpop.f32.mrb[13].mxu0  ;;  %v4158_v42 = vpack.c.bf16 %v4042_v13, %v4038_v12  ;;  %4809 = vmatpush1.bf16.msra.mxu0 %v7500_v48  ;;  %v7514_v19 = vld [vmem:[%s9575_s3 + $0x174] ss:$8 sps:$4 sm:$0xff]  }
 0x27b   : > { %v6352_v60 = vadd.f32 %v2866_v62, %v9094_v8  ;;  %v2868_v61 = vpop.f32.mrb[14].mxu0  ;;  %4810 = vmatprep.subr.bf16.mxu0 %v7505_v44 }
 0x27c   : > { %v3917_v25 = vmul.f32 0.2, %v6351_v37  ;;  %v6353_v21 = vadd.f32 %v2868_v61, %v9089_v1  ;;  %v2870_v63 = vpop.f32.mrb[15].mxu0  ;;  %4661 = vmatprep.mubr.bf16.mxu0 %v4158_v42  ;;  %vm3789_vm13 = vcmp.gt.f32.partialorder %v6351_v37, 0.0  ;;  %v7517_v61 = vld [vmem:[%s9575_s3 + $0x184] ss:$8 sps:$4 sm:$0xff]  }
 0x27d   : > { %v3918_v40 = vmul.f32 0.2, %v6352_v60  ;;  %v6354_v22 = vadd.f32 %v2870_v63, %v9094_v8  ;;  %4662 = vmatmul.mubr.bf16.gmra.mrb[72].mxu0 %v4157_v45  ;;  %vm3790_vm14 = vcmp.gt.f32.partialorder %v6352_v60, 0.0 }
 0x27e   : > { %vm3793_vm15 = vcmp.gt.f32.partialorder %v6353_v21, 0.0  ;;  %v3921_v23 = vmul.f32 0.2, %v6353_v21  ;;  %6110 = vmatmul.mubr.msk.bf16.gmra.mrb[88].mxu1 %vm2172_vm0, %v9031_v51  ;;  %4811 = vmatpush1.bf16.msra.mxu0 %v7503_v11  ;;  %v4045_v30 = vsel %vm3789_vm13, %v6351_v37, %v3917_v25  ;;  %v7512_v11 = vld [vmem:[%s9575_s3 + $0x170] ss:$8 sps:$4 sm:$0xff]  }
 0x27f   : > { %vm3794_vm1 = vcmp.gt.f32.partialorder %v6354_v22, 0.0  ;;  %v3922_v3 = vmul.f32 0.2, %v6354_v22  ;;  %3754 = vmatprep.mubr.bf16.mxu1 %v7705_v27  ;;  %4812 = vmatprep.subr.bf16.mxu0 %v7508_v32  ;;  %v4046_v35 = vsel %vm3790_vm14, %v6352_v60, %v3918_v40  ;;  %v7509_v27 = vld [vmem:[%s9575_s3 + $0x160] ss:$8 sps:$4 sm:$0xff]  }
 0x280   : > { %v4049_v26 = vsel %vm3793_vm15, %v6353_v21, %v3921_v23 }
 0x281   : > { %v2874_v28 = vpop.f32.mrb[16].mxu0  ;;  %v4050_v9 = vsel %vm3794_vm1, %v6354_v22, %v3922_v3  ;;  %v4161_v51 = vpack.c.bf16 %v4049_v26, %v4045_v30  ;;  %v7515_v3 = vld [vmem:[%s9575_s3 + $0x180] ss:$8 sps:$4 sm:$0xff]   ;;  %v7520_v26 = vld [vmem:[%s9575_s3 + $0x194] ss:$8 sps:$4 sm:$0xff]  }
 0x282   : > { %v6355_v48 = vadd.f32 %v2874_v28, %v9089_v1  ;;  %v2876_v5 = vpop.f32.mrb[17].mxu0  ;;  %v4162_v44 = vpack.c.bf16 %v4050_v9, %v4046_v35  ;;  %4813 = vmatpush1.bf16.msra.mxu0 %v7506_v29 }
 0x283   : > { %v6356_v39 = vadd.f32 %v2876_v5, %v9094_v8  ;;  %v2878_v14 = vpop.f32.mrb[18].mxu0  ;;  %4814 = vmatprep.subr.bf16.mxu0 %v7511_v20 }
 0x284   : > { %v3925_v12 = vmul.f32 0.2, %v6355_v48  ;;  %v6357_v13 = vadd.f32 %v2878_v14, %v9089_v1  ;;  %v2880_v45 = vpop.f32.mrb[19].mxu0  ;;  %4671 = vmatprep.mubr.bf16.mxu0 %v4162_v44  ;;  %vm3797_vm2 = vcmp.gt.f32.partialorder %v6355_v48, 0.0  ;;  %v7518_v44 = vld [vmem:[%s9575_s3 + $0x190] ss:$8 sps:$4 sm:$0xff]  }
 0x285   : > { %v3926_v37 = vmul.f32 0.2, %v6356_v39  ;;  %v6358_v62 = vadd.f32 %v2880_v45, %v9094_v8  ;;  %4672 = vmatmul.mubr.bf16.gmra.mrb[76].mxu0 %v4161_v51  ;;  %vm3798_vm3 = vcmp.gt.f32.partialorder %v6356_v39, 0.0 }
 0x286   : > { %vm3801_vm4 = vcmp.gt.f32.partialorder %v6357_v13, 0.0  ;;  %v3929_v42 = vmul.f32 0.2, %v6357_v13  ;;  %6111 = vmatmul.mubr.msk.bf16.gmra.mrb[92].mxu1 %vm2172_vm0, %v9039_v41  ;;  %4815 = vmatpush1.bf16.msra.mxu0 %v7509_v27  ;;  %v4053_v32 = vsel %vm3797_vm2, %v6355_v48, %v3925_v12 }
 0x287   : > { %vm3802_vm5 = vcmp.gt.f32.partialorder %v6358_v62, 0.0  ;;  %v3930_v60 = vmul.f32 0.2, %v6358_v62  ;;  %4816 = vmatprep.subr.bf16.mxu0 %v7514_v19  ;;  %v4054_v63 = vsel %vm3798_vm3, %v6356_v39, %v3926_v37  ;;  %v7523_v39 = vld [vmem:[%s9575_s3 + $0x1a4] ss:$8 sps:$4 sm:$0xff]  }
 0x288   : > { %v4057_v25 = vsel %vm3801_vm4, %v6357_v13, %v3929_v42 }
 0x289   : > { %v2884_v21 = vpop.f32.mrb[20].mxu0  ;;  %v4058_v40 = vsel %vm3802_vm5, %v6358_v62, %v3930_v60  ;;  %v4165_v22 = vpack.c.bf16 %v4057_v25, %v4053_v32  ;;  %v7521_v60 = vld [vmem:[%s9575_s3 + $0x1a0] ss:$8 sps:$4 sm:$0xff]   ;;  %v7526_v25 = vld [vmem:[%s9575_s3 + $0x1b4] ss:$8 sps:$4 sm:$0xff]  }
 0x28a   : > { %v6359_v41 = vadd.f32 %v2884_v21, %v9089_v1  ;;  %v2886_v23 = vpop.f32.mrb[21].mxu0  ;;  %v4166_v29 = vpack.c.bf16 %v4058_v40, %v4054_v63  ;;  %4817 = vmatpush1.bf16.msra.mxu0 %v7512_v11 }
 0x28b   : > { %v6360_v20 = vadd.f32 %v2886_v23, %v9094_v8  ;;  %v2888_v30 = vpop.f32.mrb[22].mxu0  ;;  %4818 = vmatprep.subr.bf16.mxu0 %v7517_v61 }
 0x28c   : > { %v3933_v28 = vmul.f32 0.2, %v6359_v41  ;;  %v6361_v35 = vadd.f32 %v2888_v30, %v9089_v1  ;;  %v2890_v9 = vpop.f32.mrb[23].mxu0  ;;  %4681 = vmatprep.mubr.bf16.mxu0 %v4166_v29  ;;  %vm3805_vm0 = vcmp.gt.f32.partialorder %v6359_v41, 0.0  ;;  %v7524_v29 = vld [vmem:[%s9575_s3 + $0x1b0] ss:$8 sps:$4 sm:$0xff]  }
 0x28d   : > { %v3934_v51 = vmul.f32 0.2, %v6360_v20  ;;  %v6362_v48 = vadd.f32 %v2890_v9, %v9094_v8  ;;  %4682 = vmatmul.mubr.bf16.gmra.mrb[80].mxu0 %v4165_v22  ;;  %vm3806_vm6 = vcmp.gt.f32.partialorder %v6360_v20, 0.0 }
 0x28e   : > { %vm3809_vm7 = vcmp.gt.f32.partialorder %v6361_v35, 0.0  ;;  %v3937_v5 = vmul.f32 0.2, %v6361_v35  ;;  %4819 = vmatpush1.bf16.msra.mxu0 %v7515_v3  ;;  %v4061_v14 = vsel %vm3805_vm0, %v6359_v41, %v3933_v28 }
 0x28f   : > { %vm3810_vm8 = vcmp.gt.f32.partialorder %v6362_v48, 0.0  ;;  %v3938_v27 = vmul.f32 0.2, %v6362_v48  ;;  %4820 = vmatprep.subr.bf16.mxu0 %v7520_v26  ;;  %v4062_v13 = vsel %vm3806_vm6, %v6360_v20, %v3934_v51  ;;  %v7529_v20 = vld [vmem:[%s9575_s3 + $0x1c4] ss:$8 sps:$4 sm:$0xff]  }
 0x290   : > { %v4065_v19 = vsel %vm3809_vm7, %v6361_v35, %v3937_v5 }
 0x291   : > { %v2894_v12 = vpop.f32.mrb[24].mxu0  ;;  %v4066_v45 = vsel %vm3810_vm8, %v6362_v48, %v3938_v27  ;;  %v4169_v37 = vpack.c.bf16 %v4065_v19, %v4061_v14  ;;  %v7527_v27 = vld [vmem:[%s9575_s3 + $0x1c0] ss:$8 sps:$4 sm:$0xff]   ;;  %v7532_v19 = vld [vmem:[%s9575_s3 + $0x1d4] ss:$8 sps:$4 sm:$0xff]  }
 0x292   : > { %v6363_v62 = vadd.f32 %v2894_v12, %v9089_v1  ;;  %v2896_v42 = vpop.f32.mrb[25].mxu0  ;;  %v4170_v11 = vpack.c.bf16 %v4066_v45, %v4062_v13  ;;  %4821 = vmatpush1.bf16.msra.mxu0 %v7518_v44 }
 0x293   : > { %v6364_v61 = vadd.f32 %v2896_v42, %v9094_v8  ;;  %v2898_v32 = vpop.f32.mrb[26].mxu0  ;;  %4822 = vmatprep.subr.bf16.mxu0 %v7523_v39 }
 0x294   : > { %v3941_v21 = vmul.f32 0.2, %v6363_v62  ;;  %v6365_v63 = vadd.f32 %v2898_v32, %v9089_v1  ;;  %v2900_v40 = vpop.f32.mrb[27].mxu0  ;;  %4691 = vmatprep.mubr.bf16.mxu0 %v4170_v11  ;;  %vm3813_vm9 = vcmp.gt.f32.partialorder %v6363_v62, 0.0  ;;  %v7530_v11 = vld [vmem:[%s9575_s3 + $0x1d0] ss:$8 sps:$4 sm:$0xff]   ;;  %v2336_v32 = vadd.f32 %v8565_v33, %v9089_v1 }
 0x295   : > { %v3942_v22 = vmul.f32 0.2, %v6364_v61  ;;  %v6366_v41 = vadd.f32 %v2900_v40, %v9094_v8  ;;  %4692 = vmatmul.mubr.bf16.gmra.mrb[84].mxu0 %v4169_v37  ;;  %vm3814_vm10 = vcmp.gt.f32.partialorder %v6364_v61, 0.0  ;;  %v7533_v33 = vld [vmem:[%s9575_s3 + $0x1e0] ss:$8 sps:$4 sm:$0xff]  }
 0x296   : > { %vm3817_vm11 = vcmp.gt.f32.partialorder %v6365_v63, 0.0  ;;  %v3945_v23 = vmul.f32 0.2, %v6365_v63  ;;  %4823 = vmatpush1.bf16.msra.mxu0 %v7521_v60  ;;  %v4069_v30 = vsel %vm3813_vm9, %v6363_v62, %v3941_v21 }
 0x297   : > { %vm3818_vm12 = vcmp.gt.f32.partialorder %v6366_v41, 0.0  ;;  %v3946_v3 = vmul.f32 0.2, %v6366_v41  ;;  %4824 = vmatprep.subr.bf16.mxu0 %v7526_v25  ;;  %v4070_v35 = vsel %vm3814_vm10, %v6364_v61, %v3942_v22  ;;  %v7535_v61 = vld [vmem:[%s9575_s3 + $0x1e4] ss:$8 sps:$4 sm:$0xff]  }
 0x298   : > { %v4073_v26 = vsel %vm3817_vm11, %v6365_v63, %v3945_v23  ;;  %v2338_v63 = vadd.f32 %v8570_v36, %v9094_v8 }
 0x299   : > { %v2904_v28 = vpop.f32.mrb[28].mxu0  ;;  %v4074_v9 = vsel %vm3818_vm12, %v6366_v41, %v3946_v3  ;;  %v4173_v51 = vpack.c.bf16 %v4073_v26, %v4069_v30  ;;  %v2342_v26 = vadd.f32 %v8580_v31, %v9094_v8  ;;  %v7536_v31 = vld [vmem:[%s9575_s3 + $0x1f0] ss:$8 sps:$4 sm:$0xff]  }
 0x29a   : > { %v6367_v48 = vadd.f32 %v2904_v28, %v9089_v1  ;;  %v2906_v5 = vpop.f32.mrb[29].mxu0  ;;  %v4174_v44 = vpack.c.bf16 %v4074_v9, %v4070_v35  ;;  %4825 = vmatpush1.bf16.msra.mxu0 %v7524_v29  ;;  %v2340_v29 = vadd.f32 %v8575_v54, %v9089_v1  ;;  %v7538_v35 = vld [vmem:[%s9575_s3 + $0x1f4] ss:$8 sps:$4 sm:$0xff]  }
 0x29b   : > { %v6368_v39 = vadd.f32 %v2906_v5, %v9094_v8  ;;  %v2908_v14 = vpop.f32.mrb[30].mxu0  ;;  %4826 = vmatprep.subr.bf16.mxu0 %v7529_v20 }
 0x29c   : > { %v3949_v12 = vmul.f32 0.2, %v6367_v48  ;;  %v6369_v13 = vadd.f32 %v2908_v14, %v9089_v1  ;;  %v2910_v45 = vpop.f32.mrb[31].mxu0  ;;  %4701 = vmatprep.mubr.bf16.mxu0 %v4174_v44  ;;  %vm3821_vm13 = vcmp.gt.f32.partialorder %v6367_v48, 0.0 }
 0x29d   : > { %v3950_v37 = vmul.f32 0.2, %v6368_v39  ;;  %v6370_v62 = vadd.f32 %v2910_v45, %v9094_v8  ;;  %4702 = vmatmul.mubr.bf16.gmra.mrb[88].mxu0 %v4173_v51  ;;  %vm3822_vm14 = vcmp.gt.f32.partialorder %v6368_v39, 0.0 }
 0x29e   : > { %vm3825_vm15 = vcmp.gt.f32.partialorder %v6369_v13, 0.0  ;;  %v3953_v42 = vmul.f32 0.2, %v6369_v13  ;;  %4827 = vmatpush1.bf16.msra.mxu0 %v7527_v27  ;;  %v4077_v25 = vsel %vm3821_vm13, %v6367_v48, %v3949_v12  ;;  %v2348_v12 = vadd.f32 %v8600_v7, %v9094_v8 }
 0x29f   : > { %vm3826_vm1 = vcmp.gt.f32.partialorder %v6370_v62, 0.0  ;;  %v3954_v60 = vmul.f32 0.2, %v6370_v62  ;;  %4828 = vmatprep.subr.bf16.mxu0 %v7532_v19  ;;  %v4078_v22 = vsel %vm3822_vm14, %v6368_v39, %v3950_v37  ;;  %v2346_v39 = vadd.f32 %v8595_v49, %v9089_v1 }
 0x2a0   : > { %v4081_v21 = vsel %vm3825_vm15, %v6369_v13, %v3953_v42  ;;  %v2350_v42 = vadd.f32 %v8605_v2, %v9089_v1 }
 0x2a1   : > { %v2914_v40 = vpop.f32.mrb[32].mxu0  ;;  %v4082_v41 = vsel %vm3826_vm1, %v6370_v62, %v3954_v60  ;;  %v4177_v23 = vpack.c.bf16 %v4081_v21, %v4077_v25 }
 0x2a2   : > { %v6372_v3 = vadd.f32 %v2914_v40, %v2336_v32  ;;  %v2916_v20 = vpop.f32.mrb[33].mxu0  ;;  %v4178_v30 = vpack.c.bf16 %v4082_v41, %v4078_v22  ;;  %4829 = vmatpush1.bf16.msra.mxu0 %v7530_v11  ;;  %v2352_v32 = vadd.f32 %v8610_v43, %v9094_v8 }
 0x2a3   : > { %v6374_v28 = vadd.f32 %v2916_v20, %v2338_v63  ;;  %v2918_v36 = vpop.f32.mrb[34].mxu0  ;;  %4830 = vmatprep.subr.bf16.mxu0 %v7535_v61 }
 0x2a4   : > { %v3957_v9 = vmul.f32 0.2, %v6372_v3  ;;  %v6376_v54 = vadd.f32 %v2918_v36, %v2340_v29  ;;  %v2920_v51 = vpop.f32.mrb[35].mxu0  ;;  %4711 = vmatprep.mubr.bf16.mxu0 %v4178_v30  ;;  %vm3829_vm2 = vcmp.gt.f32.partialorder %v6372_v3, 0.0 }
 0x2a5   : > { %v3958_v48 = vmul.f32 0.2, %v6374_v28  ;;  %v6378_v5 = vadd.f32 %v2920_v51, %v2342_v26  ;;  %4712 = vmatmul.mubr.bf16.gmra.mrb[92].mxu0 %v4177_v23  ;;  %vm3830_vm3 = vcmp.gt.f32.partialorder %v6374_v28, 0.0  ;;  %v2356_v23 = vadd.f32 %v8625_v10, %v9089_v1 }
 0x2a6   : > { %vm3833_vm4 = vcmp.gt.f32.partialorder %v6376_v54, 0.0  ;;  %v3961_v44 = vmul.f32 0.2, %v6376_v54  ;;  %4831 = vmatpush1.bf16.msra.mxu0 %v7533_v33  ;;  %v4085_v14 = vsel %vm3829_vm2, %v6372_v3, %v3957_v9  ;;  %v2358_v3 = vadd.f32 %v8630_v56, %v9094_v8 }
 0x2a7   : > { %vm3834_vm5 = vcmp.gt.f32.partialorder %v6378_v5, 0.0  ;;  %v3962_v27 = vmul.f32 0.2, %v6378_v5  ;;  %4832 = vmatprep.subr.bf16.mxu0 %v7538_v35  ;;  %v4086_v45 = vsel %vm3830_vm3, %v6374_v28, %v3958_v48  ;;  %v2360_v28 = vadd.f32 %v8635_v15, %v9089_v1 }
 0x2a8   : > { %v4089_v19 = vsel %vm3833_vm4, %v6376_v54, %v3961_v44  ;;  %v2362_v54 = vadd.f32 %v8640_v53, %v9094_v8 }
 0x2a9   : > { %v2924_v13 = vpop.f32.mrb[36].mxu0  ;;  %v4090_v37 = vsel %vm3834_vm5, %v6378_v5, %v3962_v27  ;;  %v4181_v62 = vpack.c.bf16 %v4089_v19, %v4085_v14  ;;  %v2368_v19 = vadd.f32 %v8660_v55, %v9094_v8 }
 0x2aa   : > { %v6380_v11 = vadd.f32 %v2924_v13, %v2346_v39  ;;  %v2926_v60 = vpop.f32.mrb[37].mxu0  ;;  %v4182_v61 = vpack.c.bf16 %v4090_v37, %v4086_v45  ;;  %4833 = vmatpush1.bf16.msra.mxu0 %v7536_v31  ;;  %v2366_v39 = vadd.f32 %v8655_v16, %v9089_v1 }
 0x2ab   : > { %v6382_v49 = vadd.f32 %v2926_v60, %v2348_v12  ;;  %v2928_v25 = vpop.f32.mrb[38].mxu0 }
 0x2ac   : > { %v3965_v21 = vmul.f32 0.2, %v6380_v11  ;;  %v6384_v63 = vadd.f32 %v2928_v25, %v2350_v42  ;;  %v2930_v40 = vpop.f32.mrb[39].mxu0  ;;  %4721 = vmatprep.mubr.bf16.mxu0 %v4182_v61  ;;  %vm3837_vm0 = vcmp.gt.f32.partialorder %v6380_v11, 0.0  ;;  %v2372_v61 = vadd.f32 %v8670_v6, %v9094_v8 }
 0x2ad   : > { %v3966_v7 = vmul.f32 0.2, %v6382_v49  ;;  %v6386_v22 = vadd.f32 %v2930_v40, %v2352_v32  ;;  %4722 = vmatmul.mubr.bf16.gmra.mrb[96].mxu0 %v4181_v62  ;;  %vm3838_vm6 = vcmp.gt.f32.partialorder %v6382_v49, 0.0  ;;  %v2370_v62 = vadd.f32 %v8665_v4, %v9089_v1 }
 0x2ae   : > { %vm3841_vm7 = vcmp.gt.f32.partialorder %v6384_v63, 0.0  ;;  %v3969_v2 = vmul.f32 0.2, %v6384_v63  ;;  %v4093_v29 = vsel %vm3837_vm0, %v6380_v11, %v3965_v21 }
 0x2af   : > { %vm3842_vm8 = vcmp.gt.f32.partialorder %v6386_v22, 0.0  ;;  %v3970_v41 = vmul.f32 0.2, %v6386_v22  ;;  %v4094_v30 = vsel %vm3838_vm6, %v6382_v49, %v3966_v7  ;;  %v2376_v7 = vadd.f32 %v8685_v59, %v9089_v1 }
 0x2b0   : > { %v4097_v43 = vsel %vm3841_vm7, %v6384_v63, %v3969_v2  ;;  %v2378_v2 = vadd.f32 %v8690_v52, %v9094_v8 }
 0x2b1   : > { %v2934_v20 = vpop.f32.mrb[40].mxu0  ;;  %v4098_v33 = vsel %vm3842_vm8, %v6386_v22, %v3970_v41  ;;  %v4185_v26 = vpack.c.bf16 %v4097_v43, %v4093_v29 }
 0x2b2   : > { %v6388_v36 = vadd.f32 %v2934_v20, %v2356_v23  ;;  %v2936_v35 = vpop.f32.mrb[41].mxu0  ;;  %v4186_v9 = vpack.c.bf16 %v4098_v33, %v4094_v30 }
 0x2b3   : > { %v6390_v51 = vadd.f32 %v2936_v35, %v2358_v3  ;;  %v2938_v10 = vpop.f32.mrb[42].mxu0  ;;  %v2380_v3 = vadd.f32 %v8695_v17, %v9089_v1 }
 0x2b4   : > { %v3973_v48 = vmul.f32 0.2, %v6388_v36  ;;  %v6392_v5 = vadd.f32 %v2938_v10, %v2360_v28  ;;  %v2940_v44 = vpop.f32.mrb[43].mxu0  ;;  %4731 = vmatprep.mubr.bf16.mxu0 %v4186_v9  ;;  %vm3845_vm9 = vcmp.gt.f32.partialorder %v6388_v36, 0.0  ;;  %v2386_v10 = vadd.f32 %v8715_v24, %v9089_v1 }
 0x2b5   : > { %v3974_v56 = vmul.f32 0.2, %v6390_v51  ;;  %v6394_v31 = vadd.f32 %v2940_v44, %v2362_v54  ;;  %4732 = vmatmul.mubr.bf16.gmra.mrb[100].mxu0 %v4185_v26  ;;  %vm3846_vm10 = vcmp.gt.f32.partialorder %v6390_v51, 0.0  ;;  %v2382_v26 = vadd.f32 %v8700_v18, %v9094_v8 }
 0x2b6   : > { %vm3849_vm11 = vcmp.gt.f32.partialorder %v6392_v5, 0.0  ;;  %v3977_v27 = vmul.f32 0.2, %v6392_v5  ;;  %v4101_v14 = vsel %vm3845_vm9, %v6388_v36, %v3973_v48 }
 0x2b7   : > { %vm3850_vm12 = vcmp.gt.f32.partialorder %v6394_v31, 0.0  ;;  %v3978_v15 = vmul.f32 0.2, %v6394_v31  ;;  %v4102_v13 = vsel %vm3846_vm10, %v6390_v51, %v3974_v56 }
 0x2b8   : > { %v4105_v53 = vsel %vm3849_vm11, %v6392_v5, %v3977_v27  ;;  %v2388_v5 = vadd.f32 %v8720_v46, %v9094_v8 }
 0x2b9   : > { %v2944_v12 = vpop.f32.mrb[44].mxu0  ;;  %v4106_v45 = vsel %vm3850_vm12, %v6394_v31, %v3978_v15  ;;  %v4189_v37 = vpack.c.bf16 %v4105_v53, %v4101_v14  ;;  %v2390_v15 = vadd.f32 %v8725_v47, %v9089_v1 }
 0x2ba   : > { %v6396_v42 = vadd.f32 %v2944_v12, %v2366_v39  ;;  %v2946_v11 = vpop.f32.mrb[45].mxu0  ;;  %v4190_v60 = vpack.c.bf16 %v4106_v45, %v4102_v13 }
 0x2bb   : > { %v6398_v32 = vadd.f32 %v2946_v11, %v2368_v19  ;;  %v2948_v16 = vpop.f32.mrb[46].mxu0  ;;  %v2392_v19 = vadd.f32 %v8730_v34, %v9094_v8  ;;  %v7539_v11 = vld [vmem:[%s9577_s5 + $0x40] sm:$0xff]  }
 0x2bc   : > { %v3981_v49 = vmul.f32 0.2, %v6396_v42  ;;  %v6400_v25 = vadd.f32 %v2948_v16, %v2370_v62  ;;  %v2950_v21 = vpop.f32.mrb[47].mxu0  ;;  %4741 = vmatprep.mubr.bf16.mxu0 %v4190_v60  ;;  %vm3853_vm13 = vcmp.gt.f32.partialorder %v6396_v42, 0.0  ;;  %v7540_v34 = vld [vmem:[%s9577_s5] sm:$0xff]   ;;  %6195 = vmatprep.subr.bf16.mxu1 %v7539_v11 }
 0x2bd   : > { %v3982_v55 = vmul.f32 0.2, %v6398_v32  ;;  %v6402_v63 = vadd.f32 %v2950_v21, %v2372_v61  ;;  %4742 = vmatmul.mubr.bf16.gmra.mrb[104].mxu0 %v4189_v37  ;;  %vm3854_vm14 = vcmp.gt.f32.partialorder %v6398_v32, 0.0  ;;  %v9587_v60 = vld [vmem:[#allocation2_spill] sm:$0xff]  ;;  %6196 = vmatpush3.bf16.msra.mxu1 %v7540_v34 }
 0x2be   : > { %vm3857_vm15 = vcmp.gt.f32.partialorder %v6400_v25, 0.0  ;;  %v3985_v40 = vmul.f32 0.2, %v6400_v25  ;;  %v4109_v22 = vsel %vm3853_vm13, %v6396_v42, %v3981_v49  ;;  %v2396_v61 = vadd.f32 %v9587_v60, %v9089_v1  ;;  %v9588_v49 = vld [vmem:[#allocation3_spill] sm:$0xff] }
 0x2bf   : > { %vm3858_vm1 = vcmp.gt.f32.partialorder %v6402_v63, 0.0  ;;  %v3986_v4 = vmul.f32 0.2, %v6402_v63  ;;  %v4110_v23 = vsel %vm3854_vm14, %v6398_v32, %v3982_v55 }
 0x2c0   : > { %v4113_v6 = vsel %vm3857_vm15, %v6400_v25, %v3985_v40  ;;  %v2398_v25 = vadd.f32 %v9588_v49, %v9094_v8 }
 0x2c1   : > { %v2954_v41 = vpop.f32.mrb[48].mxu0  ;;  %v4114_v29 = vsel %vm3858_vm1, %v6402_v63, %v3986_v4  ;;  %v4193_v43 = vpack.c.bf16 %v4113_v6, %v4109_v22  ;;  %v9589_v4 = vld [vmem:[#allocation4_spill] sm:$0xff] }
 0x2c2   : > { %v6404_v20 = vadd.f32 %v2954_v41, %v2376_v7  ;;  %v2956_v30 = vpop.f32.mrb[49].mxu0  ;;  %v4194_v33 = vpack.c.bf16 %v4114_v29, %v4110_v23  ;;  %v2400_v7 = vadd.f32 %v9589_v4, %v9089_v1  ;;  %v9590_v41 = vld [vmem:[#allocation5_spill] sm:$0xff] }
 0x2c3   : > { %v6406_v28 = vadd.f32 %v2956_v30, %v2378_v2  ;;  %v2958_v59 = vpop.f32.mrb[50].mxu0  ;;  %v2402_v23 = vadd.f32 %v9590_v41, %v9094_v8 }
 0x2c4   : > { %v3989_v36 = vmul.f32 0.2, %v6404_v20  ;;  %v6408_v35 = vadd.f32 %v2958_v59, %v2380_v3  ;;  %v2960_v9 = vpop.f32.mrb[51].mxu0  ;;  %4751 = vmatprep.mubr.bf16.mxu0 %v4194_v33  ;;  %vm3861_vm2 = vcmp.gt.f32.partialorder %v6404_v20, 0.0 }
 0x2c5   : > { %v3990_v52 = vmul.f32 0.2, %v6406_v28  ;;  %v6410_v54 = vadd.f32 %v2960_v9, %v2382_v26  ;;  %4752 = vmatmul.mubr.bf16.gmra.mrb[108].mxu0 %v4193_v43  ;;  %vm3862_vm3 = vcmp.gt.f32.partialorder %v6406_v28, 0.0 }
 0x2c6   : > { %vm3865_vm4 = vcmp.gt.f32.partialorder %v6408_v35, 0.0  ;;  %v3993_v51 = vmul.f32 0.2, %v6408_v35  ;;  %v4117_v48 = vsel %vm3861_vm2, %v6404_v20, %v3989_v36  ;;  %v2406_v36 = vadd.f32 %v8754_v38, %v9089_v1 }
 0x2c7   : > { %vm3866_vm5 = vcmp.gt.f32.partialorder %v6410_v54, 0.0  ;;  %v3994_v17 = vmul.f32 0.2, %v6410_v54  ;;  %v4118_v56 = vsel %vm3862_vm3, %v6406_v28, %v3990_v52  ;;  %v9591_v52 = vld [vmem:[#allocation6_spill] sm:$0xff] }
 0x2c8   : > { %v4121_v18 = vsel %vm3865_vm4, %v6408_v35, %v3993_v51 }
 0x2c9   : > { %v2964_v44 = vpop.f32.mrb[52].mxu0  ;;  %v4122_v31 = vsel %vm3866_vm5, %v6410_v54, %v3994_v17  ;;  %v4197_v27 = vpack.c.bf16 %v4121_v18, %v4117_v48  ;;  %v2408_v54 = vadd.f32 %v9591_v52, %v9094_v8  ;;  %v9592_v18 = vld [vmem:[#allocation7_spill] sm:$0xff] }
 0x2ca   : > { %v6412_v39 = vadd.f32 %v2964_v44, %v2386_v10  ;;  %v2966_v14 = vpop.f32.mrb[53].mxu0  ;;  %v4198_v53 = vpack.c.bf16 %v4122_v31, %v4118_v56 }
 0x2cb   : > { %v6414_v12 = vadd.f32 %v2966_v14, %v2388_v5  ;;  %v2968_v24 = vpop.f32.mrb[54].mxu0  ;;  %v2410_v5 = vadd.f32 %v9592_v18, %v9089_v1 }
 0x2cc   : > { %v3997_v13 = vmul.f32 0.2, %v6412_v39  ;;  %v6416_v45 = vadd.f32 %v2968_v24, %v2390_v15  ;;  %v2970_v37 = vpop.f32.mrb[55].mxu0  ;;  %4761 = vmatprep.mubr.bf16.mxu0 %v4198_v53  ;;  %vm3869_vm0 = vcmp.gt.f32.partialorder %v6412_v39, 0.0  ;;  %v9593_v15 = vld [vmem:[#allocation8_spill] sm:$0xff]  ;;  %v626_v53 = vsub.s32 3, %v9075_v57 }
 0x2cd   : > { %v3998_v46 = vmul.f32 0.2, %v6414_v12  ;;  %v6418_v62 = vadd.f32 %v2970_v37, %v2392_v19  ;;  %4762 = vmatmul.mubr.bf16.gmra.mrb[112].mxu0 %v4197_v27  ;;  %vm3870_vm6 = vcmp.gt.f32.partialorder %v6414_v12, 0.0  ;;  %v622_v27 = vsub.s32 2, %v9075_v57 }
 0x2ce   : > { %vm3873_vm7 = vcmp.gt.f32.partialorder %v6416_v45, 0.0  ;;  %v4001_v42 = vmul.f32 0.2, %v6416_v45  ;;  %v4125_v32 = vsel %vm3869_vm0, %v6412_v39, %v3997_v13  ;;  %v2412_v38 = vadd.f32 %v9593_v15, %v9094_v8  ;;  %v7550_v15 = vld [vmem:[%s9577_s5 + $0x28] sm:$0xff]  }
 0x2cf   : > { %vm3874_vm8 = vcmp.gt.f32.partialorder %v6418_v62, 0.0  ;;  %v4002_v47 = vmul.f32 0.2, %v6418_v62  ;;  %v4126_v55 = vsel %vm3870_vm6, %v6414_v12, %v3998_v46  ;;  %v9308_v37 = vrot.slane %v9081_v50, %v622_v27 }
 0x2d0   : > { %v4129_v16 = vsel %vm3873_vm7, %v6416_v45, %v4001_v42  ;;  %v9311_v46 = vrot.slane %v9081_v50, %v626_v53  ;;  %v7542_v42 = vld [vmem:[%s9577_s5 + $0x8] sm:$0xff]  }
 0x2d1   : > { %v2974_v21 = vpop.f32.mrb[56].mxu0  ;;  %v4130_v63 = vsel %vm3874_vm8, %v6418_v62, %v4002_v47  ;;  %v4201_v40 = vpack.c.bf16 %v4129_v16, %v4125_v32  ;;  %v7541_v62 = vld [vmem:[%s9577_s5 + $0x48] sm:$0xff]  }
 0x2d2   : > { %v6420_v22 = vadd.f32 %v2974_v21, %v2396_v61  ;;  %v2976_v6 = vpop.f32.mrb[57].mxu0  ;;  %v4202_v2 = vpack.c.bf16 %v4130_v63, %v4126_v55  ;;  %6197 = vmatprep.subr.bf16.mxu1 %v7541_v62 }
 0x2d3   : > { %v6422_v29 = vadd.f32 %v2976_v6, %v2398_v25  ;;  %v2978_v43 = vpop.f32.mrb[58].mxu0  ;;  %6198 = vmatpush3.bf16.msra.mxu1 %v7542_v42  ;;  %v7544_v6 = vld [vmem:[%s9577_s5 + $0x10] sm:$0xff]  }
 0x2d4   : > { %v4005_v3 = vmul.f32 0.2, %v6420_v22  ;;  %v6424_v20 = vadd.f32 %v2978_v43, %v2400_v7  ;;  %v2980_v30 = vpop.f32.mrb[59].mxu0  ;;  %4771 = vmatprep.mubr.bf16.mxu0 %v4202_v2  ;;  %vm3877_vm9 = vcmp.gt.f32.partialorder %v6420_v22, 0.0  ;;  %v7545_v2 = vld [vmem:[%s9577_s5 + $0x58] sm:$0xff]  }
 0x2d5   : > { %v4006_v33 = vmul.f32 0.2, %v6422_v29  ;;  %v6426_v26 = vadd.f32 %v2980_v30, %v2402_v23  ;;  %4772 = vmatmul.mubr.bf16.gmra.mrb[116].mxu0 %v4201_v40  ;;  %vm3878_vm10 = vcmp.gt.f32.partialorder %v6422_v29, 0.0 }
 0x2d6   : > { %vm3881_vm11 = vcmp.gt.f32.partialorder %v6424_v20, 0.0  ;;  %v4009_v28 = vmul.f32 0.2, %v6424_v20  ;;  %v4133_v35 = vsel %vm3877_vm9, %v6420_v22, %v4005_v3  ;;  %v7543_v22 = vld [vmem:[%s9577_s5 + $0x50] sm:$0xff]   ;;  %v7546_v3 = vld [vmem:[%s9577_s5 + $0x18] sm:$0xff]  }
 0x2d7   : > { %vm3882_vm12 = vcmp.gt.f32.partialorder %v6426_v26, 0.0  ;;  %v4010_v59 = vmul.f32 0.2, %v6426_v26  ;;  %v4134_v17 = vsel %vm3878_vm10, %v6422_v29, %v4006_v33  ;;  %6199 = vmatprep.subr.bf16.mxu1 %v7543_v22 }
 0x2d8   : > { %v4137_v9 = vsel %vm3881_vm11, %v6424_v20, %v4009_v28  ;;  %6200 = vmatpush3.bf16.msra.mxu1 %v7544_v6  ;;  %v7547_v28 = vld [vmem:[%s9577_s5 + $0x60] sm:$0xff]  }
 0x2d9   : > { %v2984_v51 = vpop.f32.mrb[60].mxu0  ;;  %v4138_v10 = vsel %vm3882_vm12, %v6426_v26, %v4010_v59  ;;  %v4205_v48 = vpack.c.bf16 %v4137_v9, %v4133_v35  ;;  %6201 = vmatprep.subr.bf16.mxu1 %v7545_v2 }
 0x2da   : > { %v6428_v44 = vadd.f32 %v2984_v51, %v2406_v36  ;;  %v2986_v56 = vpop.f32.mrb[61].mxu0  ;;  %v4206_v31 = vpack.c.bf16 %v4138_v10, %v4134_v17  ;;  %v7548_v10 = vld [vmem:[%s9577_s5 + $0x20] sm:$0xff]  }
 0x2db   : > { %v6430_v39 = vadd.f32 %v2986_v56, %v2408_v54  ;;  %v2988_v14 = vpop.f32.mrb[62].mxu0 }
 0x2dc   : > { %v4013_v19 = vmul.f32 0.2, %v6428_v44  ;;  %v6432_v12 = vadd.f32 %v2988_v14, %v2410_v5  ;;  %v2990_v24 = vpop.f32.mrb[63].mxu0  ;;  %4781 = vmatprep.mubr.bf16.mxu0 %v4206_v31  ;;  %vm3885_vm13 = vcmp.gt.f32.partialorder %v6428_v44, 0.0  ;;  %6202 = vmatpush3.bf16.msra.mxu1 %v7546_v3  ;;  %v7549_v5 = vld [vmem:[%s9577_s5 + $0x68] sm:$0xff]  }
 0x2dd   : > { %v4014_v13 = vmul.f32 0.2, %v6430_v39  ;;  %v6434_v45 = vadd.f32 %v2990_v24, %v2412_v38  ;;  %4782 = vmatmul.mubr.bf16.gmra.mrb[120].mxu0 %v4205_v48  ;;  %vm3886_vm14 = vcmp.gt.f32.partialorder %v6430_v39, 0.0  ;;  %6203 = vmatprep.subr.bf16.mxu1 %v7547_v28 }
 0x2de   : > { %vm3889_vm15 = vcmp.gt.f32.partialorder %v6432_v12, 0.0  ;;  %v4017_v1 = vmul.f32 0.2, %v6432_v12  ;;  %v4141_v47 = vsel %vm3885_vm13, %v6428_v44, %v4013_v19  ;;  %v7551_v19 = vld [vmem:[%s9577_s5 + $0x70] sm:$0xff]  }
 0x2df   : > { %vm3890_vm1 = vcmp.gt.f32.partialorder %v6434_v45, 0.0  ;;  %v4018_v8 = vmul.f32 0.2, %v6434_v45  ;;  %v4142_v60 = vsel %vm3886_vm14, %v6430_v39, %v4014_v13 }
 0x2e0   : > { %v4145_v11 = vsel %vm3889_vm15, %v6432_v12, %v4017_v1  ;;  %6204 = vmatpush3.bf16.msra.mxu1 %v7548_v10 }
 0x2e1   : > { %v3606_v34 = vpop.f32.mrb[32].mxu1  ;;  %v4146_v61 = vsel %vm3890_vm1, %v6434_v45, %v4018_v8  ;;  %v4209_v32 = vpack.c.bf16 %v4145_v11, %v4141_v47  ;;  %6205 = vmatprep.subr.bf16.mxu1 %v7549_v5  ;;  %v7552_v47 = vld [vmem:[%s9577_s5 + $0x30] sm:$0xff]  }
 0x2e2   : > { %v6435_v16 = vadd.f32 %v3606_v34, %v9308_v37  ;;  %v3608_v49 = vpop.f32.mrb[33].mxu1  ;;  %v4210_v50 = vpack.c.bf16 %v4146_v61, %v4142_v60  ;;  %v7553_v60 = vld [vmem:[%s9577_s5 + $0x78] sm:$0xff]  }
 0x2e3   : > { %v6436_v25 = vadd.f32 %v3608_v49, %v9311_v46  ;;  %v3610_v21 = vpop.f32.mrb[34].mxu1 }
 0x2e4   : > { %v3895_v55 = vmul.f32 0.2, %v6435_v16  ;;  %v6437_v63 = vadd.f32 %v3610_v21, %v9308_v37  ;;  %v3612_v40 = vpop.f32.mrb[35].mxu1  ;;  %4791 = vmatprep.mubr.bf16.mxu0 %v4210_v50  ;;  %vm3767_vm2 = vcmp.gt.f32.partialorder %v6435_v16, 0.0  ;;  %6206 = vmatpush3.bf16.msra.mxu1 %v7550_v15  ;;  %v7554_v50 = vld [vmem:[%s9577_s5 + $0x38] sm:$0xff]  }
 0x2e5   : > { %v3896_v4 = vmul.f32 0.2, %v6436_v25  ;;  %v6438_v7 = vadd.f32 %v3612_v40, %v9311_v46  ;;  %4792 = vmatmul.mubr.bf16.gmra.mrb[124].mxu0 %v4209_v32  ;;  %vm3768_vm3 = vcmp.gt.f32.partialorder %v6436_v25, 0.0  ;;  %6207 = vmatprep.subr.bf16.mxu1 %v7551_v19 }
 0x2e6   : > { %vm3771_vm4 = vcmp.gt.f32.partialorder %v6437_v63, 0.0  ;;  %v3899_v41 = vmul.f32 0.2, %v6437_v63  ;;  %v4023_v29 = vsel %vm3767_vm2, %v6435_v16, %v3895_v55 }
 0x2e7   : > { %vm3772_vm5 = vcmp.gt.f32.partialorder %v6438_v7, 0.0  ;;  %v3900_v23 = vmul.f32 0.2, %v6438_v7  ;;  %v4024_v33 = vsel %vm3768_vm3, %v6436_v25, %v3896_v4 }
 0x2e8   : > { %v4027_v43 = vsel %vm3771_vm4, %v6437_v63, %v3899_v41  ;;  %6208 = vmatpush3.bf16.msra.mxu1 %v7552_v47 }
 0x2e9   : > { %v4151_v20 = vpack.c.bf16 %v4027_v43, %v4023_v29  ;;  %v3616_v30 = vpop.f32.mrb[36].mxu1  ;;  %v4028_v26 = vsel %vm3772_vm5, %v6438_v7, %v3900_v23  ;;  %6209 = vmatprep.subr.bf16.mxu1 %v7553_v60 }
 0x2ea   : > { %v6439_v59 = vadd.f32 %v3616_v30, %v9308_v37  ;;  %v3618_v36 = vpop.f32.mrb[37].mxu1  ;;  %v4152_v35 = vpack.c.bf16 %v4028_v26, %v4024_v33 }
 0x2eb   : > { %v6440_v9 = vadd.f32 %v3618_v36, %v9311_v46  ;;  %v3620_v52 = vpop.f32.mrb[38].mxu1 }
 0x2ec   : > { %v3903_v54 = vmul.f32 0.2, %v6439_v59  ;;  %v6441_v51 = vadd.f32 %v3620_v52, %v9308_v37  ;;  %v3622_v17 = vpop.f32.mrb[39].mxu1  ;;  %4834 = vmatprep.mubr.bf16.mxu0 %v4152_v35  ;;  %vm3775_vm0 = vcmp.gt.f32.partialorder %v6439_v59, 0.0  ;;  %6210 = vmatpush3.bf16.msra.mxu1 %v7554_v50 }
 0x2ed   : > { %v3904_v48 = vmul.f32 0.2, %v6440_v9  ;;  %v6442_v18 = vadd.f32 %v3622_v17, %v9311_v46  ;;  %4835 = vmatmul.mubr.bf16.vlgmr.msra.gmra.mrb[64].mxu0 %v4151_v20  ;;  %vm3776_vm6 = vcmp.gt.f32.partialorder %v6440_v9, 0.0 }
 0x2ee   : > { %vm3779_vm7 = vcmp.gt.f32.partialorder %v6441_v51, 0.0  ;;  %v3907_v44 = vmul.f32 0.2, %v6441_v51  ;;  %v4031_v31 = vsel %vm3775_vm0, %v6439_v59, %v3903_v54 }
 0x2ef   : > { %vm3780_vm8 = vcmp.gt.f32.partialorder %v6442_v18, 0.0  ;;  %v3908_v56 = vmul.f32 0.2, %v6442_v18  ;;  %v4032_v39 = vsel %vm3776_vm6, %v6440_v9, %v3904_v48 }
 0x2f0   : > { %v4035_v27 = vsel %vm3779_vm7, %v6441_v51, %v3907_v44 }
 0x2f1   : > { %v3626_v38 = vpop.f32.mrb[40].mxu1  ;;  %v4036_v14 = vsel %vm3780_vm8, %v6442_v18, %v3908_v56  ;;  %v4155_v53 = vpack.c.bf16 %v4035_v27, %v4031_v31 }
 0x2f2   : > { %v6443_v12 = vadd.f32 %v3626_v38, %v9308_v37  ;;  %v3628_v24 = vpop.f32.mrb[41].mxu1  ;;  %v4156_v13 = vpack.c.bf16 %v4036_v14, %v4032_v39 }
 0x2f3   : > { %v6444_v45 = vadd.f32 %v3628_v24, %v9311_v46  ;;  %v3630_v1 = vpop.f32.mrb[42].mxu1 }
 0x2f4   : > { %v3911_v8 = vmul.f32 0.2, %v6443_v12  ;;  %v6445_v62 = vadd.f32 %v3630_v1, %v9308_v37  ;;  %v3632_v42 = vpop.f32.mrb[43].mxu1  ;;  %4844 = vmatprep.mubr.bf16.mxu0 %v4156_v13  ;;  %vm3783_vm9 = vcmp.gt.f32.partialorder %v6443_v12, 0.0 }
 0x2f5   : > { %v3912_v11 = vmul.f32 0.2, %v6444_v45  ;;  %v6446_v34 = vadd.f32 %v3632_v42, %v9311_v46  ;;  %4845 = vmatmul.mubr.bf16.gmra.mrb[68].mxu0 %v4155_v53  ;;  %vm3784_vm10 = vcmp.gt.f32.partialorder %v6444_v45, 0.0 }
 0x2f6   : > { %vm3787_vm11 = vcmp.gt.f32.partialorder %v6445_v62, 0.0  ;;  %v3915_v61 = vmul.f32 0.2, %v6445_v62  ;;  %v4039_v16 = vsel %vm3783_vm9, %v6443_v12, %v3911_v8 }
 0x2f7   : > { %vm3788_vm12 = vcmp.gt.f32.partialorder %v6446_v34, 0.0  ;;  %v3916_v32 = vmul.f32 0.2, %v6446_v34  ;;  %v4040_v21 = vsel %vm3784_vm10, %v6444_v45, %v3912_v11 }
 0x2f8   : > { %v4043_v49 = vsel %vm3787_vm11, %v6445_v62, %v3915_v61 }
 0x2f9   : > { %v3636_v25 = vpop.f32.mrb[44].mxu1  ;;  %v4044_v55 = vsel %vm3788_vm12, %v6446_v34, %v3916_v32  ;;  %v4159_v63 = vpack.c.bf16 %v4043_v49, %v4039_v16 }
 0x2fa   : > { %v6447_v40 = vadd.f32 %v3636_v25, %v9308_v37  ;;  %v3638_v4 = vpop.f32.mrb[45].mxu1  ;;  %v4160_v7 = vpack.c.bf16 %v4044_v55, %v4040_v21 }
 0x2fb   : > { %v6448_v22 = vadd.f32 %v3638_v4, %v9311_v46  ;;  %v3640_v6 = vpop.f32.mrb[46].mxu1 }
 0x2fc   : > { %v3919_v2 = vmul.f32 0.2, %v6447_v40  ;;  %v6449_v41 = vadd.f32 %v3640_v6, %v9308_v37  ;;  %v3642_v23 = vpop.f32.mrb[47].mxu1  ;;  %4854 = vmatprep.mubr.bf16.mxu0 %v4160_v7  ;;  %vm3791_vm13 = vcmp.gt.f32.partialorder %v6447_v40, 0.0 }
 0x2fd   : > { %v3920_v29 = vmul.f32 0.2, %v6448_v22  ;;  %v6450_v43 = vadd.f32 %v3642_v23, %v9311_v46  ;;  %4855 = vmatmul.mubr.bf16.gmra.mrb[72].mxu0 %v4159_v63  ;;  %vm3792_vm14 = vcmp.gt.f32.partialorder %v6448_v22, 0.0 }
 0x2fe   : > { %vm3795_vm15 = vcmp.gt.f32.partialorder %v6449_v41, 0.0  ;;  %v3923_v3 = vmul.f32 0.2, %v6449_v41  ;;  %v4047_v30 = vsel %vm3791_vm13, %v6447_v40, %v3919_v2 }
 0x2ff   : > { %vm3796_vm1 = vcmp.gt.f32.partialorder %v6450_v43, 0.0  ;;  %v3924_v20 = vmul.f32 0.2, %v6450_v43  ;;  %v4048_v28 = vsel %vm3792_vm14, %v6448_v22, %v3920_v29 }
 0x300   : > { %v4051_v33 = vsel %vm3795_vm15, %v6449_v41, %v3923_v3 }
 0x301   : > { %v3646_v26 = vpop.f32.mrb[48].mxu1  ;;  %v4052_v59 = vsel %vm3796_vm1, %v6450_v43, %v3924_v20  ;;  %v4163_v36 = vpack.c.bf16 %v4051_v33, %v4047_v30 }
 0x302   : > { %v6451_v35 = vadd.f32 %v3646_v26, %v9308_v37  ;;  %v3648_v9 = vpop.f32.mrb[49].mxu1  ;;  %v4164_v52 = vpack.c.bf16 %v4052_v59, %v4048_v28 }
 0x303   : > { %v6452_v54 = vadd.f32 %v3648_v9, %v9311_v46  ;;  %v3650_v51 = vpop.f32.mrb[50].mxu1 }
 0x304   : > { %v3927_v17 = vmul.f32 0.2, %v6451_v35  ;;  %v6453_v10 = vadd.f32 %v3650_v51, %v9308_v37  ;;  %v3652_v48 = vpop.f32.mrb[51].mxu1  ;;  %4864 = vmatprep.mubr.bf16.mxu0 %v4164_v52  ;;  %vm3799_vm2 = vcmp.gt.f32.partialorder %v6451_v35, 0.0 }
 0x305   : > { %v3928_v18 = vmul.f32 0.2, %v6452_v54  ;;  %v6454_v5 = vadd.f32 %v3652_v48, %v9311_v46  ;;  %4865 = vmatmul.mubr.bf16.gmra.mrb[76].mxu0 %v4163_v36  ;;  %vm3800_vm3 = vcmp.gt.f32.partialorder %v6452_v54, 0.0 }
 0x306   : > { %vm3803_vm4 = vcmp.gt.f32.partialorder %v6453_v10, 0.0  ;;  %v3931_v44 = vmul.f32 0.2, %v6453_v10  ;;  %v4055_v31 = vsel %vm3799_vm2, %v6451_v35, %v3927_v17 }
 0x307   : > { %vm3804_vm5 = vcmp.gt.f32.partialorder %v6454_v5, 0.0  ;;  %v3932_v56 = vmul.f32 0.2, %v6454_v5  ;;  %v4056_v38 = vsel %vm3800_vm3, %v6452_v54, %v3928_v18 }
 0x308   : > { %v4059_v27 = vsel %vm3803_vm4, %v6453_v10, %v3931_v44 }
 0x309   : > { %v3656_v15 = vpop.f32.mrb[52].mxu1  ;;  %v4060_v39 = vsel %vm3804_vm5, %v6454_v5, %v3932_v56  ;;  %v4167_v14 = vpack.c.bf16 %v4059_v27, %v4055_v31 }
 0x30a   : > { %v6455_v53 = vadd.f32 %v3656_v15, %v9308_v37  ;;  %v3658_v19 = vpop.f32.mrb[53].mxu1  ;;  %v4168_v12 = vpack.c.bf16 %v4060_v39, %v4056_v38 }
 0x30b   : > { %v6456_v24 = vadd.f32 %v3658_v19, %v9311_v46  ;;  %v3660_v13 = vpop.f32.mrb[54].mxu1 }
 0x30c   : > { %v3935_v45 = vmul.f32 0.2, %v6455_v53  ;;  %v6457_v1 = vadd.f32 %v3660_v13, %v9308_v37  ;;  %v3662_v8 = vpop.f32.mrb[55].mxu1  ;;  %4874 = vmatprep.mubr.bf16.mxu0 %v4168_v12  ;;  %vm3807_vm0 = vcmp.gt.f32.partialorder %v6455_v53, 0.0 }
 0x30d   : > { %v3936_v62 = vmul.f32 0.2, %v6456_v24  ;;  %v6458_v42 = vadd.f32 %v3662_v8, %v9311_v46  ;;  %4875 = vmatmul.mubr.bf16.gmra.mrb[80].mxu0 %v4167_v14  ;;  %vm3808_vm6 = vcmp.gt.f32.partialorder %v6456_v24, 0.0 }
 0x30e   : > { %vm3811_vm7 = vcmp.gt.f32.partialorder %v6457_v1, 0.0  ;;  %v3939_v47 = vmul.f32 0.2, %v6457_v1  ;;  %v4063_v34 = vsel %vm3807_vm0, %v6455_v53, %v3935_v45 }
 0x30f   : > { %vm3812_vm8 = vcmp.gt.f32.partialorder %v6458_v42, 0.0  ;;  %v3940_v11 = vmul.f32 0.2, %v6458_v42  ;;  %v4064_v32 = vsel %vm3808_vm6, %v6456_v24, %v3936_v62 }
 0x310   : > { %v4067_v60 = vsel %vm3811_vm7, %v6457_v1, %v3939_v47 }
 0x311   : > { %v3666_v61 = vpop.f32.mrb[56].mxu1  ;;  %v4068_v16 = vsel %vm3812_vm8, %v6458_v42, %v3940_v11  ;;  %v4171_v49 = vpack.c.bf16 %v4067_v60, %v4063_v34 }
 0x312   : > { %v6459_v50 = vadd.f32 %v3666_v61, %v9308_v37  ;;  %v3668_v25 = vpop.f32.mrb[57].mxu1  ;;  %v4172_v21 = vpack.c.bf16 %v4068_v16, %v4064_v32 }
 0x313   : > { %v6460_v55 = vadd.f32 %v3668_v25, %v9311_v46  ;;  %v3670_v63 = vpop.f32.mrb[58].mxu1 }
 0x314   : > { %v3943_v40 = vmul.f32 0.2, %v6459_v50  ;;  %v6461_v4 = vadd.f32 %v3670_v63, %v9308_v37  ;;  %v3672_v7 = vpop.f32.mrb[59].mxu1  ;;  %4884 = vmatprep.mubr.bf16.mxu0 %v4172_v21  ;;  %vm3815_vm9 = vcmp.gt.f32.partialorder %v6459_v50, 0.0 }
 0x315   : > { %v3944_v22 = vmul.f32 0.2, %v6460_v55  ;;  %v6462_v6 = vadd.f32 %v3672_v7, %v9311_v46  ;;  %4885 = vmatmul.mubr.bf16.gmra.mrb[84].mxu0 %v4171_v49  ;;  %vm3816_vm10 = vcmp.gt.f32.partialorder %v6460_v55, 0.0 }
 0x316   : > { %vm3819_vm11 = vcmp.gt.f32.partialorder %v6461_v4, 0.0  ;;  %v3947_v2 = vmul.f32 0.2, %v6461_v4  ;;  %v4071_v23 = vsel %vm3815_vm9, %v6459_v50, %v3943_v40 }
 0x317   : > { %vm3820_vm12 = vcmp.gt.f32.partialorder %v6462_v6, 0.0  ;;  %v3948_v41 = vmul.f32 0.2, %v6462_v6  ;;  %v4072_v3 = vsel %vm3816_vm10, %v6460_v55, %v3944_v22 }
 0x318   : > { %v4075_v29 = vsel %vm3819_vm11, %v6461_v4, %v3947_v2 }
 0x319   : > { %v3676_v43 = vpop.f32.mrb[60].mxu1  ;;  %v4076_v20 = vsel %vm3820_vm12, %v6462_v6, %v3948_v41  ;;  %v4175_v30 = vpack.c.bf16 %v4075_v29, %v4071_v23 }
 0x31a   : > { %v6463_v33 = vadd.f32 %v3676_v43, %v9308_v37  ;;  %v3678_v26 = vpop.f32.mrb[61].mxu1  ;;  %v4176_v28 = vpack.c.bf16 %v4076_v20, %v4072_v3 }
 0x31b   : > { %v6464_v59 = vadd.f32 %v3678_v26, %v9311_v46  ;;  %v3680_v36 = vpop.f32.mrb[62].mxu1 }
 0x31c   : > { %v3951_v35 = vmul.f32 0.2, %v6463_v33  ;;  %v6465_v9 = vadd.f32 %v3680_v36, %v9308_v37  ;;  %v3682_v52 = vpop.f32.mrb[63].mxu1  ;;  %4894 = vmatprep.mubr.bf16.mxu0 %v4176_v28  ;;  %vm3823_vm13 = vcmp.gt.f32.partialorder %v6463_v33, 0.0 }
 0x31d   : > { %v3952_v54 = vmul.f32 0.2, %v6464_v59  ;;  %v6466_v51 = vadd.f32 %v3682_v52, %v9311_v46  ;;  %4895 = vmatmul.mubr.bf16.gmra.mrb[88].mxu0 %v4175_v30  ;;  %vm3824_vm14 = vcmp.gt.f32.partialorder %v6464_v59, 0.0 }
 0x31e   : > { %vm3827_vm15 = vcmp.gt.f32.partialorder %v6465_v9, 0.0  ;;  %v3955_v17 = vmul.f32 0.2, %v6465_v9  ;;  %v4079_v48 = vsel %vm3823_vm13, %v6463_v33, %v3951_v35 }
 0x31f   : > { %vm3828_vm1 = vcmp.gt.f32.partialorder %v6466_v51, 0.0  ;;  %v3956_v10 = vmul.f32 0.2, %v6466_v51  ;;  %v4080_v44 = vsel %vm3824_vm14, %v6464_v59, %v3952_v54 }
 0x320   : > { %v4083_v18 = vsel %vm3827_vm15, %v6465_v9, %v3955_v17 }
 0x321   : > { %v3686_v5 = vpop.f32.mrb[64].mxu1  ;;  %v4084_v56 = vsel %vm3828_vm1, %v6466_v51, %v3956_v10  ;;  %v4179_v31 = vpack.c.bf16 %v4083_v18, %v4079_v48 }
 0x322   : > { %v6467_v27 = vadd.f32 %v3686_v5, %v9308_v37  ;;  %v3688_v15 = vpop.f32.mrb[65].mxu1  ;;  %v4180_v38 = vpack.c.bf16 %v4084_v56, %v4080_v44 }
 0x323   : > { %v6468_v39 = vadd.f32 %v3688_v15, %v9311_v46  ;;  %v3690_v14 = vpop.f32.mrb[66].mxu1 }
 0x324   : > { %v3959_v53 = vmul.f32 0.2, %v6467_v27  ;;  %v6469_v19 = vadd.f32 %v3690_v14, %v9308_v37  ;;  %v3692_v12 = vpop.f32.mrb[67].mxu1  ;;  %4904 = vmatprep.mubr.bf16.mxu0 %v4180_v38  ;;  %vm3831_vm2 = vcmp.gt.f32.partialorder %v6467_v27, 0.0 }
 0x325   : > { %v3960_v24 = vmul.f32 0.2, %v6468_v39  ;;  %v6470_v13 = vadd.f32 %v3692_v12, %v9311_v46  ;;  %4905 = vmatmul.mubr.bf16.gmra.mrb[92].mxu0 %v4179_v31  ;;  %vm3832_vm3 = vcmp.gt.f32.partialorder %v6468_v39, 0.0 }
 0x326   : > { %vm3835_vm4 = vcmp.gt.f32.partialorder %v6469_v19, 0.0  ;;  %v3963_v45 = vmul.f32 0.2, %v6469_v19  ;;  %v4087_v8 = vsel %vm3831_vm2, %v6467_v27, %v3959_v53 }
 0x327   : > { %vm3836_vm5 = vcmp.gt.f32.partialorder %v6470_v13, 0.0  ;;  %v3964_v1 = vmul.f32 0.2, %v6470_v13  ;;  %v4088_v47 = vsel %vm3832_vm3, %v6468_v39, %v3960_v24 }
 0x328   : > { %v4091_v62 = vsel %vm3835_vm4, %v6469_v19, %v3963_v45 }
 0x329   : > { %v3696_v42 = vpop.f32.mrb[68].mxu1  ;;  %v4092_v11 = vsel %vm3836_vm5, %v6470_v13, %v3964_v1  ;;  %v4183_v34 = vpack.c.bf16 %v4091_v62, %v4087_v8 }
 0x32a   : > { %v6471_v60 = vadd.f32 %v3696_v42, %v9308_v37  ;;  %v3698_v61 = vpop.f32.mrb[69].mxu1  ;;  %v4184_v32 = vpack.c.bf16 %v4092_v11, %v4088_v47 }
 0x32b   : > { %v6472_v16 = vadd.f32 %v3698_v61, %v9311_v46  ;;  %v3700_v49 = vpop.f32.mrb[70].mxu1 }
 0x32c   : > { %v3967_v50 = vmul.f32 0.2, %v6471_v60  ;;  %v6473_v25 = vadd.f32 %v3700_v49, %v9308_v37  ;;  %v3702_v21 = vpop.f32.mrb[71].mxu1  ;;  %4914 = vmatprep.mubr.bf16.mxu0 %v4184_v32  ;;  %vm3839_vm0 = vcmp.gt.f32.partialorder %v6471_v60, 0.0 }
 0x32d   : > { %v3968_v55 = vmul.f32 0.2, %v6472_v16  ;;  %v6474_v63 = vadd.f32 %v3702_v21, %v9311_v46  ;;  %4915 = vmatmul.mubr.bf16.gmra.mrb[96].mxu0 %v4183_v34  ;;  %vm3840_vm6 = vcmp.gt.f32.partialorder %v6472_v16, 0.0 }
 0x32e   : > { %vm3843_vm7 = vcmp.gt.f32.partialorder %v6473_v25, 0.0  ;;  %v3971_v40 = vmul.f32 0.2, %v6473_v25  ;;  %v4095_v7 = vsel %vm3839_vm0, %v6471_v60, %v3967_v50 }
 0x32f   : > { %vm3844_vm8 = vcmp.gt.f32.partialorder %v6474_v63, 0.0  ;;  %v3972_v4 = vmul.f32 0.2, %v6474_v63  ;;  %v4096_v2 = vsel %vm3840_vm6, %v6472_v16, %v3968_v55 }
 0x330   : > { %v4099_v22 = vsel %vm3843_vm7, %v6473_v25, %v3971_v40 }
 0x331   : > { %v3706_v6 = vpop.f32.mrb[72].mxu1  ;;  %v4100_v41 = vsel %vm3844_vm8, %v6474_v63, %v3972_v4  ;;  %v4187_v23 = vpack.c.bf16 %v4099_v22, %v4095_v7 }
 0x332   : > { %v6475_v29 = vadd.f32 %v3706_v6, %v9308_v37  ;;  %v3708_v43 = vpop.f32.mrb[73].mxu1  ;;  %v4188_v3 = vpack.c.bf16 %v4100_v41, %v4096_v2 }
 0x333   : > { %v6476_v20 = vadd.f32 %v3708_v43, %v9311_v46  ;;  %v3710_v30 = vpop.f32.mrb[74].mxu1 }
 0x334   : > { %v3975_v33 = vmul.f32 0.2, %v6475_v29  ;;  %v6477_v26 = vadd.f32 %v3710_v30, %v9308_v37  ;;  %v3712_v28 = vpop.f32.mrb[75].mxu1  ;;  %4924 = vmatprep.mubr.bf16.mxu0 %v4188_v3  ;;  %vm3847_vm9 = vcmp.gt.f32.partialorder %v6475_v29, 0.0 }
 0x335   : > { %v3976_v59 = vmul.f32 0.2, %v6476_v20  ;;  %v6478_v36 = vadd.f32 %v3712_v28, %v9311_v46  ;;  %4925 = vmatmul.mubr.bf16.gmra.mrb[100].mxu0 %v4187_v23  ;;  %vm3848_vm10 = vcmp.gt.f32.partialorder %v6476_v20, 0.0 }
 0x336   : > { %vm3851_vm11 = vcmp.gt.f32.partialorder %v6477_v26, 0.0  ;;  %v3979_v35 = vmul.f32 0.2, %v6477_v26  ;;  %v4103_v52 = vsel %vm3847_vm9, %v6475_v29, %v3975_v33 }
 0x337   : > { %vm3852_vm12 = vcmp.gt.f32.partialorder %v6478_v36, 0.0  ;;  %v3980_v9 = vmul.f32 0.2, %v6478_v36  ;;  %v4104_v17 = vsel %vm3848_vm10, %v6476_v20, %v3976_v59 }
 0x338   : > { %v4107_v54 = vsel %vm3851_vm11, %v6477_v26, %v3979_v35 }
 0x339   : > { %v3716_v51 = vpop.f32.mrb[76].mxu1  ;;  %v4108_v10 = vsel %vm3852_vm12, %v6478_v36, %v3980_v9  ;;  %v4191_v48 = vpack.c.bf16 %v4107_v54, %v4103_v52 }
 0x33a   : > { %v6479_v18 = vadd.f32 %v3716_v51, %v9308_v37  ;;  %v3718_v5 = vpop.f32.mrb[77].mxu1  ;;  %v4192_v44 = vpack.c.bf16 %v4108_v10, %v4104_v17 }
 0x33b   : > { %v6480_v56 = vadd.f32 %v3718_v5, %v9311_v46  ;;  %v3720_v31 = vpop.f32.mrb[78].mxu1 }
 0x33c   : > { %v3983_v27 = vmul.f32 0.2, %v6479_v18  ;;  %v6481_v15 = vadd.f32 %v3720_v31, %v9308_v37  ;;  %v3722_v38 = vpop.f32.mrb[79].mxu1  ;;  %4934 = vmatprep.mubr.bf16.mxu0 %v4192_v44  ;;  %vm3855_vm13 = vcmp.gt.f32.partialorder %v6479_v18, 0.0 }
 0x33d   : > { %v3984_v39 = vmul.f32 0.2, %v6480_v56  ;;  %v6482_v14 = vadd.f32 %v3722_v38, %v9311_v46  ;;  %4935 = vmatmul.mubr.bf16.gmra.mrb[104].mxu0 %v4191_v48  ;;  %vm3856_vm14 = vcmp.gt.f32.partialorder %v6480_v56, 0.0 }
 0x33e   : > { %vm3859_vm15 = vcmp.gt.f32.partialorder %v6481_v15, 0.0  ;;  %v3987_v53 = vmul.f32 0.2, %v6481_v15  ;;  %v4111_v12 = vsel %vm3855_vm13, %v6479_v18, %v3983_v27 }
 0x33f   : > { %vm3860_vm1 = vcmp.gt.f32.partialorder %v6482_v14, 0.0  ;;  %v3988_v19 = vmul.f32 0.2, %v6482_v14  ;;  %v4112_v45 = vsel %vm3856_vm14, %v6480_v56, %v3984_v39 }
 0x340   : > { %v4115_v24 = vsel %vm3859_vm15, %v6481_v15, %v3987_v53 }
 0x341   : > { %v3726_v13 = vpop.f32.mrb[80].mxu1  ;;  %v4116_v1 = vsel %vm3860_vm1, %v6482_v14, %v3988_v19  ;;  %v4195_v8 = vpack.c.bf16 %v4115_v24, %v4111_v12 }
 0x342   : > { %v6483_v62 = vadd.f32 %v3726_v13, %v9308_v37  ;;  %v3728_v42 = vpop.f32.mrb[81].mxu1  ;;  %v4196_v47 = vpack.c.bf16 %v4116_v1, %v4112_v45 }
 0x343   : > { %v6484_v11 = vadd.f32 %v3728_v42, %v9311_v46  ;;  %v3730_v34 = vpop.f32.mrb[82].mxu1 }
 0x344   : > { %v3991_v60 = vmul.f32 0.2, %v6483_v62  ;;  %v6485_v61 = vadd.f32 %v3730_v34, %v9308_v37  ;;  %v3732_v32 = vpop.f32.mrb[83].mxu1  ;;  %4944 = vmatprep.mubr.bf16.mxu0 %v4196_v47  ;;  %vm3863_vm2 = vcmp.gt.f32.partialorder %v6483_v62, 0.0 }
 0x345   : > { %v3992_v16 = vmul.f32 0.2, %v6484_v11  ;;  %v6486_v49 = vadd.f32 %v3732_v32, %v9311_v46  ;;  %4945 = vmatmul.mubr.bf16.gmra.mrb[108].mxu0 %v4195_v8  ;;  %vm3864_vm3 = vcmp.gt.f32.partialorder %v6484_v11, 0.0 }
 0x346   : > { %vm3867_vm4 = vcmp.gt.f32.partialorder %v6485_v61, 0.0  ;;  %v3995_v50 = vmul.f32 0.2, %v6485_v61  ;;  %v4119_v21 = vsel %vm3863_vm2, %v6483_v62, %v3991_v60 }
 0x347   : > { %vm3868_vm5 = vcmp.gt.f32.partialorder %v6486_v49, 0.0  ;;  %v3996_v25 = vmul.f32 0.2, %v6486_v49  ;;  %v4120_v40 = vsel %vm3864_vm3, %v6484_v11, %v3992_v16 }
 0x348   : > { %v4123_v55 = vsel %vm3867_vm4, %v6485_v61, %v3995_v50 }
 0x349   : > { %v3736_v63 = vpop.f32.mrb[84].mxu1  ;;  %v4124_v4 = vsel %vm3868_vm5, %v6486_v49, %v3996_v25  ;;  %v4199_v7 = vpack.c.bf16 %v4123_v55, %v4119_v21 }
 0x34a   : > { %v6487_v22 = vadd.f32 %v3736_v63, %v9308_v37  ;;  %v3738_v6 = vpop.f32.mrb[85].mxu1  ;;  %v4200_v2 = vpack.c.bf16 %v4124_v4, %v4120_v40 }
 0x34b   : > { %v6488_v41 = vadd.f32 %v3738_v6, %v9311_v46  ;;  %v3740_v23 = vpop.f32.mrb[86].mxu1 }
 0x34c   : > { %v3999_v29 = vmul.f32 0.2, %v6487_v22  ;;  %v6489_v43 = vadd.f32 %v3740_v23, %v9308_v37  ;;  %v3742_v3 = vpop.f32.mrb[87].mxu1  ;;  %4954 = vmatprep.mubr.bf16.mxu0 %v4200_v2  ;;  %vm3871_vm0 = vcmp.gt.f32.partialorder %v6487_v22, 0.0 }
 0x34d   : > { %v4000_v20 = vmul.f32 0.2, %v6488_v41  ;;  %v6490_v30 = vadd.f32 %v3742_v3, %v9311_v46  ;;  %4955 = vmatmul.mubr.bf16.gmra.mrb[112].mxu0 %v4199_v7  ;;  %vm3872_vm6 = vcmp.gt.f32.partialorder %v6488_v41, 0.0 }
 0x34e   : > { %vm3875_vm7 = vcmp.gt.f32.partialorder %v6489_v43, 0.0  ;;  %v4003_v33 = vmul.f32 0.2, %v6489_v43  ;;  %v4127_v28 = vsel %vm3871_vm0, %v6487_v22, %v3999_v29 }
 0x34f   : > { %vm3876_vm8 = vcmp.gt.f32.partialorder %v6490_v30, 0.0  ;;  %v4004_v26 = vmul.f32 0.2, %v6490_v30  ;;  %v4128_v35 = vsel %vm3872_vm6, %v6488_v41, %v4000_v20 }
 0x350   : > { %v4131_v59 = vsel %vm3875_vm7, %v6489_v43, %v4003_v33 }
 0x351   : > { %v3746_v36 = vpop.f32.mrb[88].mxu1  ;;  %v4132_v9 = vsel %vm3876_vm8, %v6490_v30, %v4004_v26  ;;  %v4203_v52 = vpack.c.bf16 %v4131_v59, %v4127_v28 }
 0x352   : > { %v6491_v54 = vadd.f32 %v3746_v36, %v9308_v37  ;;  %v3748_v51 = vpop.f32.mrb[89].mxu1  ;;  %v4204_v17 = vpack.c.bf16 %v4132_v9, %v4128_v35 }
 0x353   : > { %v6492_v10 = vadd.f32 %v3748_v51, %v9311_v46  ;;  %v3750_v48 = vpop.f32.mrb[90].mxu1 }
 0x354   : > { %v4007_v18 = vmul.f32 0.2, %v6491_v54  ;;  %v6493_v5 = vadd.f32 %v3750_v48, %v9308_v37  ;;  %v3752_v44 = vpop.f32.mrb[91].mxu1  ;;  %4964 = vmatprep.mubr.bf16.mxu0 %v4204_v17  ;;  %vm3879_vm9 = vcmp.gt.f32.partialorder %v6491_v54, 0.0 }
 0x355   : > { %v4008_v56 = vmul.f32 0.2, %v6492_v10  ;;  %v6494_v31 = vadd.f32 %v3752_v44, %v9311_v46  ;;  %4965 = vmatmul.mubr.bf16.gmra.mrb[116].mxu0 %v4203_v52  ;;  %vm3880_vm10 = vcmp.gt.f32.partialorder %v6492_v10, 0.0 }
 0x356   : > { %vm3883_vm11 = vcmp.gt.f32.partialorder %v6493_v5, 0.0  ;;  %v4011_v27 = vmul.f32 0.2, %v6493_v5  ;;  %v4135_v38 = vsel %vm3879_vm9, %v6491_v54, %v4007_v18 }
 0x357   : > { %vm3884_vm12 = vcmp.gt.f32.partialorder %v6494_v31, 0.0  ;;  %v4012_v15 = vmul.f32 0.2, %v6494_v31  ;;  %v4136_v53 = vsel %vm3880_vm10, %v6492_v10, %v4008_v56 }
 0x358   : > { %v4139_v39 = vsel %vm3883_vm11, %v6493_v5, %v4011_v27 }
 0x359   : > { %v3756_v14 = vpop.f32.mrb[92].mxu1  ;;  %v4140_v19 = vsel %vm3884_vm12, %v6494_v31, %v4012_v15  ;;  %v4207_v12 = vpack.c.bf16 %v4139_v39, %v4135_v38 }
 0x35a   : > { %v6495_v24 = vadd.f32 %v3756_v14, %v9308_v37  ;;  %v3758_v13 = vpop.f32.mrb[93].mxu1  ;;  %v4208_v45 = vpack.c.bf16 %v4140_v19, %v4136_v53 }
 0x35b   : > { %v6496_v1 = vadd.f32 %v3758_v13, %v9311_v46  ;;  %v3760_v8 = vpop.f32.mrb[94].mxu1 }
 0x35c   : > { %v4015_v62 = vmul.f32 0.2, %v6495_v24  ;;  %v6497_v42 = vadd.f32 %v3760_v8, %v9308_v37  ;;  %v3762_v47 = vpop.f32.mrb[95].mxu1  ;;  %4974 = vmatprep.mubr.bf16.mxu0 %v4208_v45  ;;  %vm3887_vm13 = vcmp.gt.f32.partialorder %v6495_v24, 0.0  ;;  %v4277_v37 = vld [vmem:[%s9576_s4] sm:$0x3] }
 0x35d   : > { %v4016_v11 = vmul.f32 0.2, %v6496_v1  ;;  %v6498_v34 = vadd.f32 %v3762_v47, %v9311_v46  ;;  %4975 = vmatmul.mubr.bf16.gmra.mrb[120].mxu0 %v4207_v12  ;;  %vm3888_vm14 = vcmp.gt.f32.partialorder %v6496_v1, 0.0  ;;  %v9424_v46 = vrot.slane %v4277_v37, %v614_v58 }
 0x35e   : > { %vm3891_vm15 = vcmp.gt.f32.partialorder %v6497_v42, 0.0  ;;  %v4019_v60 = vmul.f32 0.2, %v6497_v42  ;;  %v4143_v32 = vsel %vm3887_vm13, %v6495_v24, %v4015_v62  ;;  %v9428_v55 = vrot.slane %v4277_v37, %v618_v0 }
 0x35f   : > { %vm3892_vm1 = vcmp.gt.f32.partialorder %v6498_v34, 0.0  ;;  %v4020_v61 = vmul.f32 0.2, %v6498_v34  ;;  %v4144_v49 = vsel %vm3888_vm14, %v6496_v1, %v4016_v11 }
 0x360   : > { %v4147_v16 = vsel %vm3891_vm15, %v6497_v42, %v4019_v60 }
 0x361   : > { %v4148_v50 = vsel %vm3892_vm1, %v6498_v34, %v4020_v61  ;;  %v4211_v25 = vpack.c.bf16 %v4147_v16, %v4143_v32 }
 0x362   : > { %v4212_v21 = vpack.c.bf16 %v4148_v50, %v4144_v49 }
 0x364   : > { %4984 = vmatprep.mubr.bf16.mxu0 %v4212_v21 }
 0x365   : > { %4985 = vmatmul.mubr.bf16.gmra.mrb[124].mxu0 %v4211_v25 }
 0x3c0   : > { %v4836_v63 = vpop.f32.mrb[64].mxu0 }
 0x3c1   : > { %v6499_v40 = vadd.f32 %v4836_v63, %v9424_v46  ;;  %v4838_v4 = vpop.f32.mrb[65].mxu0 }
 0x3c2   : > { %v6500_v7 = vadd.f32 %v4838_v4, %v9428_v55  ;;  %v4840_v22 = vpop.f32.mrb[66].mxu0 }
 0x3c3   : > { %v5059_v6 = vmul.f32 0.2, %v6499_v40  ;;  %v6501_v2 = vadd.f32 %v4840_v22, %v9424_v46  ;;  %v4842_v41 = vpop.f32.mrb[67].mxu0  ;;  %vm4995_vm2 = vcmp.gt.f32.partialorder %v6499_v40, 0.0 }
 0x3c4   : > { %v5060_v23 = vmul.f32 0.2, %v6500_v7  ;;  %v6502_v58 = vadd.f32 %v4842_v41, %v9428_v55  ;;  %vm4996_vm3 = vcmp.gt.f32.partialorder %v6500_v7, 0.0 }
 0x3c5   : > { %vm4997_vm4 = vcmp.gt.f32.partialorder %v6501_v2, 0.0  ;;  %v5061_v57 = vmul.f32 0.2, %v6501_v2  ;;  %v5123_v29 = vsel %vm4995_vm2, %v6499_v40, %v5059_v6 }
 0x3c6   : > { %vm4998_vm5 = vcmp.gt.f32.partialorder %v6502_v58, 0.0  ;;  %v5062_v0 = vmul.f32 0.2, %v6502_v58  ;;  %v5124_v30 = vsel %vm4996_vm3, %v6500_v7, %v5060_v23 }
 0x3c7   : > { %v5125_v43 = vsel %vm4997_vm4, %v6501_v2, %v5061_v57 }
 0x3c8   : > { %v5187_v3 = vpack.c.bf16 %v5125_v43, %v5123_v29  ;;  %v4846_v20 = vpop.f32.mrb[68].mxu0  ;;  %v5126_v33 = vsel %vm4998_vm5, %v6502_v58, %v5062_v0 }
 0x3c9   : > { %v6503_v26 = vadd.f32 %v4846_v20, %v9424_v46  ;;  %v4848_v28 = vpop.f32.mrb[69].mxu0  ;;  %v5188_v59 = vpack.c.bf16 %v5126_v33, %v5124_v30 }
 0x3ca   : > { %v6504_v36 = vadd.f32 %v4848_v28, %v9428_v55  ;;  %v4850_v35 = vpop.f32.mrb[70].mxu0 }
 0x3cb   : > { %v5063_v9 = vmul.f32 0.2, %v6503_v26  ;;  %v6505_v52 = vadd.f32 %v4850_v35, %v9424_v46  ;;  %v4852_v54 = vpop.f32.mrb[71].mxu0  ;;  %5386 = vmatprep.mubr.bf16.mxu1 %v5188_v59  ;;  %vm4999_vm0 = vcmp.gt.f32.partialorder %v6503_v26, 0.0 }
 0x3cc   : > { %v5064_v51 = vmul.f32 0.2, %v6504_v36  ;;  %v6506_v17 = vadd.f32 %v4852_v54, %v9428_v55  ;;  %5387 = vmatmul.mubr.bf16.vlgmr.msra.gmra.mrb[96].mxu1 %v5187_v3  ;;  %vm5000_vm6 = vcmp.gt.f32.partialorder %v6504_v36, 0.0 }
 0x3cd   : > { %vm5001_vm7 = vcmp.gt.f32.partialorder %v6505_v52, 0.0  ;;  %v5065_v10 = vmul.f32 0.2, %v6505_v52  ;;  %v5127_v18 = vsel %vm4999_vm0, %v6503_v26, %v5063_v9 }
 0x3ce   : > { %vm5002_vm8 = vcmp.gt.f32.partialorder %v6506_v17, 0.0  ;;  %v5066_v48 = vmul.f32 0.2, %v6506_v17  ;;  %v5128_v56 = vsel %vm5000_vm6, %v6504_v36, %v5064_v51 }
 0x3cf   : > { %v5129_v5 = vsel %vm5001_vm7, %v6505_v52, %v5065_v10 }
 0x3d0   : > { %v4856_v44 = vpop.f32.mrb[72].mxu0  ;;  %v5130_v31 = vsel %vm5002_vm8, %v6506_v17, %v5066_v48  ;;  %v5189_v27 = vpack.c.bf16 %v5129_v5, %v5127_v18 }
 0x3d1   : > { %v6507_v15 = vadd.f32 %v4856_v44, %v9424_v46  ;;  %v4858_v38 = vpop.f32.mrb[73].mxu0  ;;  %v5190_v39 = vpack.c.bf16 %v5130_v31, %v5128_v56 }
 0x3d2   : > { %v6508_v14 = vadd.f32 %v4858_v38, %v9428_v55  ;;  %v4860_v53 = vpop.f32.mrb[74].mxu0 }
 0x3d3   : > { %v5067_v19 = vmul.f32 0.2, %v6507_v15  ;;  %v6509_v12 = vadd.f32 %v4860_v53, %v9424_v46  ;;  %v4862_v24 = vpop.f32.mrb[75].mxu0  ;;  %5394 = vmatprep.mubr.bf16.mxu1 %v5190_v39  ;;  %vm5003_vm9 = vcmp.gt.f32.partialorder %v6507_v15, 0.0 }
 0x3d4   : > { %v5068_v13 = vmul.f32 0.2, %v6508_v14  ;;  %v6510_v45 = vadd.f32 %v4862_v24, %v9428_v55  ;;  %5395 = vmatmul.mubr.bf16.gmra.mrb[100].mxu1 %v5189_v27  ;;  %vm5004_vm10 = vcmp.gt.f32.partialorder %v6508_v14, 0.0 }
 0x3d5   : > { %vm5005_vm11 = vcmp.gt.f32.partialorder %v6509_v12, 0.0  ;;  %v5069_v1 = vmul.f32 0.2, %v6509_v12  ;;  %v5131_v62 = vsel %vm5003_vm9, %v6507_v15, %v5067_v19 }
 0x3d6   : > { %vm5006_vm12 = vcmp.gt.f32.partialorder %v6510_v45, 0.0  ;;  %v5070_v8 = vmul.f32 0.2, %v6510_v45  ;;  %v5132_v11 = vsel %vm5004_vm10, %v6508_v14, %v5068_v13 }
 0x3d7   : > { %v5133_v42 = vsel %vm5005_vm11, %v6509_v12, %v5069_v1 }
 0x3d8   : > { %v4866_v47 = vpop.f32.mrb[76].mxu0  ;;  %v5134_v34 = vsel %vm5006_vm12, %v6510_v45, %v5070_v8  ;;  %v5191_v60 = vpack.c.bf16 %v5133_v42, %v5131_v62 }
 0x3d9   : > { %v6511_v61 = vadd.f32 %v4866_v47, %v9424_v46  ;;  %v4868_v32 = vpop.f32.mrb[77].mxu0  ;;  %v5192_v16 = vpack.c.bf16 %v5134_v34, %v5132_v11 }
 0x3da   : > { %v6512_v49 = vadd.f32 %v4868_v32, %v9428_v55  ;;  %v4870_v50 = vpop.f32.mrb[78].mxu0 }
 0x3db   : > { %v5071_v25 = vmul.f32 0.2, %v6511_v61  ;;  %v6513_v21 = vadd.f32 %v4870_v50, %v9424_v46  ;;  %v4872_v37 = vpop.f32.mrb[79].mxu0  ;;  %5402 = vmatprep.mubr.bf16.mxu1 %v5192_v16  ;;  %vm5007_vm13 = vcmp.gt.f32.partialorder %v6511_v61, 0.0 }
 0x3dc   : > { %v5072_v63 = vmul.f32 0.2, %v6512_v49  ;;  %v6514_v40 = vadd.f32 %v4872_v37, %v9428_v55  ;;  %5403 = vmatmul.mubr.bf16.gmra.mrb[104].mxu1 %v5191_v60  ;;  %vm5008_vm14 = vcmp.gt.f32.partialorder %v6512_v49, 0.0 }
 0x3dd   : > { %vm5009_vm15 = vcmp.gt.f32.partialorder %v6513_v21, 0.0  ;;  %v5073_v4 = vmul.f32 0.2, %v6513_v21  ;;  %v5135_v22 = vsel %vm5007_vm13, %v6511_v61, %v5071_v25 }
 0x3de   : > { %vm5010_vm1 = vcmp.gt.f32.partialorder %v6514_v40, 0.0  ;;  %v5074_v7 = vmul.f32 0.2, %v6514_v40  ;;  %v5136_v41 = vsel %vm5008_vm14, %v6512_v49, %v5072_v63 }
 0x3df   : > { %v5137_v6 = vsel %vm5009_vm15, %v6513_v21, %v5073_v4 }
 0x3e0   : > { %v4876_v2 = vpop.f32.mrb[80].mxu0  ;;  %v5138_v23 = vsel %vm5010_vm1, %v6514_v40, %v5074_v7  ;;  %v5193_v58 = vpack.c.bf16 %v5137_v6, %v5135_v22 }
 0x3e1   : > { %v6515_v57 = vadd.f32 %v4876_v2, %v9424_v46  ;;  %v4878_v0 = vpop.f32.mrb[81].mxu0  ;;  %v5194_v29 = vpack.c.bf16 %v5138_v23, %v5136_v41 }
 0x3e2   : > { %v6516_v43 = vadd.f32 %v4878_v0, %v9428_v55  ;;  %v4880_v3 = vpop.f32.mrb[82].mxu0 }
 0x3e3   : > { %v5075_v20 = vmul.f32 0.2, %v6515_v57  ;;  %v6517_v30 = vadd.f32 %v4880_v3, %v9424_v46  ;;  %v4882_v33 = vpop.f32.mrb[83].mxu0  ;;  %5410 = vmatprep.mubr.bf16.mxu1 %v5194_v29  ;;  %vm5011_vm2 = vcmp.gt.f32.partialorder %v6515_v57, 0.0 }
 0x3e4   : > { %v5076_v26 = vmul.f32 0.2, %v6516_v43  ;;  %v6518_v28 = vadd.f32 %v4882_v33, %v9428_v55  ;;  %5411 = vmatmul.mubr.bf16.gmra.mrb[108].mxu1 %v5193_v58  ;;  %vm5012_vm3 = vcmp.gt.f32.partialorder %v6516_v43, 0.0 }
 0x3e5   : > { %vm5013_vm4 = vcmp.gt.f32.partialorder %v6517_v30, 0.0  ;;  %v5077_v59 = vmul.f32 0.2, %v6517_v30  ;;  %v5139_v35 = vsel %vm5011_vm2, %v6515_v57, %v5075_v20 }
 0x3e6   : > { %vm5014_vm5 = vcmp.gt.f32.partialorder %v6518_v28, 0.0  ;;  %v5078_v36 = vmul.f32 0.2, %v6518_v28  ;;  %v5140_v54 = vsel %vm5012_vm3, %v6516_v43, %v5076_v26 }
 0x3e7   : > { %v5141_v9 = vsel %vm5013_vm4, %v6517_v30, %v5077_v59 }
 0x3e8   : > { %v4886_v52 = vpop.f32.mrb[84].mxu0  ;;  %v5142_v51 = vsel %vm5014_vm5, %v6518_v28, %v5078_v36  ;;  %v5195_v17 = vpack.c.bf16 %v5141_v9, %v5139_v35 }
 0x3e9   : > { %v6519_v10 = vadd.f32 %v4886_v52, %v9424_v46  ;;  %v4888_v48 = vpop.f32.mrb[85].mxu0  ;;  %v5196_v18 = vpack.c.bf16 %v5142_v51, %v5140_v54 }
 0x3ea   : > { %v6520_v5 = vadd.f32 %v4888_v48, %v9428_v55  ;;  %v4890_v44 = vpop.f32.mrb[86].mxu0 }
 0x3eb   : > { %v5079_v56 = vmul.f32 0.2, %v6519_v10  ;;  %v6521_v31 = vadd.f32 %v4890_v44, %v9424_v46  ;;  %v4892_v27 = vpop.f32.mrb[87].mxu0  ;;  %5418 = vmatprep.mubr.bf16.mxu1 %v5196_v18  ;;  %vm5015_vm0 = vcmp.gt.f32.partialorder %v6519_v10, 0.0 }
 0x3ec   : > { %v5080_v15 = vmul.f32 0.2, %v6520_v5  ;;  %v6522_v38 = vadd.f32 %v4892_v27, %v9428_v55  ;;  %5419 = vmatmul.mubr.bf16.gmra.mrb[112].mxu1 %v5195_v17  ;;  %vm5016_vm6 = vcmp.gt.f32.partialorder %v6520_v5, 0.0 }
 0x3ed   : > { %vm5017_vm7 = vcmp.gt.f32.partialorder %v6521_v31, 0.0  ;;  %v5081_v39 = vmul.f32 0.2, %v6521_v31  ;;  %v5143_v53 = vsel %vm5015_vm0, %v6519_v10, %v5079_v56 }
 0x3ee   : > { %vm5018_vm8 = vcmp.gt.f32.partialorder %v6522_v38, 0.0  ;;  %v5082_v14 = vmul.f32 0.2, %v6522_v38  ;;  %v5144_v24 = vsel %vm5016_vm6, %v6520_v5, %v5080_v15 }
 0x3ef   : > { %v5145_v19 = vsel %vm5017_vm7, %v6521_v31, %v5081_v39 }
 0x3f0   : > { %v4896_v12 = vpop.f32.mrb[88].mxu0  ;;  %v5146_v13 = vsel %vm5018_vm8, %v6522_v38, %v5082_v14  ;;  %v5197_v45 = vpack.c.bf16 %v5145_v19, %v5143_v53 }
 0x3f1   : > { %v6523_v1 = vadd.f32 %v4896_v12, %v9424_v46  ;;  %v4898_v8 = vpop.f32.mrb[89].mxu0  ;;  %v5198_v62 = vpack.c.bf16 %v5146_v13, %v5144_v24 }
 0x3f2   : > { %v6524_v42 = vadd.f32 %v4898_v8, %v9428_v55  ;;  %v4900_v47 = vpop.f32.mrb[90].mxu0 }
 0x3f3   : > { %v5083_v11 = vmul.f32 0.2, %v6523_v1  ;;  %v6525_v34 = vadd.f32 %v4900_v47, %v9424_v46  ;;  %v4902_v60 = vpop.f32.mrb[91].mxu0  ;;  %5426 = vmatprep.mubr.bf16.mxu1 %v5198_v62  ;;  %vm5019_vm9 = vcmp.gt.f32.partialorder %v6523_v1, 0.0 }
 0x3f4   : > { %v5084_v61 = vmul.f32 0.2, %v6524_v42  ;;  %v6526_v32 = vadd.f32 %v4902_v60, %v9428_v55  ;;  %5427 = vmatmul.mubr.bf16.gmra.mrb[116].mxu1 %v5197_v45  ;;  %vm5020_vm10 = vcmp.gt.f32.partialorder %v6524_v42, 0.0 }
 0x3f5   : > { %vm5021_vm11 = vcmp.gt.f32.partialorder %v6525_v34, 0.0  ;;  %v5085_v16 = vmul.f32 0.2, %v6525_v34  ;;  %v5147_v50 = vsel %vm5019_vm9, %v6523_v1, %v5083_v11 }
 0x3f6   : > { %vm5022_vm12 = vcmp.gt.f32.partialorder %v6526_v32, 0.0  ;;  %v5086_v49 = vmul.f32 0.2, %v6526_v32  ;;  %v5148_v37 = vsel %vm5020_vm10, %v6524_v42, %v5084_v61 }
 0x3f7   : > { %v5149_v25 = vsel %vm5021_vm11, %v6525_v34, %v5085_v16 }
 0x3f8   : > { %v4906_v21 = vpop.f32.mrb[92].mxu0  ;;  %v5150_v63 = vsel %vm5022_vm12, %v6526_v32, %v5086_v49  ;;  %v5199_v40 = vpack.c.bf16 %v5149_v25, %v5147_v50 }
 0x3f9   : > { %v6527_v4 = vadd.f32 %v4906_v21, %v9424_v46  ;;  %v4908_v7 = vpop.f32.mrb[93].mxu0  ;;  %v5200_v22 = vpack.c.bf16 %v5150_v63, %v5148_v37 }
 0x3fa   : > { %v6528_v6 = vadd.f32 %v4908_v7, %v9428_v55  ;;  %v4910_v2 = vpop.f32.mrb[94].mxu0 }
 0x3fb   : > { %v5087_v41 = vmul.f32 0.2, %v6527_v4  ;;  %v6529_v23 = vadd.f32 %v4910_v2, %v9424_v46  ;;  %v4912_v58 = vpop.f32.mrb[95].mxu0  ;;  %5434 = vmatprep.mubr.bf16.mxu1 %v5200_v22  ;;  %vm5023_vm13 = vcmp.gt.f32.partialorder %v6527_v4, 0.0 }
 0x3fc   : > { %v5088_v57 = vmul.f32 0.2, %v6528_v6  ;;  %v6530_v0 = vadd.f32 %v4912_v58, %v9428_v55  ;;  %5435 = vmatmul.mubr.bf16.gmra.mrb[120].mxu1 %v5199_v40  ;;  %vm5024_vm14 = vcmp.gt.f32.partialorder %v6528_v6, 0.0 }
 0x3fd   : > { %vm5025_vm15 = vcmp.gt.f32.partialorder %v6529_v23, 0.0  ;;  %v5089_v29 = vmul.f32 0.2, %v6529_v23  ;;  %v5151_v3 = vsel %vm5023_vm13, %v6527_v4, %v5087_v41 }
 0x3fe   : > { %vm5026_vm1 = vcmp.gt.f32.partialorder %v6530_v0, 0.0  ;;  %v5090_v43 = vmul.f32 0.2, %v6530_v0  ;;  %v5152_v33 = vsel %vm5024_vm14, %v6528_v6, %v5088_v57 }
 0x3ff   : > { %v5153_v20 = vsel %vm5025_vm15, %v6529_v23, %v5089_v29 }
 0x400   : > { %v4916_v30 = vpop.f32.mrb[96].mxu0  ;;  %v5154_v26 = vsel %vm5026_vm1, %v6530_v0, %v5090_v43  ;;  %v5201_v28 = vpack.c.bf16 %v5153_v20, %v5151_v3 }
 0x401   : > { %v6531_v59 = vadd.f32 %v4916_v30, %v9424_v46  ;;  %v4918_v36 = vpop.f32.mrb[97].mxu0  ;;  %v5202_v35 = vpack.c.bf16 %v5154_v26, %v5152_v33 }
 0x402   : > { %v6532_v9 = vadd.f32 %v4918_v36, %v9428_v55  ;;  %v4920_v52 = vpop.f32.mrb[98].mxu0 }
 0x403   : > { %v5091_v54 = vmul.f32 0.2, %v6531_v59  ;;  %v6533_v51 = vadd.f32 %v4920_v52, %v9424_v46  ;;  %v4922_v17 = vpop.f32.mrb[99].mxu0  ;;  %5442 = vmatprep.mubr.bf16.mxu1 %v5202_v35  ;;  %vm5027_vm2 = vcmp.gt.f32.partialorder %v6531_v59, 0.0 }
 0x404   : > { %v5092_v10 = vmul.f32 0.2, %v6532_v9  ;;  %v6534_v48 = vadd.f32 %v4922_v17, %v9428_v55  ;;  %5443 = vmatmul.mubr.bf16.gmra.mrb[124].mxu1 %v5201_v28  ;;  %vm5028_vm3 = vcmp.gt.f32.partialorder %v6532_v9, 0.0 }
 0x405   : > { %vm5029_vm4 = vcmp.gt.f32.partialorder %v6533_v51, 0.0  ;;  %v5093_v18 = vmul.f32 0.2, %v6533_v51  ;;  %v5155_v44 = vsel %vm5027_vm2, %v6531_v59, %v5091_v54 }
 0x406   : > { %vm5030_vm5 = vcmp.gt.f32.partialorder %v6534_v48, 0.0  ;;  %v5094_v5 = vmul.f32 0.2, %v6534_v48  ;;  %v5156_v27 = vsel %vm5028_vm3, %v6532_v9, %v5092_v10 }
 0x407   : > { %v5157_v56 = vsel %vm5029_vm4, %v6533_v51, %v5093_v18 }
 0x408   : > { %v4926_v31 = vpop.f32.mrb[100].mxu0  ;;  %v5158_v15 = vsel %vm5030_vm5, %v6534_v48, %v5094_v5  ;;  %v5203_v38 = vpack.c.bf16 %v5157_v56, %v5155_v44 }
 0x409   : > { %v6535_v39 = vadd.f32 %v4926_v31, %v9424_v46  ;;  %v4928_v14 = vpop.f32.mrb[101].mxu0  ;;  %v5204_v53 = vpack.c.bf16 %v5158_v15, %v5156_v27 }
 0x40a   : > { %v6536_v19 = vadd.f32 %v4928_v14, %v9428_v55  ;;  %v4930_v12 = vpop.f32.mrb[102].mxu0 }
 0x40b   : > { %v5095_v24 = vmul.f32 0.2, %v6535_v39  ;;  %v6537_v13 = vadd.f32 %v4930_v12, %v9424_v46  ;;  %v4932_v45 = vpop.f32.mrb[103].mxu0  ;;  %5450 = vmatprep.mubr.bf16.mxu1 %v5204_v53  ;;  %vm5031_vm0 = vcmp.gt.f32.partialorder %v6535_v39, 0.0 }
 0x40c   : > { %v5096_v1 = vmul.f32 0.2, %v6536_v19  ;;  %v6538_v8 = vadd.f32 %v4932_v45, %v9428_v55  ;;  %5451 = vmatmul.mubr.bf16.gmra.mrb[128].mxu1 %v5203_v38  ;;  %vm5032_vm6 = vcmp.gt.f32.partialorder %v6536_v19, 0.0 }
 0x40d   : > { %vm5033_vm7 = vcmp.gt.f32.partialorder %v6537_v13, 0.0  ;;  %v5097_v62 = vmul.f32 0.2, %v6537_v13  ;;  %v5159_v47 = vsel %vm5031_vm0, %v6535_v39, %v5095_v24 }
 0x40e   : > { %vm5034_vm8 = vcmp.gt.f32.partialorder %v6538_v8, 0.0  ;;  %v5098_v42 = vmul.f32 0.2, %v6538_v8  ;;  %v5160_v60 = vsel %vm5032_vm6, %v6536_v19, %v5096_v1 }
 0x40f   : > { %v5161_v11 = vsel %vm5033_vm7, %v6537_v13, %v5097_v62 }
 0x410   : > { %v4936_v34 = vpop.f32.mrb[104].mxu0  ;;  %v5162_v61 = vsel %vm5034_vm8, %v6538_v8, %v5098_v42  ;;  %v5205_v32 = vpack.c.bf16 %v5161_v11, %v5159_v47 }
 0x411   : > { %v6539_v16 = vadd.f32 %v4936_v34, %v9424_v46  ;;  %v4938_v49 = vpop.f32.mrb[105].mxu0  ;;  %v5206_v50 = vpack.c.bf16 %v5162_v61, %v5160_v60 }
 0x412   : > { %v6540_v25 = vadd.f32 %v4938_v49, %v9428_v55  ;;  %v4940_v21 = vpop.f32.mrb[106].mxu0 }
 0x413   : > { %v5099_v37 = vmul.f32 0.2, %v6539_v16  ;;  %v6541_v63 = vadd.f32 %v4940_v21, %v9424_v46  ;;  %v4942_v40 = vpop.f32.mrb[107].mxu0  ;;  %5458 = vmatprep.mubr.bf16.mxu1 %v5206_v50  ;;  %vm5035_vm9 = vcmp.gt.f32.partialorder %v6539_v16, 0.0 }
 0x414   : > { %v5100_v4 = vmul.f32 0.2, %v6540_v25  ;;  %v6542_v7 = vadd.f32 %v4942_v40, %v9428_v55  ;;  %5459 = vmatmul.mubr.bf16.gmra.mrb[132].mxu1 %v5205_v32  ;;  %vm5036_vm10 = vcmp.gt.f32.partialorder %v6540_v25, 0.0 }
 0x415   : > { %vm5037_vm11 = vcmp.gt.f32.partialorder %v6541_v63, 0.0  ;;  %v5101_v22 = vmul.f32 0.2, %v6541_v63  ;;  %v5163_v2 = vsel %vm5035_vm9, %v6539_v16, %v5099_v37 }
 0x416   : > { %vm5038_vm12 = vcmp.gt.f32.partialorder %v6542_v7, 0.0  ;;  %v5102_v6 = vmul.f32 0.2, %v6542_v7  ;;  %v5164_v58 = vsel %vm5036_vm10, %v6540_v25, %v5100_v4 }
 0x417   : > { %v5165_v41 = vsel %vm5037_vm11, %v6541_v63, %v5101_v22 }
 0x418   : > { %v4946_v23 = vpop.f32.mrb[108].mxu0  ;;  %v5166_v57 = vsel %vm5038_vm12, %v6542_v7, %v5102_v6  ;;  %v5207_v0 = vpack.c.bf16 %v5165_v41, %v5163_v2 }
 0x419   : > { %v6543_v29 = vadd.f32 %v4946_v23, %v9424_v46  ;;  %v4948_v43 = vpop.f32.mrb[109].mxu0  ;;  %v5208_v3 = vpack.c.bf16 %v5166_v57, %v5164_v58 }
 0x41a   : > { %v6544_v20 = vadd.f32 %v4948_v43, %v9428_v55  ;;  %v4950_v30 = vpop.f32.mrb[110].mxu0 }
 0x41b   : > { %v5103_v33 = vmul.f32 0.2, %v6543_v29  ;;  %v6545_v26 = vadd.f32 %v4950_v30, %v9424_v46  ;;  %v4952_v28 = vpop.f32.mrb[111].mxu0  ;;  %5466 = vmatprep.mubr.bf16.mxu1 %v5208_v3  ;;  %vm5039_vm13 = vcmp.gt.f32.partialorder %v6543_v29, 0.0 }
 0x41c   : > { %v5104_v59 = vmul.f32 0.2, %v6544_v20  ;;  %v6546_v36 = vadd.f32 %v4952_v28, %v9428_v55  ;;  %5467 = vmatmul.mubr.bf16.gmra.mrb[136].mxu1 %v5207_v0  ;;  %vm5040_vm14 = vcmp.gt.f32.partialorder %v6544_v20, 0.0 }
 0x41d   : > { %vm5041_vm15 = vcmp.gt.f32.partialorder %v6545_v26, 0.0  ;;  %v5105_v35 = vmul.f32 0.2, %v6545_v26  ;;  %v5167_v52 = vsel %vm5039_vm13, %v6543_v29, %v5103_v33 }
 0x41e   : > { %vm5042_vm1 = vcmp.gt.f32.partialorder %v6546_v36, 0.0  ;;  %v5106_v9 = vmul.f32 0.2, %v6546_v36  ;;  %v5168_v17 = vsel %vm5040_vm14, %v6544_v20, %v5104_v59 }
 0x41f   : > { %v5169_v54 = vsel %vm5041_vm15, %v6545_v26, %v5105_v35 }
 0x420   : > { %v4956_v51 = vpop.f32.mrb[112].mxu0  ;;  %v5170_v10 = vsel %vm5042_vm1, %v6546_v36, %v5106_v9  ;;  %v5209_v48 = vpack.c.bf16 %v5169_v54, %v5167_v52 }
 0x421   : > { %v6547_v18 = vadd.f32 %v4956_v51, %v9424_v46  ;;  %v4958_v5 = vpop.f32.mrb[113].mxu0  ;;  %v5210_v44 = vpack.c.bf16 %v5170_v10, %v5168_v17 }
 0x422   : > { %v6548_v56 = vadd.f32 %v4958_v5, %v9428_v55  ;;  %v4960_v31 = vpop.f32.mrb[114].mxu0 }
 0x423   : > { %v5107_v27 = vmul.f32 0.2, %v6547_v18  ;;  %v6549_v15 = vadd.f32 %v4960_v31, %v9424_v46  ;;  %v4962_v38 = vpop.f32.mrb[115].mxu0  ;;  %5474 = vmatprep.mubr.bf16.mxu1 %v5210_v44  ;;  %vm5043_vm2 = vcmp.gt.f32.partialorder %v6547_v18, 0.0 }
 0x424   : > { %v5108_v39 = vmul.f32 0.2, %v6548_v56  ;;  %v6550_v14 = vadd.f32 %v4962_v38, %v9428_v55  ;;  %5475 = vmatmul.mubr.bf16.gmra.mrb[140].mxu1 %v5209_v48  ;;  %vm5044_vm3 = vcmp.gt.f32.partialorder %v6548_v56, 0.0 }
 0x425   : > { %vm5045_vm4 = vcmp.gt.f32.partialorder %v6549_v15, 0.0  ;;  %v5109_v53 = vmul.f32 0.2, %v6549_v15  ;;  %v5171_v12 = vsel %vm5043_vm2, %v6547_v18, %v5107_v27 }
 0x426   : > { %vm5046_vm5 = vcmp.gt.f32.partialorder %v6550_v14, 0.0  ;;  %v5110_v19 = vmul.f32 0.2, %v6550_v14  ;;  %v5172_v45 = vsel %vm5044_vm3, %v6548_v56, %v5108_v39 }
 0x427   : > { %v5173_v24 = vsel %vm5045_vm4, %v6549_v15, %v5109_v53  ;;  %v9497_v53 = vld [vmem:[%s9578_s6] ss:$0 sm:$0xff] }
 0x428   : > { %v4966_v13 = vpop.f32.mrb[116].mxu0  ;;  %v5174_v1 = vsel %vm5046_vm5, %v6550_v14, %v5110_v19  ;;  %v5211_v8 = vpack.c.bf16 %v5173_v24, %v5171_v12 }
 0x429   : > { %v6551_v62 = vadd.f32 %v4966_v13, %v9424_v46  ;;  %v4968_v42 = vpop.f32.mrb[117].mxu0  ;;  %v5212_v47 = vpack.c.bf16 %v5174_v1, %v5172_v45 }
 0x42a   : > { %v6552_v11 = vadd.f32 %v4968_v42, %v9428_v55  ;;  %v4970_v34 = vpop.f32.mrb[118].mxu0 }
 0x42b   : > { %v5111_v60 = vmul.f32 0.2, %v6551_v62  ;;  %v6553_v61 = vadd.f32 %v4970_v34, %v9424_v46  ;;  %v4972_v32 = vpop.f32.mrb[119].mxu0  ;;  %5482 = vmatprep.mubr.bf16.mxu1 %v5212_v47  ;;  %vm5047_vm0 = vcmp.gt.f32.partialorder %v6551_v62, 0.0 }
 0x42c   : > { %v5112_v16 = vmul.f32 0.2, %v6552_v11  ;;  %v6554_v49 = vadd.f32 %v4972_v32, %v9428_v55  ;;  %5483 = vmatmul.mubr.bf16.gmra.mrb[144].mxu1 %v5211_v8  ;;  %vm5048_vm6 = vcmp.gt.f32.partialorder %v6552_v11, 0.0 }
 0x42d   : > { %vm5049_vm7 = vcmp.gt.f32.partialorder %v6553_v61, 0.0  ;;  %v5113_v50 = vmul.f32 0.2, %v6553_v61  ;;  %v5175_v21 = vsel %vm5047_vm0, %v6551_v62, %v5111_v60 }
 0x42e   : > { %vm5050_vm8 = vcmp.gt.f32.partialorder %v6554_v49, 0.0  ;;  %v5114_v25 = vmul.f32 0.2, %v6554_v49  ;;  %v5176_v40 = vsel %vm5048_vm6, %v6552_v11, %v5112_v16 }
 0x42f   : > { %v5177_v37 = vsel %vm5049_vm7, %v6553_v61, %v5113_v50 }
 0x430   : > { %v4976_v63 = vpop.f32.mrb[120].mxu0  ;;  %v5178_v4 = vsel %vm5050_vm8, %v6554_v49, %v5114_v25  ;;  %v5213_v7 = vpack.c.bf16 %v5177_v37, %v5175_v21 }
 0x431   : > { %v6555_v22 = vadd.f32 %v4976_v63, %v9424_v46  ;;  %v4978_v6 = vpop.f32.mrb[121].mxu0  ;;  %v5214_v2 = vpack.c.bf16 %v5178_v4, %v5176_v40 }
 0x432   : > { %v6556_v41 = vadd.f32 %v4978_v6, %v9428_v55  ;;  %v4980_v23 = vpop.f32.mrb[122].mxu0 }
 0x433   : > { %v5115_v58 = vmul.f32 0.2, %v6555_v22  ;;  %v6557_v57 = vadd.f32 %v4980_v23, %v9424_v46  ;;  %v4982_v0 = vpop.f32.mrb[123].mxu0  ;;  %5490 = vmatprep.mubr.bf16.mxu1 %v5214_v2  ;;  %vm5051_vm9 = vcmp.gt.f32.partialorder %v6555_v22, 0.0 }
 0x434   : > { %v5116_v29 = vmul.f32 0.2, %v6556_v41  ;;  %v6558_v43 = vadd.f32 %v4982_v0, %v9428_v55  ;;  %5491 = vmatmul.mubr.bf16.gmra.mrb[148].mxu1 %v5213_v7  ;;  %vm5052_vm10 = vcmp.gt.f32.partialorder %v6556_v41, 0.0 }
 0x435   : > { %vm5053_vm11 = vcmp.gt.f32.partialorder %v6557_v57, 0.0  ;;  %v5117_v3 = vmul.f32 0.2, %v6557_v57  ;;  %v5179_v30 = vsel %vm5051_vm9, %v6555_v22, %v5115_v58 }
 0x436   : > { %vm5054_vm12 = vcmp.gt.f32.partialorder %v6558_v43, 0.0  ;;  %v5118_v20 = vmul.f32 0.2, %v6558_v43  ;;  %v5180_v28 = vsel %vm5052_vm10, %v6556_v41, %v5116_v29 }
 0x437   : > { %v5181_v33 = vsel %vm5053_vm11, %v6557_v57, %v5117_v3 }
 0x438   : > { %v4986_v26 = vpop.f32.mrb[124].mxu0  ;;  %v5182_v59 = vsel %vm5054_vm12, %v6558_v43, %v5118_v20  ;;  %v5215_v36 = vpack.c.bf16 %v5181_v33, %v5179_v30 }
 0x439   : > { %v6559_v35 = vadd.f32 %v4986_v26, %v9424_v46  ;;  %v4988_v9 = vpop.f32.mrb[125].mxu0  ;;  %v5216_v52 = vpack.c.bf16 %v5182_v59, %v5180_v28 }
 0x43a   : > { %v6560_v54 = vadd.f32 %v4988_v9, %v9428_v55  ;;  %v4990_v51 = vpop.f32.mrb[126].mxu0 }
 0x43b   : > { %v5119_v17 = vmul.f32 0.2, %v6559_v35  ;;  %v6561_v10 = vadd.f32 %v4990_v51, %v9424_v46  ;;  %v4992_v48 = vpop.f32.mrb[127].mxu0  ;;  %5498 = vmatprep.mubr.bf16.mxu1 %v5216_v52  ;;  %vm5055_vm13 = vcmp.gt.f32.partialorder %v6559_v35, 0.0 }
 0x43c   : > { %v5120_v18 = vmul.f32 0.2, %v6560_v54  ;;  %v6562_v5 = vadd.f32 %v4992_v48, %v9428_v55  ;;  %5499 = vmatmul.mubr.bf16.gmra.mrb[152].mxu1 %v5215_v36  ;;  %vm5056_vm14 = vcmp.gt.f32.partialorder %v6560_v54, 0.0 }
 0x43d   : > { %vm5057_vm15 = vcmp.gt.f32.partialorder %v6561_v10, 0.0  ;;  %v5121_v44 = vmul.f32 0.2, %v6561_v10  ;;  %v5183_v31 = vsel %vm5055_vm13, %v6559_v35, %v5119_v17 }
 0x43e   : > { %vm5058_vm1 = vcmp.gt.f32.partialorder %v6562_v5, 0.0  ;;  %v5122_v56 = vmul.f32 0.2, %v6562_v5  ;;  %v5184_v15 = vsel %vm5056_vm14, %v6560_v54, %v5120_v18 }
 0x43f   : > { %v5185_v27 = vsel %vm5057_vm15, %v6561_v10, %v5121_v44 }
 0x440   : > { %v5186_v38 = vsel %vm5058_vm1, %v6562_v5, %v5122_v56  ;;  %v5217_v39 = vpack.c.bf16 %v5185_v27, %v5183_v31 }
 0x441   : > { %v5218_v14 = vpack.c.bf16 %v5186_v38, %v5184_v15 }
 0x443   : > { %5506 = vmatprep.mubr.bf16.mxu1 %v5218_v14 }
 0x444   : > { %5507 = vmatmul.mubr.bf16.gmra.mrb[156].mxu1 %v5217_v39 }
 0x49f   : > { %v6211_v46 = vpop.f32.mrb[96].mxu1 }
 0x4a0   : > { %v6212_v55 = vpop.f32.mrb[97].mxu1 }
 0x4a1   : > { %v6213_v19 = vadd.f32 %v6212_v55, %v6211_v46  ;;  %v6214_v12 = vpop.f32.mrb[98].mxu1 }
 0x4a2   : > { %v6215_v24 = vpop.f32.mrb[99].mxu1 }
 0x4a3   : > { %v5389_v13 = vadd.f32 %v6213_v19, %v9497_v53  ;;  %v6216_v45 = vadd.f32 %v6215_v24, %v6214_v12 }
 0x4a5   : > { %v5515_v1 = vsub.f32 0.0, %v5389_v13  ;;  %v5392_v8 = vadd.f32 %v6216_v45, %v9497_v53 }
 0x4a7   : > { %v5547_v62 = vmul.f32 1.442695, %v5515_v1  ;;  %v5516_v42 = vsub.f32 0.0, %v5392_v8  ;;  %v6217_v47 = vpop.f32.mrb[100].mxu1 }
 0x4a8   : > { %v6218_v11 = vpop.f32.mrb[101].mxu1 }
 0x4a9   : > { %7555 = vpow2.f32 %v5547_v62  ;;  %v5549_v34 = vmul.f32 1.442695, %v5516_v42  ;;  %v6219_v60 = vadd.f32 %v6218_v11, %v6217_v47  ;;  %v6220_v61 = vpop.f32.mrb[102].mxu1 }
 0x4aa   : > { %v6221_v32 = vpop.f32.mrb[103].mxu1 }
 0x4ab   : > { %7557 = vpow2.f32 %v5549_v34  ;;  %v5397_v16 = vadd.f32 %v6219_v60, %v9497_v53  ;;  %v6222_v49 = vadd.f32 %v6221_v32, %v6220_v61 }
 0x4ad   : > { %v5517_v50 = vsub.f32 0.0, %v5397_v16  ;;  %v5400_v25 = vadd.f32 %v6222_v49, %v9497_v53 }
 0x4af   : > { %v5551_v21 = vmul.f32 1.442695, %v5517_v50  ;;  %v5518_v37 = vsub.f32 0.0, %v5400_v25  ;;  %v6223_v63 = vpop.f32.mrb[104].mxu1 }
 0x4b0   : > { %v6224_v40 = vpop.f32.mrb[105].mxu1 }
 0x4b1   : > { %7559 = vpow2.f32 %v5551_v21  ;;  %v5553_v4 = vmul.f32 1.442695, %v5518_v37  ;;  %v6225_v7 = vadd.f32 %v6224_v40, %v6223_v63  ;;  %v6226_v22 = vpop.f32.mrb[106].mxu1 }
 0x4b2   : > { %v6227_v6 = vpop.f32.mrb[107].mxu1 }
 0x4b3   : > { %v7556_v2 = vpop.eup %7555  ;;  %7561 = vpow2.f32 %v5553_v4  ;;  %v5405_v41 = vadd.f32 %v6225_v7, %v9497_v53  ;;  %v6228_v23 = vadd.f32 %v6227_v6, %v6226_v22 }
 0x4b4   : > { %v5611_v58 = vadd.f32 1.0, %v7556_v2 }
 0x4b5   : > { %v7558_v57 = vpop.eup %7557  ;;  %v5519_v0 = vsub.f32 0.0, %v5405_v41  ;;  %v5408_v29 = vadd.f32 %v6228_v23, %v9497_v53 }
 0x4b6   : > { %7563 = vrcp.f32 %v5611_v58  ;;  %v5612_v43 = vadd.f32 1.0, %v7558_v57 }
 0x4b7   : > { %v5555_v3 = vmul.f32 1.442695, %v5519_v0  ;;  %v5520_v20 = vsub.f32 0.0, %v5408_v29  ;;  %v6229_v30 = vpop.f32.mrb[108].mxu1 }
 0x4b8   : > { %7565 = vrcp.f32 %v5612_v43  ;;  %v6230_v33 = vpop.f32.mrb[109].mxu1 }
 0x4b9   : > { %7567 = vpow2.f32 %v5555_v3  ;;  %v5557_v26 = vmul.f32 1.442695, %v5520_v20  ;;  %v6231_v28 = vadd.f32 %v6230_v33, %v6229_v30  ;;  %v6232_v59 = vpop.f32.mrb[110].mxu1 }
 0x4ba   : > { %v6233_v36 = vpop.f32.mrb[111].mxu1 }
 0x4bb   : > { %v7560_v35 = vpop.eup %7559  ;;  %7569 = vpow2.f32 %v5557_v26  ;;  %v5413_v9 = vadd.f32 %v6231_v28, %v9497_v53  ;;  %v6234_v52 = vadd.f32 %v6233_v36, %v6232_v59 }
 0x4bc   : > { %v5613_v54 = vadd.f32 1.0, %v7560_v35 }
 0x4bd   : > { %v7562_v51 = vpop.eup %7561  ;;  %v5521_v17 = vsub.f32 0.0, %v5413_v9  ;;  %v5416_v10 = vadd.f32 %v6234_v52, %v9497_v53 }
 0x4be   : > { %7571 = vrcp.f32 %v5613_v54  ;;  %v5614_v48 = vadd.f32 1.0, %v7562_v51 }
 0x4bf   : > { %v5559_v18 = vmul.f32 1.442695, %v5521_v17  ;;  %v5522_v5 = vsub.f32 0.0, %v5416_v10  ;;  %v6235_v44 = vpop.f32.mrb[112].mxu1 }
 0x4c0   : > { %v7564_v56 = vpop.eup %7563  ;;  %7573 = vrcp.f32 %v5614_v48  ;;  %v6236_v31 = vpop.f32.mrb[113].mxu1 }
 0x4c1   : > { %5675 = vst [vmem:[%s9511_s23] sm:$0xff] %v7564_v56  ;;  %7575 = vpow2.f32 %v5559_v18  ;;  %v5561_v27 = vmul.f32 1.442695, %v5522_v5  ;;  %v6237_v15 = vadd.f32 %v6236_v31, %v6235_v44  ;;  %v6238_v38 = vpop.f32.mrb[114].mxu1 }
 0x4c2   : > { %v7566_v39 = vpop.eup %7565  ;;  %v6239_v14 = vpop.f32.mrb[115].mxu1 }
 0x4c3   : > { %v7568_v46 = vpop.eup %7567  ;;  %5676 = vst [vmem:[%s9511_s23 + $0x8] sm:$0xff] %v7566_v39  ;;  %7577 = vpow2.f32 %v5561_v27  ;;  %v5421_v55 = vadd.f32 %v6237_v15, %v9497_v53  ;;  %v6240_v19 = vadd.f32 %v6239_v14, %v6238_v38 }
 0x4c4   : > { %v5615_v12 = vadd.f32 1.0, %v7568_v46 }
 0x4c5   : > { %v7570_v24 = vpop.eup %7569  ;;  %v5523_v13 = vsub.f32 0.0, %v5421_v55  ;;  %v5424_v45 = vadd.f32 %v6240_v19, %v9497_v53 }
 0x4c6   : > { %7579 = vrcp.f32 %v5615_v12  ;;  %v5616_v1 = vadd.f32 1.0, %v7570_v24 }
 0x4c7   : > { %v5563_v8 = vmul.f32 1.442695, %v5523_v13  ;;  %v5524_v62 = vsub.f32 0.0, %v5424_v45  ;;  %v6241_v42 = vpop.f32.mrb[116].mxu1 }
 0x4c8   : > { %v7572_v47 = vpop.eup %7571  ;;  %7581 = vrcp.f32 %v5616_v1  ;;  %v6242_v11 = vpop.f32.mrb[117].mxu1 }
 0x4c9   : > { %5677 = vst [vmem:[%s9511_s23 + $0x10] sm:$0xff] %v7572_v47  ;;  %7583 = vpow2.f32 %v5563_v8  ;;  %v5565_v34 = vmul.f32 1.442695, %v5524_v62  ;;  %v6243_v60 = vadd.f32 %v6242_v11, %v6241_v42  ;;  %v6244_v61 = vpop.f32.mrb[118].mxu1 }
 0x4ca   : > { %v7574_v32 = vpop.eup %7573  ;;  %v6245_v16 = vpop.f32.mrb[119].mxu1 }
 0x4cb   : > { %v7576_v49 = vpop.eup %7575  ;;  %5678 = vst [vmem:[%s9511_s23 + $0x18] sm:$0xff] %v7574_v32  ;;  %7585 = vpow2.f32 %v5565_v34  ;;  %v5429_v50 = vadd.f32 %v6243_v60, %v9497_v53  ;;  %v6246_v25 = vadd.f32 %v6245_v16, %v6244_v61 }
 0x4cc   : > { %v5617_v21 = vadd.f32 1.0, %v7576_v49 }
 0x4cd   : > { %v7578_v37 = vpop.eup %7577  ;;  %v5525_v63 = vsub.f32 0.0, %v5429_v50  ;;  %v5432_v40 = vadd.f32 %v6246_v25, %v9497_v53 }
 0x4ce   : > { %7587 = vrcp.f32 %v5617_v21  ;;  %v5618_v4 = vadd.f32 1.0, %v7578_v37 }
 0x4cf   : > { %v5567_v7 = vmul.f32 1.442695, %v5525_v63  ;;  %v5526_v22 = vsub.f32 0.0, %v5432_v40  ;;  %v6247_v6 = vpop.f32.mrb[120].mxu1 }
 0x4d0   : > { %v7580_v2 = vpop.eup %7579  ;;  %7589 = vrcp.f32 %v5618_v4  ;;  %v6248_v41 = vpop.f32.mrb[121].mxu1 }
 0x4d1   : > { %5679 = vst [vmem:[%s9511_s23 + $0x20] sm:$0xff] %v7580_v2  ;;  %7591 = vpow2.f32 %v5567_v7  ;;  %v5569_v23 = vmul.f32 1.442695, %v5526_v22  ;;  %v6249_v58 = vadd.f32 %v6248_v41, %v6247_v6  ;;  %v6250_v57 = vpop.f32.mrb[122].mxu1 }
 0x4d2   : > { %v7582_v0 = vpop.eup %7581  ;;  %v6251_v29 = vpop.f32.mrb[123].mxu1 }
 0x4d3   : > { %v7584_v43 = vpop.eup %7583  ;;  %5680 = vst [vmem:[%s9511_s23 + $0x28] sm:$0xff] %v7582_v0  ;;  %7593 = vpow2.f32 %v5569_v23  ;;  %v5437_v3 = vadd.f32 %v6249_v58, %v9497_v53  ;;  %v6252_v20 = vadd.f32 %v6251_v29, %v6250_v57 }
 0x4d4   : > { %v5619_v30 = vadd.f32 1.0, %v7584_v43 }
 0x4d5   : > { %v7586_v33 = vpop.eup %7585  ;;  %v5527_v26 = vsub.f32 0.0, %v5437_v3  ;;  %v5440_v28 = vadd.f32 %v6252_v20, %v9497_v53 }
 0x4d6   : > { %7595 = vrcp.f32 %v5619_v30  ;;  %v5620_v59 = vadd.f32 1.0, %v7586_v33 }
 0x4d7   : > { %v5571_v36 = vmul.f32 1.442695, %v5527_v26  ;;  %v5528_v35 = vsub.f32 0.0, %v5440_v28  ;;  %v6253_v9 = vpop.f32.mrb[124].mxu1 }
 0x4d8   : > { %v7588_v52 = vpop.eup %7587  ;;  %7597 = vrcp.f32 %v5620_v59  ;;  %v6254_v54 = vpop.f32.mrb[125].mxu1 }
 0x4d9   : > { %5681 = vst [vmem:[%s9511_s23 + $0x30] sm:$0xff] %v7588_v52  ;;  %7599 = vpow2.f32 %v5571_v36  ;;  %v5573_v51 = vmul.f32 1.442695, %v5528_v35  ;;  %v6255_v17 = vadd.f32 %v6254_v54, %v6253_v9  ;;  %v6256_v10 = vpop.f32.mrb[126].mxu1 }
 0x4da   : > { %v7590_v48 = vpop.eup %7589  ;;  %v6257_v18 = vpop.f32.mrb[127].mxu1 }
 0x4db   : > { %v7592_v5 = vpop.eup %7591  ;;  %5682 = vst [vmem:[%s9511_s23 + $0x38] sm:$0xff] %v7590_v48  ;;  %7601 = vpow2.f32 %v5573_v51  ;;  %v5445_v44 = vadd.f32 %v6255_v17, %v9497_v53  ;;  %v6258_v56 = vadd.f32 %v6257_v18, %v6256_v10 }
 0x4dc   : > { %v5621_v31 = vadd.f32 1.0, %v7592_v5 }
 0x4dd   : > { %v7594_v27 = vpop.eup %7593  ;;  %v5529_v15 = vsub.f32 0.0, %v5445_v44  ;;  %v5448_v38 = vadd.f32 %v6258_v56, %v9497_v53 }
 0x4de   : > { %7603 = vrcp.f32 %v5621_v31  ;;  %v5622_v39 = vadd.f32 1.0, %v7594_v27 }
 0x4df   : > { %v5575_v14 = vmul.f32 1.442695, %v5529_v15  ;;  %v5530_v46 = vsub.f32 0.0, %v5448_v38  ;;  %v6259_v55 = vpop.f32.mrb[128].mxu1 }
 0x4e0   : > { %v7596_v19 = vpop.eup %7595  ;;  %7605 = vrcp.f32 %v5622_v39  ;;  %v6260_v12 = vpop.f32.mrb[129].mxu1 }
 0x4e1   : > { %5683 = vst [vmem:[%s9511_s23 + $0x40] sm:$0xff] %v7596_v19  ;;  %7607 = vpow2.f32 %v5575_v14  ;;  %v5577_v24 = vmul.f32 1.442695, %v5530_v46  ;;  %v6261_v13 = vadd.f32 %v6260_v12, %v6259_v55  ;;  %v6262_v45 = vpop.f32.mrb[130].mxu1 }
 0x4e2   : > { %v7598_v1 = vpop.eup %7597  ;;  %v6263_v8 = vpop.f32.mrb[131].mxu1 }
 0x4e3   : > { %v7600_v62 = vpop.eup %7599  ;;  %5684 = vst [vmem:[%s9511_s23 + $0x48] sm:$0xff] %v7598_v1  ;;  %7609 = vpow2.f32 %v5577_v24  ;;  %v5453_v42 = vadd.f32 %v6261_v13, %v9497_v53  ;;  %v6264_v47 = vadd.f32 %v6263_v8, %v6262_v45 }
 0x4e4   : > { %v5623_v11 = vadd.f32 1.0, %v7600_v62 }
 0x4e5   : > { %v7602_v34 = vpop.eup %7601  ;;  %v5531_v60 = vsub.f32 0.0, %v5453_v42  ;;  %v5456_v61 = vadd.f32 %v6264_v47, %v9497_v53 }
 0x4e6   : > { %7611 = vrcp.f32 %v5623_v11  ;;  %v5624_v32 = vadd.f32 1.0, %v7602_v34 }
 0x4e7   : > { %v5579_v16 = vmul.f32 1.442695, %v5531_v60  ;;  %v5532_v49 = vsub.f32 0.0, %v5456_v61  ;;  %v6265_v50 = vpop.f32.mrb[132].mxu1 }
 0x4e8   : > { %v7604_v25 = vpop.eup %7603  ;;  %7613 = vrcp.f32 %v5624_v32  ;;  %v6266_v21 = vpop.f32.mrb[133].mxu1 }
 0x4e9   : > { %5685 = vst [vmem:[%s9511_s23 + $0x50] sm:$0xff] %v7604_v25  ;;  %7615 = vpow2.f32 %v5579_v16  ;;  %v5581_v37 = vmul.f32 1.442695, %v5532_v49  ;;  %v6267_v63 = vadd.f32 %v6266_v21, %v6265_v50  ;;  %v6268_v40 = vpop.f32.mrb[134].mxu1 }
 0x4ea   : > { %v7606_v4 = vpop.eup %7605  ;;  %v6269_v7 = vpop.f32.mrb[135].mxu1 }
 0x4eb   : > { %v7608_v22 = vpop.eup %7607  ;;  %5686 = vst [vmem:[%s9511_s23 + $0x58] sm:$0xff] %v7606_v4  ;;  %7617 = vpow2.f32 %v5581_v37  ;;  %v5461_v6 = vadd.f32 %v6267_v63, %v9497_v53  ;;  %v6270_v2 = vadd.f32 %v6269_v7, %v6268_v40 }
 0x4ec   : > { %v5625_v41 = vadd.f32 1.0, %v7608_v22 }
 0x4ed   : > { %v7610_v23 = vpop.eup %7609  ;;  %v5533_v58 = vsub.f32 0.0, %v5461_v6  ;;  %v5464_v57 = vadd.f32 %v6270_v2, %v9497_v53 }
 0x4ee   : > { %7619 = vrcp.f32 %v5625_v41  ;;  %v5626_v0 = vadd.f32 1.0, %v7610_v23 }
 0x4ef   : > { %v5583_v29 = vmul.f32 1.442695, %v5533_v58  ;;  %v5534_v43 = vsub.f32 0.0, %v5464_v57  ;;  %v6271_v3 = vpop.f32.mrb[136].mxu1 }
 0x4f0   : > { %v7612_v20 = vpop.eup %7611  ;;  %7621 = vrcp.f32 %v5626_v0  ;;  %v6272_v30 = vpop.f32.mrb[137].mxu1 }
 0x4f1   : > { %5687 = vst [vmem:[%s9511_s23 + $0x60] sm:$0xff] %v7612_v20  ;;  %7623 = vpow2.f32 %v5583_v29  ;;  %v5585_v33 = vmul.f32 1.442695, %v5534_v43  ;;  %v6273_v26 = vadd.f32 %v6272_v30, %v6271_v3  ;;  %v6274_v28 = vpop.f32.mrb[138].mxu1 }
 0x4f2   : > { %v7614_v59 = vpop.eup %7613  ;;  %v6275_v36 = vpop.f32.mrb[139].mxu1 }
 0x4f3   : > { %v7616_v35 = vpop.eup %7615  ;;  %5688 = vst [vmem:[%s9511_s23 + $0x68] sm:$0xff] %v7614_v59  ;;  %7625 = vpow2.f32 %v5585_v33  ;;  %v5469_v9 = vadd.f32 %v6273_v26, %v9497_v53  ;;  %v6276_v52 = vadd.f32 %v6275_v36, %v6274_v28 }
 0x4f4   : > { %v5627_v54 = vadd.f32 1.0, %v7616_v35 }
 0x4f5   : > { %v7618_v51 = vpop.eup %7617  ;;  %v5535_v17 = vsub.f32 0.0, %v5469_v9  ;;  %v5472_v10 = vadd.f32 %v6276_v52, %v9497_v53 }
 0x4f6   : > { %7627 = vrcp.f32 %v5627_v54  ;;  %v5628_v48 = vadd.f32 1.0, %v7618_v51 }
 0x4f7   : > { %v5587_v18 = vmul.f32 1.442695, %v5535_v17  ;;  %v5536_v5 = vsub.f32 0.0, %v5472_v10  ;;  %v6277_v44 = vpop.f32.mrb[140].mxu1 }
 0x4f8   : > { %v7620_v56 = vpop.eup %7619  ;;  %7629 = vrcp.f32 %v5628_v48  ;;  %v6278_v31 = vpop.f32.mrb[141].mxu1 }
 0x4f9   : > { %5689 = vst [vmem:[%s9511_s23 + $0x70] sm:$0xff] %v7620_v56  ;;  %7631 = vpow2.f32 %v5587_v18  ;;  %v5589_v27 = vmul.f32 1.442695, %v5536_v5  ;;  %v6279_v15 = vadd.f32 %v6278_v31, %v6277_v44  ;;  %v6280_v38 = vpop.f32.mrb[142].mxu1 }
 0x4fa   : > { %v7622_v39 = vpop.eup %7621  ;;  %v6281_v14 = vpop.f32.mrb[143].mxu1 }
 0x4fb   : > { %v7624_v46 = vpop.eup %7623  ;;  %5690 = vst [vmem:[%s9511_s23 + $0x78] sm:$0xff] %v7622_v39  ;;  %7633 = vpow2.f32 %v5589_v27  ;;  %v5477_v55 = vadd.f32 %v6279_v15, %v9497_v53  ;;  %v6282_v19 = vadd.f32 %v6281_v14, %v6280_v38 }
 0x4fc   : > { %v5629_v12 = vadd.f32 1.0, %v7624_v46 }
 0x4fd   : > { %v7626_v24 = vpop.eup %7625  ;;  %v5537_v13 = vsub.f32 0.0, %v5477_v55  ;;  %v5480_v45 = vadd.f32 %v6282_v19, %v9497_v53 }
 0x4fe   : > { %7635 = vrcp.f32 %v5629_v12  ;;  %v5630_v1 = vadd.f32 1.0, %v7626_v24 }
 0x4ff   : > { %v5591_v8 = vmul.f32 1.442695, %v5537_v13  ;;  %v5538_v62 = vsub.f32 0.0, %v5480_v45  ;;  %v6283_v42 = vpop.f32.mrb[144].mxu1 }
 0x500   : > { %v7628_v47 = vpop.eup %7627  ;;  %7637 = vrcp.f32 %v5630_v1  ;;  %v6284_v11 = vpop.f32.mrb[145].mxu1 }
 0x501   : > { %5691 = vst [vmem:[%s9511_s23 + $0x80] sm:$0xff] %v7628_v47  ;;  %7639 = vpow2.f32 %v5591_v8  ;;  %v5593_v34 = vmul.f32 1.442695, %v5538_v62  ;;  %v6285_v60 = vadd.f32 %v6284_v11, %v6283_v42  ;;  %v6286_v61 = vpop.f32.mrb[146].mxu1 }
 0x502   : > { %v7630_v32 = vpop.eup %7629  ;;  %v6287_v16 = vpop.f32.mrb[147].mxu1 }
 0x503   : > { %v7632_v49 = vpop.eup %7631  ;;  %5692 = vst [vmem:[%s9511_s23 + $0x88] sm:$0xff] %v7630_v32  ;;  %7641 = vpow2.f32 %v5593_v34  ;;  %v5485_v50 = vadd.f32 %v6285_v60, %v9497_v53  ;;  %v6288_v25 = vadd.f32 %v6287_v16, %v6286_v61 }
 0x504   : > { %v5631_v21 = vadd.f32 1.0, %v7632_v49 }
 0x505   : > { %v7634_v37 = vpop.eup %7633  ;;  %v5539_v63 = vsub.f32 0.0, %v5485_v50  ;;  %v5488_v40 = vadd.f32 %v6288_v25, %v9497_v53 }
 0x506   : > { %7643 = vrcp.f32 %v5631_v21  ;;  %v5632_v4 = vadd.f32 1.0, %v7634_v37 }
 0x507   : > { %v5595_v7 = vmul.f32 1.442695, %v5539_v63  ;;  %v5540_v22 = vsub.f32 0.0, %v5488_v40  ;;  %v6289_v6 = vpop.f32.mrb[148].mxu1 }
 0x508   : > { %v7636_v2 = vpop.eup %7635  ;;  %7645 = vrcp.f32 %v5632_v4  ;;  %v6290_v41 = vpop.f32.mrb[149].mxu1 }
 0x509   : > { %5693 = vst [vmem:[%s9511_s23 + $0x90] sm:$0xff] %v7636_v2  ;;  %7647 = vpow2.f32 %v5595_v7  ;;  %v5597_v23 = vmul.f32 1.442695, %v5540_v22  ;;  %v6291_v58 = vadd.f32 %v6290_v41, %v6289_v6  ;;  %v6292_v57 = vpop.f32.mrb[150].mxu1 }
 0x50a   : > { %v7638_v0 = vpop.eup %7637  ;;  %v6293_v29 = vpop.f32.mrb[151].mxu1 }
 0x50b   : > { %v7640_v43 = vpop.eup %7639  ;;  %5694 = vst [vmem:[%s9511_s23 + $0x98] sm:$0xff] %v7638_v0  ;;  %7649 = vpow2.f32 %v5597_v23  ;;  %v5493_v3 = vadd.f32 %v6291_v58, %v9497_v53  ;;  %v6294_v20 = vadd.f32 %v6293_v29, %v6292_v57 }
 0x50c   : > { %v5633_v30 = vadd.f32 1.0, %v7640_v43 }
 0x50d   : > { %v7642_v33 = vpop.eup %7641  ;;  %v5541_v26 = vsub.f32 0.0, %v5493_v3  ;;  %v5496_v28 = vadd.f32 %v6294_v20, %v9497_v53 }
 0x50e   : > { %7651 = vrcp.f32 %v5633_v30  ;;  %v5634_v59 = vadd.f32 1.0, %v7642_v33 }
 0x50f   : > { %v5599_v36 = vmul.f32 1.442695, %v5541_v26  ;;  %v5542_v35 = vsub.f32 0.0, %v5496_v28  ;;  %v6295_v9 = vpop.f32.mrb[152].mxu1 }
 0x510   : > { %v7644_v52 = vpop.eup %7643  ;;  %7653 = vrcp.f32 %v5634_v59  ;;  %v6296_v54 = vpop.f32.mrb[153].mxu1 }
 0x511   : > { %5695 = vst [vmem:[%s9511_s23 + $0xa0] sm:$0xff] %v7644_v52  ;;  %7655 = vpow2.f32 %v5599_v36  ;;  %v5601_v51 = vmul.f32 1.442695, %v5542_v35  ;;  %v6297_v17 = vadd.f32 %v6296_v54, %v6295_v9  ;;  %v6298_v10 = vpop.f32.mrb[154].mxu1 }
 0x512   : > { %v7646_v48 = vpop.eup %7645  ;;  %v6299_v18 = vpop.f32.mrb[155].mxu1 }
 0x513   : > { %v7648_v5 = vpop.eup %7647  ;;  %5696 = vst [vmem:[%s9511_s23 + $0xa8] sm:$0xff] %v7646_v48  ;;  %7657 = vpow2.f32 %v5601_v51  ;;  %v5501_v44 = vadd.f32 %v6297_v17, %v9497_v53  ;;  %v6300_v56 = vadd.f32 %v6299_v18, %v6298_v10 }
 0x514   : > { %v5635_v31 = vadd.f32 1.0, %v7648_v5 }
 0x515   : > { %v7650_v27 = vpop.eup %7649  ;;  %v5543_v15 = vsub.f32 0.0, %v5501_v44  ;;  %v5504_v38 = vadd.f32 %v6300_v56, %v9497_v53 }
 0x516   : > { %7659 = vrcp.f32 %v5635_v31  ;;  %v5636_v39 = vadd.f32 1.0, %v7650_v27 }
 0x517   : > { %v5603_v14 = vmul.f32 1.442695, %v5543_v15  ;;  %v5544_v46 = vsub.f32 0.0, %v5504_v38  ;;  %v6301_v55 = vpop.f32.mrb[156].mxu1 }
 0x518   : > { %v7652_v19 = vpop.eup %7651  ;;  %7661 = vrcp.f32 %v5636_v39  ;;  %v6302_v12 = vpop.f32.mrb[157].mxu1 }
 0x519   : > { %5697 = vst [vmem:[%s9511_s23 + $0xb0] sm:$0xff] %v7652_v19  ;;  %7663 = vpow2.f32 %v5603_v14  ;;  %v5605_v24 = vmul.f32 1.442695, %v5544_v46  ;;  %v6303_v13 = vadd.f32 %v6302_v12, %v6301_v55  ;;  %v6304_v45 = vpop.f32.mrb[158].mxu1 }
 0x51a   : > { %v7654_v1 = vpop.eup %7653  ;;  %v6305_v8 = vpop.f32.mrb[159].mxu1 }
 0x51b   : > { %v7656_v62 = vpop.eup %7655  ;;  %5698 = vst [vmem:[%s9511_s23 + $0xb8] sm:$0xff] %v7654_v1  ;;  %7665 = vpow2.f32 %v5605_v24  ;;  %v5509_v42 = vadd.f32 %v6303_v13, %v9497_v53  ;;  %v6306_v47 = vadd.f32 %v6305_v8, %v6304_v45 }
 0x51c   : > { %v5637_v11 = vadd.f32 1.0, %v7656_v62 }
 0x51d   : > { %v7658_v34 = vpop.eup %7657  ;;  %v5545_v60 = vsub.f32 0.0, %v5509_v42  ;;  %v5512_v61 = vadd.f32 %v6306_v47, %v9497_v53 }
 0x51e   : > { %7667 = vrcp.f32 %v5637_v11  ;;  %v5638_v32 = vadd.f32 1.0, %v7658_v34 }
 0x51f   : > { %v5607_v16 = vmul.f32 1.442695, %v5545_v60  ;;  %v5546_v49 = vsub.f32 0.0, %v5512_v61 }
 0x520   : > { %v7660_v50 = vpop.eup %7659  ;;  %7669 = vrcp.f32 %v5638_v32 }
 0x521   : > { %5699 = vst [vmem:[%s9511_s23 + $0xc0] sm:$0xff] %v7660_v50  ;;  %7671 = vpow2.f32 %v5607_v16  ;;  %v5609_v25 = vmul.f32 1.442695, %v5546_v49 }
 0x522   : > { %v7662_v21 = vpop.eup %7661 }
 0x523   : > { %v7664_v37 = vpop.eup %7663  ;;  %5700 = vst [vmem:[%s9511_s23 + $0xc8] sm:$0xff] %v7662_v21  ;;  %7673 = vpow2.f32 %v5609_v25 }
 0x524   : > { %v5639_v63 = vadd.f32 1.0, %v7664_v37 }
 0x525   : > { %v7666_v40 = vpop.eup %7665 }
 0x526   : > { %7675 = vrcp.f32 %v5639_v63  ;;  %v5640_v53 = vadd.f32 1.0, %v7666_v40 }
 0x528   : > { %v7668_v4 = vpop.eup %7667  ;;  %7677 = vrcp.f32 %v5640_v53 }
 0x529   : > { %5701 = vst [vmem:[%s9511_s23 + $0xd0] sm:$0xff] %v7668_v4 }
 0x52a   : > { %v7670_v7 = vpop.eup %7669 }
 0x52b   : > { %v7672_v22 = vpop.eup %7671  ;;  %5702 = vst [vmem:[%s9511_s23 + $0xd8] sm:$0xff] %v7670_v7 }
 0x52c   : > { %v5641_v6 = vadd.f32 1.0, %v7672_v22 }
 0x52d   : > { %v7674_v2 = vpop.eup %7673 }
 0x52e   : > { %7679 = vrcp.f32 %v5641_v6  ;;  %v5642_v41 = vadd.f32 1.0, %v7674_v2 }
 0x530   : > { %v7676_v23 = vpop.eup %7675  ;;  %7681 = vrcp.f32 %v5642_v41 }
 0x531   : > { %5703 = vst [vmem:[%s9511_s23 + $0xe0] sm:$0xff] %v7676_v23 }
 0x532   : > { %v7678_v58 = vpop.eup %7677 }
 0x533   : > { %5704 = vst [vmem:[%s9511_s23 + $0xe8] sm:$0xff] %v7678_v58 }
 0x538   : > { %v7680_v57 = vpop.eup %7679 }
 0x539   : > { %5705 = vst [vmem:[%s9511_s23 + $0xf0] sm:$0xff] %v7680_v57 }
 0x53a   : > { %v7682_v0 = vpop.eup %7681 }
 0x53b   : > { %5706 = vst [vmem:[%s9511_s23 + $0xf8] sm:$0xff] %v7682_v0 }
 0x53c PF: > { %s17_s24 = sadd.s32 1, %s7703_s24  }
 0x53d   : > { %p14_p4 = scmp.ge.s32.totalorder %s17_s24, 4  }
 0x53f   :  { %16 = sbr.rel (!%p14_p4) target bundleno = 1 (0x1), region = 78 }

</bundles_post_ra>
